<compile_context>
chip_gen: v7x
topology: tpu7x:2x2x1
jax: 0.10.0
libtpu: 0.0.40
codegen_flags: <defaults>
</compile_context>

<pallas_src>
import numpy as np
import jax
import jax.numpy as jnp
from jax.experimental import pallas as pl
from jax.experimental.pallas import tpu as pltpu

PATCH = 256          # self.patch_size
PHASE2 = 64          # self.phase2_size
NUM_CLASSES = 7      # option['network_G']['out_nc'] (== len(color_map))
RGB = 3


# --------------------------------------------------------------------------
# Kernel 1: phase-1 classifier (stand-in: global-average-pool + linear head).
# Reads the (B, 3, PATCH, PATCH) patch at grid position (i, j) straight out of
# the original image — no stacked-crop tensor is materialized.
# TODO(synk): real UNI_lora_cls backbone (ViT + LoRA) is not in the provided
#             source; only the per-patch "features -> 7 logits" hot path is
#             implemented here.
# --------------------------------------------------------------------------
def _classifier_kernel(x_ref, w_ref, b_ref, o_ref):
    x = x_ref[...]                                   # (B, 3, P, P)
    B = x.shape[0]
    # Sublane axis first (VALU adds), then one cross-lane XLU reduce.
    s = jnp.sum(x, axis=2)                           # (B, 3, P)
    s = jnp.sum(s, axis=2)                           # (B, 3)
    feat = s * (1.0 / float(PATCH * PATCH))          # global average pool
    # Head (B,3)@(3,7) as 3 VPU broadcast FMAs — skip the MXU entirely.
    w = w_ref[...]                                   # (3, 7)
    logits = jnp.broadcast_to(b_ref[...], (B, NUM_CLASSES))
    for c in range(RGB):
        logits = logits + feat[:, c:c + 1] * w[c:c + 1, :]
    o_ref[...] = logits.reshape(1, 1, B, NUM_CLASSES)


def phase1_classifier(x, w, b, num_h, num_w):
    B = x.shape[0]
    return pl.pallas_call(
        _classifier_kernel,
        out_shape=jax.ShapeDtypeStruct((num_h, num_w, B, NUM_CLASSES),
                                       jnp.float32),
        grid=(num_h, num_w),
        in_specs=[
            # Patch (i, j) of the original image: non-overlapping crops
            # (step == patch_size), expressed directly via the index_map.
            pl.BlockSpec((B, RGB, PATCH, PATCH), lambda i, j: (0, 0, i, j)),
            pl.BlockSpec((RGB, NUM_CLASSES), lambda i, j: (0, 0)),
            pl.BlockSpec((1, NUM_CLASSES), lambda i, j: (0, 0)),
        ],
        # Per-step output block -> safe to shard the patch loop across cores.
        out_specs=pl.BlockSpec((1, 1, B, NUM_CLASSES),
                               lambda i, j: (i, j, 0, 0)),
        compiler_params=pltpu.CompilerParams(
            dimension_semantics=("parallel", "parallel")),
    )(x, w, b)


# --------------------------------------------------------------------------
# Kernel 2: fused phase-2 refiner stand-in.
#   - denormalize_tensor followed by _to_normal collapses to clip(x, -1, 1)
#     (assuming denormalize is x*0.5+0.5; see TODO below).
#   - channel concat is fused away: cond / rgb enter as separate inputs and
#     the 1x1-conv weight is split into W[:, :7] and W[:, 7:].
#   - torch.mean(outs, dim=0, keepdim=True) is folded through the linear
#     refiner (average first, then one set of broadcast FMAs).
# TODO(synk): BBDM.sample_infer (full diffusion sampling loop) is unavailable;
#             replaced by a single 1x1 conv (10 -> 3) on the conditioning
#             stack.
# TODO(synk): data_utils.denormalize_tensor definition unavailable; assumed to
#             map [-1,1] -> [0,1] via x*0.5+0.5 (no per-channel mean/std).
# TODO(synk): the dim-0 mean reduces the combined batch*n_samples dim (here
#             n_samples = 1, so it reduces over batch), matching the previous
#             implementation's semantics.
# --------------------------------------------------------------------------
def _refiner_kernel(cond_ref, rgb_ref, wc_ref, wr_ref, b_ref, o_ref):
    B = cond_ref.shape[0]
    HW = cond_ref.shape[2]
    inv_b = 1.0 / float(B)
    cond_m = jnp.sum(cond_ref[...], axis=0) * inv_b                    # (7, HW)
    rgb_m = jnp.sum(jnp.clip(rgb_ref[...], -1.0, 1.0), axis=0) * inv_b  # (3, HW)
    wc = wc_ref[...]                                                    # (3, 7)
    wr = wr_ref[...]                                                    # (3, 3)
    # 10 VPU broadcast FMAs on (3, HW) slabs — no degenerate MXU matmul.
    acc = jnp.broadcast_to(b_ref[...], (RGB, HW))
    for k in range(NUM_CLASSES):
        acc = acc + wc[:, k:k + 1] * cond_m[k:k + 1, :]
    for k in range(RGB):
        acc = acc + wr[:, k:k + 1] * rgb_m[k:k + 1, :]
    o_ref[...] = acc.reshape(1, RGB, HW)


def phase2_refiner(x_cond, x_ds, wc, wr, b):
    B, _, HW = x_cond.shape
    return pl.pallas_call(
        _refiner_kernel,
        out_shape=jax.ShapeDtypeStruct((1, RGB, HW), jnp.float32),
        grid=(1,),
        in_specs=[
            pl.BlockSpec((B, NUM_CLASSES, HW), lambda i: (0, 0, 0)),
            pl.BlockSpec((B, RGB, HW), lambda i: (0, 0, 0)),
            pl.BlockSpec((RGB, NUM_CLASSES), lambda i: (0, 0)),
            pl.BlockSpec((RGB, RGB), lambda i: (0, 0)),
            pl.BlockSpec((RGB, 1), lambda i: (0, 0)),
        ],
        out_specs=pl.BlockSpec((1, RGB, HW), lambda i: (0, 0, 0)),
    )(x_cond, x_ds, wc, wr, b)


# --------------------------------------------------------------------------
# Forward pass (XLA glue: nearest-interp indexing / transposes only)
# --------------------------------------------------------------------------
def forward(x, params):
    B, C, H, W = x.shape
    assert C == RGB and H >= PATCH and W >= PATCH

    # _crop_tensor geometry (step == patch_size -> non-overlapping crops).
    num_h = (H - PATCH) // PATCH + 1
    num_w = (W - PATCH) // PATCH + 1
    h = (num_h - 1) * PATCH + PATCH
    w = (num_w - 1) * PATCH + PATCH

    # _generate_patch_seq: phase-1 classifier reads patches directly (Pallas).
    preds = phase1_classifier(x, params["cls_w"], params["cls_b"],
                              num_h, num_w)            # (num_h, num_w, B, 7)

    # _combine_tensor + F.interpolate(nearest, 64x64).  Per-patch preds are
    # spatially constant and crops are non-overlapping (the /2 overlap
    # correction is a no-op), so the combined+interpolated conditioning is a
    # pure static patch-index lookup.
    ci = (np.arange(PHASE2) * h) // PHASE2             # nearest src rows (h x w map)
    cj = (np.arange(PHASE2) * w) // PHASE2
    pi = ci // PATCH                                   # (64,) patch-row index
    pj = cj // PATCH                                   # (64,) patch-col index
    x_cond = preds[pi[:, None], pj[None, :]]           # (64, 64, B, 7)
    x_cond = jnp.transpose(x_cond, (2, 3, 0, 1)).reshape(
        B, NUM_CLASSES, PHASE2 * PHASE2)               # (B, 7, 4096)

    # F.interpolate(x, 64x64, nearest): strided slice when exact, else gather.
    if H % PHASE2 == 0 and W % PHASE2 == 0:
        x_ds = x[:, :, ::H // PHASE2, ::W // PHASE2]   # (B, 3, 64, 64)
    else:
        si = (np.arange(PHASE2) * H) // PHASE2
        sj = (np.arange(PHASE2) * W) // PHASE2
        x_ds = x[:, :, si, :][:, :, :, sj]
    x_ds = x_ds.reshape(B, RGB, PHASE2 * PHASE2)       # (B, 3, 4096)

    # Fused denorm/_to_normal clip + refiner + mean over dim 0 (Pallas).
    out = phase2_refiner(x_cond, x_ds,
                         params["ref_wc"], params["ref_wr"],
                         params["ref_b"])              # (1, 3, 4096)
    out = out.reshape(1, RGB, PHASE2, PHASE2)
    out = jnp.transpose(out, (0, 2, 3, 1))             # .permute(0, 2, 3, 1)
    return out


def init_params(key):
    k1, k2, k3, k4 = jax.random.split(key, 4)
    ref_w = 0.1 * jax.random.normal(k3, (RGB, NUM_CLASSES + RGB), jnp.float32)
    return {
        "cls_w": 0.1 * jax.random.normal(k1, (RGB, NUM_CLASSES), jnp.float32),
        "cls_b": 0.1 * jax.random.normal(k2, (1, NUM_CLASSES), jnp.float32),
        "ref_wc": ref_w[:, :NUM_CLASSES],              # 1x1 conv, cond channels
        "ref_wr": ref_w[:, NUM_CLASSES:],              # 1x1 conv, rgb channels
        "ref_b": 0.1 * jax.random.normal(k4, (RGB, 1), jnp.float32),
    }


if __name__ == "__main__":
    key = jax.random.PRNGKey(0)
    pkey, xkey = jax.random.split(key)
    params = init_params(pkey)
    # Input image, NCHW, normalized to [-1, 1]; 512x512 -> 2x2 patches of 256.
    x = jax.random.uniform(xkey, (2, RGB, 2 * PATCH, 2 * PATCH),
                           dtype=jnp.float32, minval=-1.0, maxval=1.0)

    out = jax.jit(forward)(x, params)
    out = jax.block_until_ready(out)
    assert out.shape == (1, PHASE2, PHASE2, RGB), out.shape
    assert bool(jnp.all(jnp.isfinite(out)))
    print("KERNEL_OK")
</pallas_src>

<mosaic_0001>
module attributes {stable_mosaic.version = 11 : i64} {
  func.func @_classifier_kernel(%arg0: i32, %arg1: i32, %arg2: memref<2x3x256x256xf32, #tpu.memory_space<vmem>>, %arg3: memref<3x7xf32, #tpu.memory_space<vmem>>, %arg4: memref<1x7xf32, #tpu.memory_space<vmem>>, %arg5: memref<1x1x2x7xf32, #tpu.memory_space<vmem>>) attributes {dimension_semantics = [#tpu.dimension_semantics<parallel>, #tpu.dimension_semantics<parallel>], iteration_bounds = array<i64: 2, 2>, scalar_prefetch = 0 : i64, scratch_operands = 0 : i64, tpu.core_type = #tpu.core_type<tc>, window_params = [{transform_indices = @transform_0, window_bounds = array<i64: 2, 3, 256, 256>}, {pipeline_mode = #tpu.pipeline_mode<synchronous>, transform_indices = @transform_1, window_bounds = array<i64: 3, 7>}, {pipeline_mode = #tpu.pipeline_mode<synchronous>, transform_indices = @transform_2, window_bounds = array<i64: 1, 7>}, {transform_indices = @transform_3, window_bounds = array<i64: 1, 1, 2, 7>}]} {
    %c0 = arith.constant 0 : index
    %c0_0 = arith.constant 0 : index
    %c0_1 = arith.constant 0 : index
    %c0_2 = arith.constant 0 : index
    %0 = vector.load %arg2[%c0, %c0_0, %c0_1, %c0_2] : memref<2x3x256x256xf32, #tpu.memory_space<vmem>>, vector<2x3x256x256xf32>
    %cst = arith.constant dense<0.000000e+00> : vector<2x3x256xf32>
    %1 = vector.multi_reduction <add>, %0, %cst [2] : vector<2x3x256x256xf32> to vector<2x3x256xf32>
    %cst_3 = arith.constant dense<0.000000e+00> : vector<2x3xf32>
    %2 = vector.multi_reduction <add>, %1, %cst_3 [2] : vector<2x3x256xf32> to vector<2x3xf32>
    %cst_4 = arith.constant 1.52587891E-5 : f32
    %3 = vector.broadcast %cst_4 : f32 to vector<2x3xf32>
    %4 = arith.mulf %2, %3 : vector<2x3xf32>
    %c0_5 = arith.constant 0 : index
    %c0_6 = arith.constant 0 : index
    %5 = vector.load %arg3[%c0_5, %c0_6] : memref<3x7xf32, #tpu.memory_space<vmem>>, vector<3x7xf32>
    %c0_7 = arith.constant 0 : index
    %c0_8 = arith.constant 0 : index
    %6 = vector.load %arg4[%c0_7, %c0_8] : memref<1x7xf32, #tpu.memory_space<vmem>>, vector<1x7xf32>
    %7 = vector.shape_cast %6 : vector<1x7xf32> to vector<1x7xf32>
    %8 = vector.broadcast %7 : vector<1x7xf32> to vector<2x7xf32>
    %9 = vector.extract_strided_slice %4 {offsets = [0, 0], sizes = [2, 1], strides = [1, 1]} : vector<2x3xf32> to vector<2x1xf32>
    %10 = vector.extract_strided_slice %5 {offsets = [0, 0], sizes = [1, 7], strides = [1, 1]} : vector<3x7xf32> to vector<1x7xf32>
    %11 = vector.broadcast %9 : vector<2x1xf32> to vector<2x7xf32>
    %12 = vector.broadcast %10 : vector<1x7xf32> to vector<2x7xf32>
    %13 = arith.mulf %11, %12 : vector<2x7xf32>
    %14 = arith.addf %8, %13 : vector<2x7xf32>
    %15 = vector.extract_strided_slice %4 {offsets = [0, 1], sizes = [2, 1], strides = [1, 1]} : vector<2x3xf32> to vector<2x1xf32>
    %16 = vector.extract_strided_slice %5 {offsets = [1, 0], sizes = [1, 7], strides = [1, 1]} : vector<3x7xf32> to vector<1x7xf32>
    %17 = vector.broadcast %15 : vector<2x1xf32> to vector<2x7xf32>
    %18 = vector.broadcast %16 : vector<1x7xf32> to vector<2x7xf32>
    %19 = arith.mulf %17, %18 : vector<2x7xf32>
    %20 = arith.addf %14, %19 : vector<2x7xf32>
    %21 = vector.extract_strided_slice %4 {offsets = [0, 2], sizes = [2, 1], strides = [1, 1]} : vector<2x3xf32> to vector<2x1xf32>
    %22 = vector.extract_strided_slice %5 {offsets = [2, 0], sizes = [1, 7], strides = [1, 1]} : vector<3x7xf32> to vector<1x7xf32>
    %23 = vector.broadcast %21 : vector<2x1xf32> to vector<2x7xf32>
    %24 = vector.broadcast %22 : vector<1x7xf32> to vector<2x7xf32>
    %25 = arith.mulf %23, %24 : vector<2x7xf32>
    %26 = arith.addf %20, %25 : vector<2x7xf32>
    %27 = vector.shape_cast %26 : vector<2x7xf32> to vector<1x1x2x7xf32>
    %c0_9 = arith.constant 0 : index
    %c0_10 = arith.constant 0 : index
    %c0_11 = arith.constant 0 : index
    %c0_12 = arith.constant 0 : index
    %28 = vector.load %arg5[%c0_9, %c0_10, %c0_11, %c0_12] : memref<1x1x2x7xf32, #tpu.memory_space<vmem>>, vector<1x1x2x7xf32>
    tpu.vector_store %arg5[%c0_9, %c0_10, %c0_11, %c0_12], %27 {strides = array<i32>} : memref<1x1x2x7xf32, #tpu.memory_space<vmem>>, vector<1x1x2x7xf32>,
    return
  }
  func.func @transform_0(%arg0: i32, %arg1: i32) -> (i32, i32, i32, i32) {
    %c0_i32 = arith.constant 0 : i32
    %c0_i32_0 = arith.constant 0 : i32
    %c0_i32_1 = arith.constant 0 : i32
    return %c0_i32, %c0_i32_0, %arg0, %arg1 : i32, i32, i32, i32
  }
  func.func @transform_1(%arg0: i32, %arg1: i32) -> (i32, i32) {
    %c0_i32 = arith.constant 0 : i32
    %c0_i32_0 = arith.constant 0 : i32
    %c0_i32_1 = arith.constant 0 : i32
    return %c0_i32, %c0_i32_0 : i32, i32
  }
  func.func @transform_2(%arg0: i32, %arg1: i32) -> (i32, i32) {
    %c0_i32 = arith.constant 0 : i32
    %c0_i32_0 = arith.constant 0 : i32
    %c0_i32_1 = arith.constant 0 : i32
    return %c0_i32, %c0_i32_0 : i32, i32
  }
  func.func @transform_3(%arg0: i32, %arg1: i32) -> (i32, i32, i32, i32) {
    %c0_i32 = arith.constant 0 : i32
    %c0_i32_0 = arith.constant 0 : i32
    %c0_i32_1 = arith.constant 0 : i32
    return %arg0, %arg1, %c0_i32, %c0_i32_0 : i32, i32, i32, i32
  }
}

module attributes {stable_mosaic.version = 11 : i64} {
  func.func @_refiner_kernel(%arg0: i32, %arg1: memref<2x7x4096xf32, #tpu.memory_space<vmem>>, %arg2: memref<2x3x4096xf32, #tpu.memory_space<vmem>>, %arg3: memref<3x7xf32, #tpu.memory_space<vmem>>, %arg4: memref<3x3xf32, #tpu.memory_space<vmem>>, %arg5: memref<3x1xf32, #tpu.memory_space<vmem>>, %arg6: memref<1x3x4096xf32, #tpu.memory_space<vmem>>) attributes {dimension_semantics = [#tpu.dimension_semantics<arbitrary>], iteration_bounds = array<i64: 1>, scalar_prefetch = 0 : i64, scratch_operands = 0 : i64, tpu.core_type = #tpu.core_type<tc>, window_params = [{pipeline_mode = #tpu.pipeline_mode<synchronous>, transform_indices = @transform_0, window_bounds = array<i64: 2, 7, 4096>}, {pipeline_mode = #tpu.pipeline_mode<synchronous>, transform_indices = @transform_1, window_bounds = array<i64: 2, 3, 4096>}, {pipeline_mode = #tpu.pipeline_mode<synchronous>, transform_indices = @transform_2, window_bounds = array<i64: 3, 7>}, {pipeline_mode = #tpu.pipeline_mode<synchronous>, transform_indices = @transform_3, window_bounds = array<i64: 3, 3>}, {pipeline_mode = #tpu.pipeline_mode<synchronous>, transform_indices = @transform_4, window_bounds = array<i64: 3, 1>}, {pipeline_mode = #tpu.pipeline_mode<synchronous>, transform_indices = @transform_5, window_bounds = array<i64: 1, 3, 4096>}]} {
    %c0 = arith.constant 0 : index
    %c0_0 = arith.constant 0 : index
    %c0_1 = arith.constant 0 : index
    %0 = vector.load %arg1[%c0, %c0_0, %c0_1] : memref<2x7x4096xf32, #tpu.memory_space<vmem>>, vector<2x7x4096xf32>
    %cst = arith.constant dense<0.000000e+00> : vector<7x4096xf32>
    %1 = vector.multi_reduction <add>, %0, %cst [0] : vector<2x7x4096xf32> to vector<7x4096xf32>
    %cst_2 = arith.constant 5.000000e-01 : f32
    %2 = vector.broadcast %cst_2 : f32 to vector<7x4096xf32>
    %3 = arith.mulf %1, %2 : vector<7x4096xf32>
    %c0_3 = arith.constant 0 : index
    %c0_4 = arith.constant 0 : index
    %c0_5 = arith.constant 0 : index
    %4 = vector.load %arg2[%c0_3, %c0_4, %c0_5] : memref<2x3x4096xf32, #tpu.memory_space<vmem>>, vector<2x3x4096xf32>
    %cst_6 = arith.constant -1.000000e+00 : f32
    %cst_7 = arith.constant 1.000000e+00 : f32
    %5 = vector.broadcast %cst_6 : f32 to vector<2x3x4096xf32>
    %6 = arith.maximumf %5, %4 : vector<2x3x4096xf32>
    %7 = vector.broadcast %cst_7 : f32 to vector<2x3x4096xf32>
    %8 = arith.minimumf %7, %6 : vector<2x3x4096xf32>
    %cst_8 = arith.constant dense<0.000000e+00> : vector<3x4096xf32>
    %9 = vector.multi_reduction <add>, %8, %cst_8 [0] : vector<2x3x4096xf32> to vector<3x4096xf32>
    %cst_9 = arith.constant 5.000000e-01 : f32
    %10 = vector.broadcast %cst_9 : f32 to vector<3x4096xf32>
    %11 = arith.mulf %9, %10 : vector<3x4096xf32>
    %c0_10 = arith.constant 0 : index
    %c0_11 = arith.constant 0 : index
    %12 = vector.load %arg3[%c0_10, %c0_11] : memref<3x7xf32, #tpu.memory_space<vmem>>, vector<3x7xf32>
    %c0_12 = arith.constant 0 : index
    %c0_13 = arith.constant 0 : index
    %13 = vector.load %arg4[%c0_12, %c0_13] : memref<3x3xf32, #tpu.memory_space<vmem>>, vector<3x3xf32>
    %c0_14 = arith.constant 0 : index
    %c0_15 = arith.constant 0 : index
    %14 = vector.load %arg5[%c0_14, %c0_15] : memref<3x1xf32, #tpu.memory_space<vmem>>, vector<3x1xf32>
    %15 = vector.shape_cast %14 : vector<3x1xf32> to vector<3x1xf32>
    %16 = vector.broadcast %15 : vector<3x1xf32> to vector<3x4096xf32>
    %17 = vector.extract_strided_slice %12 {offsets = [0, 0], sizes = [3, 1], strides = [1, 1]} : vector<3x7xf32> to vector<3x1xf32>
    %18 = vector.extract_strided_slice %3 {offsets = [0, 0], sizes = [1, 4096], strides = [1, 1]} : vector<7x4096xf32> to vector<1x4096xf32>
    %19 = vector.broadcast %17 : vector<3x1xf32> to vector<3x4096xf32>
    %20 = vector.broadcast %18 : vector<1x4096xf32> to vector<3x4096xf32>
    %21 = arith.mulf %19, %20 : vector<3x4096xf32>
    %22 = arith.addf %16, %21 : vector<3x4096xf32>
    %23 = vector.extract_strided_slice %12 {offsets = [0, 1], sizes = [3, 1], strides = [1, 1]} : vector<3x7xf32> to vector<3x1xf32>
    %24 = vector.extract_strided_slice %3 {offsets = [1, 0], sizes = [1, 4096], strides = [1, 1]} : vector<7x4096xf32> to vector<1x4096xf32>
    %25 = vector.broadcast %23 : vector<3x1xf32> to vector<3x4096xf32>
    %26 = vector.broadcast %24 : vector<1x4096xf32> to vector<3x4096xf32>
    %27 = arith.mulf %25, %26 : vector<3x4096xf32>
    %28 = arith.addf %22, %27 : vector<3x4096xf32>
    %29 = vector.extract_strided_slice %12 {offsets = [0, 2], sizes = [3, 1], strides = [1, 1]} : vector<3x7xf32> to vector<3x1xf32>
    %30 = vector.extract_strided_slice %3 {offsets = [2, 0], sizes = [1, 4096], strides = [1, 1]} : vector<7x4096xf32> to vector<1x4096xf32>
    %31 = vector.broadcast %29 : vector<3x1xf32> to vector<3x4096xf32>
    %32 = vector.broadcast %30 : vector<1x4096xf32> to vector<3x4096xf32>
    %33 = arith.mulf %31, %32 : vector<3x4096xf32>
    %34 = arith.addf %28, %33 : vector<3x4096xf32>
    %35 = vector.extract_strided_slice %12 {offsets = [0, 3], sizes = [3, 1], strides = [1, 1]} : vector<3x7xf32> to vector<3x1xf32>
    %36 = vector.extract_strided_slice %3 {offsets = [3, 0], sizes = [1, 4096], strides = [1, 1]} : vector<7x4096xf32> to vector<1x4096xf32>
    %37 = vector.broadcast %35 : vector<3x1xf32> to vector<3x4096xf32>
    %38 = vector.broadcast %36 : vector<1x4096xf32> to vector<3x4096xf32>
    %39 = arith.mulf %37, %38 : vector<3x4096xf32>
    %40 = arith.addf %34, %39 : vector<3x4096xf32>
    %41 = vector.extract_strided_slice %12 {offsets = [0, 4], sizes = [3, 1], strides = [1, 1]} : vector<3x7xf32> to vector<3x1xf32>
    %42 = vector.extract_strided_slice %3 {offsets = [4, 0], sizes = [1, 4096], strides = [1, 1]} : vector<7x4096xf32> to vector<1x4096xf32>
    %43 = vector.broadcast %41 : vector<3x1xf32> to vector<3x4096xf32>
    %44 = vector.broadcast %42 : vector<1x4096xf32> to vector<3x4096xf32>
    %45 = arith.mulf %43, %44 : vector<3x4096xf32>
    %46 = arith.addf %40, %45 : vector<3x4096xf32>
    %47 = vector.extract_strided_slice %12 {offsets = [0, 5], sizes = [3, 1], strides = [1, 1]} : vector<3x7xf32> to vector<3x1xf32>
    %48 = vector.extract_strided_slice %3 {offsets = [5, 0], sizes = [1, 4096], strides = [1, 1]} : vector<7x4096xf32> to vector<1x4096xf32>
    %49 = vector.broadcast %47 : vector<3x1xf32> to vector<3x4096xf32>
    %50 = vector.broadcast %48 : vector<1x4096xf32> to vector<3x4096xf32>
    %51 = arith.mulf %49, %50 : vector<3x4096xf32>
    %52 = arith.addf %46, %51 : vector<3x4096xf32>
    %53 = vector.extract_strided_slice %12 {offsets = [0, 6], sizes = [3, 1], strides = [1, 1]} : vector<3x7xf32> to vector<3x1xf32>
    %54 = vector.extract_strided_slice %3 {offsets = [6, 0], sizes = [1, 4096], strides = [1, 1]} : vector<7x4096xf32> to vector<1x4096xf32>
    %55 = vector.broadcast %53 : vector<3x1xf32> to vector<3x4096xf32>
    %56 = vector.broadcast %54 : vector<1x4096xf32> to vector<3x4096xf32>
    %57 = arith.mulf %55, %56 : vector<3x4096xf32>
    %58 = arith.addf %52, %57 : vector<3x4096xf32>
    %59 = vector.extract_strided_slice %13 {offsets = [0, 0], sizes = [3, 1], strides = [1, 1]} : vector<3x3xf32> to vector<3x1xf32>
    %60 = vector.extract_strided_slice %11 {offsets = [0, 0], sizes = [1, 4096], strides = [1, 1]} : vector<3x4096xf32> to vector<1x4096xf32>
    %61 = vector.broadcast %59 : vector<3x1xf32> to vector<3x4096xf32>
    %62 = vector.broadcast %60 : vector<1x4096xf32> to vector<3x4096xf32>
    %63 = arith.mulf %61, %62 : vector<3x4096xf32>
    %64 = arith.addf %58, %63 : vector<3x4096xf32>
    %65 = vector.extract_strided_slice %13 {offsets = [0, 1], sizes = [3, 1], strides = [1, 1]} : vector<3x3xf32> to vector<3x1xf32>
    %66 = vector.extract_strided_slice %11 {offsets = [1, 0], sizes = [1, 4096], strides = [1, 1]} : vector<3x4096xf32> to vector<1x4096xf32>
    %67 = vector.broadcast %65 : vector<3x1xf32> to vector<3x4096xf32>
    %68 = vector.broadcast %66 : vector<1x4096xf32> to vector<3x4096xf32>
    %69 = arith.mulf %67, %68 : vector<3x4096xf32>
    %70 = arith.addf %64, %69 : vector<3x4096xf32>
    %71 = vector.extract_strided_slice %13 {offsets = [0, 2], sizes = [3, 1], strides = [1, 1]} : vector<3x3xf32> to vector<3x1xf32>
    %72 = vector.extract_strided_slice %11 {offsets = [2, 0], sizes = [1, 4096], strides = [1, 1]} : vector<3x4096xf32> to vector<1x4096xf32>
    %73 = vector.broadcast %71 : vector<3x1xf32> to vector<3x4096xf32>
    %74 = vector.broadcast %72 : vector<1x4096xf32> to vector<3x4096xf32>
    %75 = arith.mulf %73, %74 : vector<3x4096xf32>
    %76 = arith.addf %70, %75 : vector<3x4096xf32>
    %77 = vector.shape_cast %76 : vector<3x4096xf32> to vector<1x3x4096xf32>
    %c0_16 = arith.constant 0 : index
    %c0_17 = arith.constant 0 : index
    %c0_18 = arith.constant 0 : index
    %78 = vector.load %arg6[%c0_16, %c0_17, %c0_18] : memref<1x3x4096xf32, #tpu.memory_space<vmem>>, vector<1x3x4096xf32>
    tpu.vector_store %arg6[%c0_16, %c0_17, %c0_18], %77 {strides = array<i32>} : memref<1x3x4096xf32, #tpu.memory_space<vmem>>, vector<1x3x4096xf32>,
    return
  }
  func.func @transform_0(%arg0: i32) -> (i32, i32, i32) {
    %c0_i32 = arith.constant 0 : i32
    %c0_i32_0 = arith.constant 0 : i32
    %c0_i32_1 = arith.constant 0 : i32
    %c0_i32_2 = arith.constant 0 : i32
    return %c0_i32, %c0_i32_0, %c0_i32_1 : i32, i32, i32
  }
  func.func @transform_1(%arg0: i32) -> (i32, i32, i32) {
    %c0_i32 = arith.constant 0 : i32
    %c0_i32_0 = arith.constant 0 : i32
    %c0_i32_1 = arith.constant 0 : i32
    %c0_i32_2 = arith.constant 0 : i32
    return %c0_i32, %c0_i32_0, %c0_i32_1 : i32, i32, i32
  }
  func.func @transform_2(%arg0: i32) -> (i32, i32) {
    %c0_i32 = arith.constant 0 : i32
    %c0_i32_0 = arith.constant 0 : i32
    %c0_i32_1 = arith.constant 0 : i32
    return %c0_i32, %c0_i32_0 : i32, i32
  }
  func.func @transform_3(%arg0: i32) -> (i32, i32) {
    %c0_i32 = arith.constant 0 : i32
    %c0_i32_0 = arith.constant 0 : i32
    %c0_i32_1 = arith.constant 0 : i32
    return %c0_i32, %c0_i32_0 : i32, i32
  }
  func.func @transform_4(%arg0: i32) -> (i32, i32) {
    %c0_i32 = arith.constant 0 : i32
    %c0_i32_0 = arith.constant 0 : i32
    %c0_i32_1 = arith.constant 0 : i32
    return %c0_i32, %c0_i32_0 : i32, i32
  }
  func.func @transform_5(%arg0: i32) -> (i32, i32, i32) {
    %c0_i32 = arith.constant 0 : i32
    %c0_i32_0 = arith.constant 0 : i32
    %c0_i32_1 = arith.constant 0 : i32
    %c0_i32_2 = arith.constant 0 : i32
    return %c0_i32, %c0_i32_0, %c0_i32_1 : i32, i32, i32
  }
}

</mosaic_0001>

<bundles_post_ra>
// kernel: forward.2
= control target key start
LH: loop header
LB: loop body
LE: loop exit
PB: predicated region body
PF: predicated region fallthrough
CT: control target
= control target key end

     0   :  { %s2293_s0 = inlined_call_operand.hbm [shape: f32[2,3,512,512], index: 0, kind: input, shape index: {}]   ;;  %s2294_s1 = inlined_call_operand.hbm [shape: f32[3,7], index: 1, kind: input, shape index: {}]   ;;  %s2295_s2 = inlined_call_operand.hbm [shape: f32[1,7], index: 2, kind: input, shape index: {}]   ;;  %s2296_s3 = inlined_call_operand.vmem [shape: f32[2,2,2,7], index: 3, kind: output, shape index: {}]  }
   0x1   :  { %2302 = sst [smem:[#allocation12_spill]] %s2294_s1 }
   0x2   :  { %2303 = sst [smem:[#allocation13_spill]] %s2295_s2 }
   0x3   :  { %8 = vsyncpa [#allocation3], 0 }
   0x4   :  { %10 = vsyncpa [#allocation3 + $0x1], 0 }
   0x5   :  { %11 = vsyncpa [#allocation5], 0  ;;  %s1660_s12 = smov 0   ;;  %s1662_s13 = smov 0  }
   0x6   :  { %s1664_s14 = smov 0   ;;  %s1666_s15 = smov 0  }
   0x7   :  { %s1668_s16 = smov 0   ;;  %s1670_s17 = smov 0  }
   0x8   :  { %s1672_s18 = smov 0   ;;  %s1674_s19 = smov 0  }
   0x9 LB: > { %s1375_s20 = sadd.s32 4294967295, %s1628_s19   ;;  %s26_s21 = sadd.s32 1, %s1620_s17  ;;  %s1628_s19 = sphi %s1674_s19, %s17_s19   ;;  %s1624_s18 = sphi %s1672_s18, %s2321_s18   ;;  %s1620_s17 = sphi %s1670_s17, %s2320_s17   ;;  %s1616_s16 = sphi %s1668_s16, %s2319_s16   ;;  %s1612_s15 = sphi %s1666_s15, %s2318_s15   ;;  %s1608_s14 = sphi %s1664_s14, %s2317_s14   ;;  %s1604_s13 = sphi %s1662_s13, %s2316_s13   ;;  %s1600_s12 = sphi %s1660_s12, %s2315_s12  }
   0xa   : > { %p27_p0 = scmp.ge.s32.totalorder %s26_s21, 2  ;;  %s29_s22 = sadd.s32 1, %s1624_s18 }
   0xb   : > { %s38_s23 = sadd.s32 1, %s1608_s14  ;;  %p45_p1 = scmp.ne.s32.totalorder %s1608_s14, %s1604_s13 }
   0xc   : > { %s2323_s21 = smov (%p27_p0, %s26_s21), 0  ;;  %s2325_s22 = smov (!%p27_p0, %s29_s22), %s1624_s18 }
   0xd   : > { %s34_s24 = ssub.s32 %s1620_s17, %s2323_s21  ;;  %p46_p2 = scmp.eq.s32.totalorder %s1628_s19, 0 }
   0xe   : > { %p31_p3 = scmp.ge.s32.totalorder %s2325_s22, 2  ;;  %p51_p4 = scmp.ne.s32.totalorder %s1604_s13, %s1600_s12 }
   0xf   : > { %p1711_p5 = por %p46_p2, %p45_p1  ;;  %p1715_p6 = scmp.eq.s32.totalorder %s1375_s20, 0 }
  0x10   : > { %s2327_s22 = smov (%p31_p3, %s2325_s22), 0  ;;  %p1377_p8 = scmp.ge.s32.totalorder %s1628_s19, 1 }
  0x11   : > { %s2304_s25 = scalar_select %p1711_p5, 1, 0 }
  0x12   : > { %s2305_s26 = scalar_select %p1715_p6, 1, 0 }
  0x13   : > { %p1723_p7 = por %p1715_p6, %p51_p4  ;;  %s33_s28 = ssub.s32 %s1624_s18, %s2327_s22 }
  0x14   : > { %p132_p9 = scmp.lt.s32.totalorder %s1628_s19, 5  ;;  %s35_s29 = sor.u32 %s34_s24, %s33_s28 }
  0x15   : > { %s2306_s27 = scalar_select %p1723_p7, 1, 0 }
  0x16   : > { %p36_p10 = scmp.eq.s32.totalorder %s35_s29, 0  ;;  %p1731_p11 = pnand %p1377_p8, %p132_p9 }
  0x17   : > { %s1630_s5 = smov [#allocation4]   ;;  %s1631_s7 = smov [#allocation6]  }
  0x18   : > { %s2307_s30 = scalar_select %p1731_p11, 1, 0 }
  0x19   : > { %s1736_s4 = scalar_select %p36_p10, %s1608_s14, %s38_s23  }
  0x1a   : > { %p1415_p12 = pneg %p1731_p11  ;;  %s145_s6 = sshll.u32 %s1630_s5, 4  ;;  %s146_s6 = int_to_ptr.vmem [resolvable:$true] %s145_s6 }
  0x1b   : > { %s156_s8 = sshll.u32 %s1631_s7, 4  ;;  %s2309_s1 = sld [smem:[#allocation12_spill]]  ;;  %s1746_s8 = int_to_ptr.vmem [resolvable:$true] %s156_s8 }
  0x1c   : > { %p1742_p13 = pnand %p1415_p12, %p1715_p6 }
  0x1e   : > { %p1504_p1 = pneg %p1742_p13 }
  0x21   : > { %s1502_s12 = scalar_lea.hbm %s2309_s1, 64 }
  0x22   : > { %p1503_p0 = scmp.ne.s32.totalorder %s2309_s1, %s1502_s12  ;;  %p1509_p4 = scmp.lt.u32.totalorder %s1502_s12, %s2309_s1 }
  0x24   : > { %p1505_p2 = pnand %p1504_p1, %p1503_p0 }
  0x26   : > { %p1506_p3 = pneg %p1505_p2 }
  0x28   : > { %p1511_p8 = pnand %p1509_p4, %p1506_p3 }
  0x2a   : > { %1514 = shalt.err (!%p1511_p8)
}
  0x2b   : > { %s1515_s29 = scalar_lea.vmem %s146_s6, 64  ;;  %p1523_p6 = scmp.lt.s32.totalorder %s146_s6, %s146_s6 }
  0x2c   : > { %p1516_p9 = scmp.ne.s32.totalorder %s146_s6, %s1515_s29  ;;  %p1524_p7 = scmp.lt.s32.totalorder %s1515_s29, %s1515_s29 }
  0x2e   : > { %p1518_p10 = pnand %p1516_p9, %p1504_p1  ;;  %p1525_p11 = por %p1524_p7, %p1523_p6 }
  0x30   : > { %p1519_p12 = pneg %p1518_p10 }
  0x32   : > { %p1526_p5 = pnand %p1525_p11, %p1519_p12 }
  0x34   : > { %1529 = shalt.err (!%p1526_p5)
}
  0x35   : > { %1418 = dma.hbm_to_vmem [thread:$0]  (!%p1742_p13), %s2309_s1, 64, %s146_s6, [#allocation5]  }
  0x36   : > { %s2310_s2 = sld [smem:[#allocation13_spill]] }
  0x3c   : > { %s1530_s12 = scalar_lea.hbm %s2310_s2, 16 }
  0x3d   : > { %p1531_p0 = scmp.ne.s32.totalorder %s2310_s2, %s1530_s12  ;;  %p1537_p5 = scmp.lt.u32.totalorder %s1530_s12, %s2310_s2 }
  0x3f   : > { %p1533_p6 = pnand %p1531_p0, %p1504_p1 }
  0x41   : > { %p1534_p7 = pneg %p1533_p6 }
  0x43   : > { %p1539_p11 = pnand %p1537_p5, %p1534_p7 }
  0x45   : > { %1542 = shalt.err (!%p1539_p11)
}
  0x46   : > { %s1543_s6 = scalar_lea.vmem %s1746_s8, 16  ;;  %s1550_s29 = scalar_lea.vmem %s1746_s8, 32 }
  0x47   : > { %p1544_p2 = scmp.ne.s32.totalorder %s1746_s8, %s1543_s6  ;;  %p1551_p8 = scmp.lt.s32.totalorder %s1746_s8, %s1746_s8 }
  0x48   : > { %p1552_p9 = scmp.lt.s32.totalorder %s1550_s29, %s1543_s6 }
  0x49   : > { %p1546_p3 = pnand %p1544_p2, %p1504_p1 }
  0x4a   : > { %p1553_p10 = por %p1552_p9, %p1551_p8 }
  0x4b   : > { %p1547_p4 = pneg %p1546_p3 }
  0x4d   : > { %p1554_p12 = pnand %p1553_p10, %p1547_p4 }
  0x4f   : > { %1557 = shalt.err (!%p1554_p12)
}
  0x50   : > { %1421 = dma.hbm_to_vmem [thread:$0]  (!%p1742_p13), %s2310_s2, 16, %s1746_s8, [#allocation5]  }
  0x51   : > { %p1380_p0 = scmp.ge.s32.totalorder %s1628_s19, 4 }
  0x53   : > { %163 = sbr.rel (%p1380_p0) target bundleno = 107 (0x6b), region = 24 }
  0x5a   : > { %s167_s10 = sand.u32 1, %s1608_s14   ;;  %s1382_s11 = sshll.u32 %s1620_s17, 1 }
  0x5b   : > { %s1396_s12 = smul.u32 3072, %s167_s10  ;;  %s1395_s9 = sshll.u32 %s1624_s18, 7 }
  0x5c   : > { %s178_s20 = sadd.s32 %s1395_s9, %s1382_s11  ;;  %p2311_p13 = scmp.ne.s32.totalorder %s2304_s25, 0 }
  0x5d   : > { %s1384_s23 = sshll.u32 %s178_s20, 7  ;;  %s171_s6 = scalar_lea.vmem [#allocation2], %s1396_s12 }
  0x5e   : > { %s180_s8 = scalar_lea.hbm %s2293_s0, %s1384_s23  ;;  %s193_s29 = sshll.u32 %s171_s6, 4  ;;  %s194_s29 = int_to_ptr.vmem [resolvable:$true] %s193_s29 }
  0x5f   : > { %s1402_s5 = scalar_select %p2311_p13, [#allocation0], [#allocation9] }
  0x60   : > { %s1632_s7 = smov 32768   ;;  %s1633_s2 = smov 8192  }
  0x61   : > { %1403 = sst [smem:[#allocation8]] (%p2311_p13), %s1632_s7  ;;  %s1634_s11 = smov 32  }
  0x62   : > { %s185_s1 = sld [smem:[%s1402_s5]]   ;;  %s1635_s9 = smov 512  }
  0x63   : > { %1404 = sst [smem:[#allocation8 + $0x1]] (%p2311_p13), %s1633_s2  ;;  %s1636_s12 = smov 256  }
  0x64   : > { %1405 = sst [smem:[#allocation8 + $0x2]] (%p2311_p13), %s1634_s11  ;;  %s1637_s20 = smov 16  }
  0x65   : > { %1406 = sst [smem:[#allocation8 + $0x3]] (%p2311_p13), %s1635_s9  ;;  %s168_s28 = scalar_lea.sflag [#allocation3], %s167_s10 }
  0x66   : > { %1407 = sst [smem:[#allocation8 + $0x4]] (%p2311_p13), %s1636_s12  ;;  %s1638_s6 = smov [#allocation7]  }
  0x67   : > { %1408 = sst [smem:[#allocation8 + $0x5]] (%p2311_p13), %s1637_s20 }
  0x68   : > { %s1385_s23 = sshll.u32 %s185_s1, 26 }
  0x69   : > { %s1386_s24 = sadd.s32 134217728, %s1385_s23 }
  0x6a   : > { %1409 = dma.general (%p2311_p13), %s180_s8, 49152, %s194_s29, %s168_s28, %s1638_s6, [#allocation8], %s1386_s24, 0  }
  0x6b PF: > { %p2312_p1 = scmp.ne.s32.totalorder %s2307_s30, 0 }
  0x6c   : > { %s220_s2 = sand.u32 (!%p2312_p1), 1, %s1604_s13   ;;  %p2313_p6 = scmp.ne.s32.totalorder (!%p2312_p1), %s2306_s27, 0 }
  0x6d   : > { %218 = sbr.rel (%p2312_p1) target bundleno = 592 (0x250), region = 32  ;;  %s221_s7 = scalar_lea.sflag (!%p2312_p1), [#allocation3], %s220_s2 }
  0x6e   : > { %s1397_s5 = smul.u32 (!%p2312_p1), 3072, %s220_s2 }
  0x70   : > { %s1822_s11 = scalar_lea.vmem (!%p2312_p1), [#allocation2], %s1397_s5 }
  0x74   : > { %1591 = dma.done.wait (%p2313_p6), %s221_s7, 49152  }
  0x75   : > { %1593 = vsyncadd (%p2313_p6), %s221_s7, 4294918144  ;;  %p2314_p7 = scmp.ne.s32.totalorder %s2305_s26, 0 }
  0x77   : > { %1595 = dma.done.wait (%p2314_p7), [#allocation5], 80  }
  0x78   : > { %1597 = vsyncadd (%p2314_p7), [#allocation5], 4294967216  ;;  %v268_v0 = vld [vmem:[%s1822_s11] sm:$0xff]  ;;  %v269_v1 = vld [vmem:[%s1822_s11 + $0x8] sm:$0xff]  ;;  %vm1108_vm0 = vcmask 1041409   ;;  %vm1110_vm1 = vcmask 1042434  }
  0x79   : > { %v270_v2 = vld [vmem:[%s1822_s11 + $0x10] sm:$0xff]  ;;  %v271_v3 = vld [vmem:[%s1822_s11 + $0x18] sm:$0xff]  ;;  %v272_v4 = vld [vmem:[%s1822_s11 + $0x20] sm:$0xff]  ;;  %vm1122_vm2 = vcmask 1042432   ;;  %p260_p5 = scmp.lt.s32.totalorder %s1616_s16, 1  ;;  %p262_p11 = scmp.lt.s32.totalorder %s1612_s15, 1 }
  0x7a   : > { %v273_v5 = vld [vmem:[%s1822_s11 + $0x28] sm:$0xff]  ;;  %v652_v6 = vadd.f32 %v270_v2, %v268_v0  ;;  %v274_v7 = vld [vmem:[%s1822_s11 + $0x30] sm:$0xff]  ;;  %v689_v8 = vadd.f32 %v271_v3, %v269_v1  ;;  %v275_v9 = vld [vmem:[%s1822_s11 + $0x38] sm:$0xff]  ;;  %vm1259_vm3 = vcmask 50176  }
  0x7b   : > { %v276_v11 = vld [vmem:[%s1822_s11 + $0x40] sm:$0xff]  ;;  %v277_v13 = vld [vmem:[%s1822_s11 + $0x48] sm:$0xff]  ;;  %v278_v15 = vld [vmem:[%s1822_s11 + $0x50] sm:$0xff]  ;;  %s2329_s16 = smov (!%p260_p5, %s1616_s16), 1  ;;  %s2331_s15 = smov (!%p262_p11, %s1612_s15), 1 }
  0x7c   : > { %v653_v10 = vadd.f32 %v652_v6, %v272_v4  ;;  %v690_v12 = vadd.f32 %v689_v8, %v273_v5  ;;  %v279_v17 = vld [vmem:[%s1822_s11 + $0x58] sm:$0xff]  ;;  %v280_v19 = vld [vmem:[%s1822_s11 + $0x60] sm:$0xff]  ;;  %v281_v21 = vld [vmem:[%s1822_s11 + $0x68] sm:$0xff]  ;;  %s1390_s1 = sshll.u32 %s2329_s16, 1 }
  0x7d   : > { %v282_v23 = vld [vmem:[%s1822_s11 + $0x70] sm:$0xff]  ;;  %v283_v25 = vld [vmem:[%s1822_s11 + $0x78] sm:$0xff]  ;;  %v284_v27 = vld [vmem:[%s1822_s11 + $0x80] sm:$0xff]  ;;  %s265_s25 = sadd.s32 %s1390_s1, %s2331_s15 }
  0x7e   : > { %v654_v14 = vadd.f32 %v653_v10, %v274_v7  ;;  %v691_v16 = vadd.f32 %v690_v12, %v275_v9  ;;  %v285_v29 = vld [vmem:[%s1822_s11 + $0x88] sm:$0xff]  ;;  %v286_v31 = vld [vmem:[%s1822_s11 + $0x90] sm:$0xff]  ;;  %v287_v33 = vld [vmem:[%s1822_s11 + $0x98] sm:$0xff]  ;;  %s1391_s26 = sshll.u32 %s265_s25, 1 }
  0x7f   : > { %v288_v35 = vld [vmem:[%s1822_s11 + $0xa0] sm:$0xff]  ;;  %v289_v37 = vld [vmem:[%s1822_s11 + $0xa8] sm:$0xff]  ;;  %v290_v39 = vld [vmem:[%s1822_s11 + $0xb0] sm:$0xff]  ;;  %s267_s16 = scalar_lea.vmem %s2296_s3, %s1391_s26 }
  0x80   : > { %v655_v18 = vadd.f32 %v654_v14, %v276_v11  ;;  %v692_v20 = vadd.f32 %v691_v16, %v277_v13  ;;  %v291_v41 = vld [vmem:[%s1822_s11 + $0xb8] sm:$0xff]  ;;  %v292_v43 = vld [vmem:[%s1822_s11 + $0xc0] sm:$0xff]  ;;  %v293_v44 = vld [vmem:[%s1822_s11 + $0xc8] sm:$0xff] }
  0x81   : > { %v294_v46 = vld [vmem:[%s1822_s11 + $0xd0] sm:$0xff]  ;;  %v332_v47 = vld [vmem:[%s1822_s11 + $0x200] sm:$0xff]  ;;  %v333_v48 = vld [vmem:[%s1822_s11 + $0x208] sm:$0xff] }
  0x82   : > { %v656_v22 = vadd.f32 %v655_v18, %v278_v15  ;;  %v693_v24 = vadd.f32 %v692_v20, %v279_v17  ;;  %v334_v50 = vld [vmem:[%s1822_s11 + $0x210] sm:$0xff]  ;;  %v335_v51 = vld [vmem:[%s1822_s11 + $0x218] sm:$0xff]  ;;  %v336_v52 = vld [vmem:[%s1822_s11 + $0x220] sm:$0xff] }
  0x83   : > { %v295_v54 = vld [vmem:[%s1822_s11 + $0xd8] sm:$0xff]  ;;  %v337_v55 = vld [vmem:[%s1822_s11 + $0x228] sm:$0xff]  ;;  %v726_v57 = vadd.f32 %v334_v50, %v332_v47  ;;  %v763_v58 = vadd.f32 %v335_v51, %v333_v48  ;;  %v296_v59 = vld [vmem:[%s1822_s11 + $0xe0] sm:$0xff] }
  0x84   : > { %v657_v26 = vadd.f32 %v656_v22, %v280_v19  ;;  %v694_v28 = vadd.f32 %v693_v24, %v281_v21  ;;  %v338_v60 = vld [vmem:[%s1822_s11 + $0x230] sm:$0xff]  ;;  %v339_v61 = vld [vmem:[%s1822_s11 + $0x238] sm:$0xff]  ;;  %v297_v63 = vld [vmem:[%s1822_s11 + $0xe8] sm:$0xff] }
  0x85   : > { %v727_v1 = vadd.f32 %v726_v57, %v336_v52  ;;  %v764_v2 = vadd.f32 %v763_v58, %v337_v55  ;;  %v298_v3 = vld [vmem:[%s1822_s11 + $0xf0] sm:$0xff]  ;;  %v340_v4 = vld [vmem:[%s1822_s11 + $0x240] sm:$0xff]  ;;  %v341_v5 = vld [vmem:[%s1822_s11 + $0x248] sm:$0xff] }
  0x86   : > { %v658_v30 = vadd.f32 %v657_v26, %v282_v23  ;;  %v695_v32 = vadd.f32 %v694_v28, %v283_v25  ;;  %v299_v7 = vld [vmem:[%s1822_s11 + $0xf8] sm:$0xff]  ;;  %v300_v11 = vld [vmem:[%s1822_s11 + $0x100] sm:$0xff]  ;;  %v342_v12 = vld [vmem:[%s1822_s11 + $0x250] sm:$0xff] }
  0x87   : > { %v728_v9 = vadd.f32 %v727_v1, %v338_v60  ;;  %v765_v10 = vadd.f32 %v764_v2, %v339_v61  ;;  %v343_v13 = vld [vmem:[%s1822_s11 + $0x258] sm:$0xff]  ;;  %v301_v15 = vld [vmem:[%s1822_s11 + $0x108] sm:$0xff]  ;;  %v302_v19 = vld [vmem:[%s1822_s11 + $0x110] sm:$0xff] }
  0x88   : > { %v659_v34 = vadd.f32 %v658_v30, %v284_v27  ;;  %v696_v36 = vadd.f32 %v695_v32, %v285_v29  ;;  %v344_v20 = vld [vmem:[%s1822_s11 + $0x260] sm:$0xff]  ;;  %v345_v21 = vld [vmem:[%s1822_s11 + $0x268] sm:$0xff]  ;;  %v303_v23 = vld [vmem:[%s1822_s11 + $0x118] sm:$0xff] }
  0x89   : > { %v729_v17 = vadd.f32 %v728_v9, %v340_v4  ;;  %v766_v18 = vadd.f32 %v765_v10, %v341_v5  ;;  %v304_v27 = vld [vmem:[%s1822_s11 + $0x120] sm:$0xff]  ;;  %v346_v28 = vld [vmem:[%s1822_s11 + $0x270] sm:$0xff]  ;;  %v347_v29 = vld [vmem:[%s1822_s11 + $0x278] sm:$0xff] }
  0x8a   : > { %v660_v38 = vadd.f32 %v659_v34, %v286_v31  ;;  %v697_v40 = vadd.f32 %v696_v36, %v287_v33  ;;  %v305_v31 = vld [vmem:[%s1822_s11 + $0x128] sm:$0xff]  ;;  %v348_v36 = vld [vmem:[%s1822_s11 + $0x280] sm:$0xff]  ;;  %v310_v51 = vld [vmem:[%s1822_s11 + $0x150] sm:$0xff] }
  0x8b   : > { %v730_v25 = vadd.f32 %v729_v17, %v342_v12  ;;  %v767_v26 = vadd.f32 %v766_v18, %v343_v13  ;;  %v309_v47 = vld [vmem:[%s1822_s11 + $0x148] sm:$0xff]  ;;  %v352_v52 = vld [vmem:[%s1822_s11 + $0x2a0] sm:$0xff]  ;;  %v311_v55 = vld [vmem:[%s1822_s11 + $0x158] sm:$0xff] }
  0x8c   : > { %v661_v42 = vadd.f32 %v660_v38, %v288_v35  ;;  %v698_v45 = vadd.f32 %v697_v40, %v289_v37  ;;  %v306_v35 = vld [vmem:[%s1822_s11 + $0x130] sm:$0xff]  ;;  %v349_v37 = vld [vmem:[%s1822_s11 + $0x288] sm:$0xff]  ;;  %v355_v60 = vld [vmem:[%s1822_s11 + $0x2b8] sm:$0xff] }
  0x8d   : > { %v731_v33 = vadd.f32 %v730_v25, %v344_v20  ;;  %v768_v34 = vadd.f32 %v767_v26, %v345_v21  ;;  %v357_v4 = vld [vmem:[%s1822_s11 + $0x2c8] sm:$0xff]  ;;  %v358_v5 = vld [vmem:[%s1822_s11 + $0x2d0] sm:$0xff]  ;;  %v399_v10 = vld [vmem:[%s1822_s11 + $0x418] sm:$0xff] }
  0x8e   : > { %v662_v49 = vadd.f32 %v661_v42, %v290_v39  ;;  %v699_v53 = vadd.f32 %v698_v45, %v291_v41  ;;  %v307_v39 = vld [vmem:[%s1822_s11 + $0x138] sm:$0xff]  ;;  %v398_v9 = vld [vmem:[%s1822_s11 + $0x410] sm:$0xff]  ;;  %v360_v26 = vld [vmem:[%s1822_s11 + $0x2e0] sm:$0xff] }
  0x8f   : > { %v732_v41 = vadd.f32 %v731_v33, %v346_v28  ;;  %v769_v42 = vadd.f32 %v768_v34, %v347_v29  ;;  %v351_v45 = vld [vmem:[%s1822_s11 + $0x298] sm:$0xff]  ;;  %v402_v20 = vld [vmem:[%s1822_s11 + $0x430] sm:$0xff] }
  0x90   : > { %v663_v56 = vadd.f32 %v662_v49, %v292_v43  ;;  %v700_v62 = vadd.f32 %v699_v53, %v293_v44  ;;  %v308_v43 = vld [vmem:[%s1822_s11 + $0x140] sm:$0xff]  ;;  %v350_v44 = vld [vmem:[%s1822_s11 + $0x290] sm:$0xff]  ;;  %v353_v53 = vld [vmem:[%s1822_s11 + $0x2a8] sm:$0xff] }
  0x91   : > { %v733_v49 = vadd.f32 %v732_v41, %v348_v36  ;;  %v770_v50 = vadd.f32 %v769_v42, %v349_v37  ;;  %v359_v13 = vld [vmem:[%s1822_s11 + $0x2d8] sm:$0xff]  ;;  %v362_v34 = vld [vmem:[%s1822_s11 + $0x2f0] sm:$0xff] }
  0x92   : > { %v664_v0 = vadd.f32 %v663_v56, %v294_v46  ;;  %v701_v6 = vadd.f32 %v700_v62, %v295_v54  ;;  %v312_v62 = vld [vmem:[%s1822_s11 + $0x160] sm:$0xff]  ;;  %v403_v21 = vld [vmem:[%s1822_s11 + $0x438] sm:$0xff] }
  0x93   : > { %v734_v57 = vadd.f32 %v733_v49, %v350_v44  ;;  %v771_v58 = vadd.f32 %v770_v50, %v351_v45  ;;  %v315_v25 = vld [vmem:[%s1822_s11 + $0x178] sm:$0xff]  ;;  %v317_v45 = vld [vmem:[%s1822_s11 + $0x188] sm:$0xff]  ;;  %v408_v50 = vld [vmem:[%s1822_s11 + $0x460] sm:$0xff] }
  0x94   : > { %v665_v8 = vadd.f32 %v664_v0, %v296_v59  ;;  %v702_v14 = vadd.f32 %v701_v6, %v297_v63  ;;  %v354_v59 = vld [vmem:[%s1822_s11 + $0x2b0] sm:$0xff]  ;;  %v313_v63 = vld [vmem:[%s1822_s11 + $0x168] sm:$0xff]  ;;  %v356_v0 = vld [vmem:[%s1822_s11 + $0x2c0] sm:$0xff] }
  0x95   : > { %v735_v2 = vadd.f32 %v734_v57, %v352_v52  ;;  %v396_v6 = vld [vmem:[%s1822_s11 + $0x400] sm:$0xff]  ;;  %v407_v41 = vld [vmem:[%s1822_s11 + $0x458] sm:$0xff] }
  0x96   : > { %v666_v16 = vadd.f32 %v665_v8, %v298_v3  ;;  %v703_v22 = vadd.f32 %v702_v14, %v299_v7  ;;  %v772_v3 = vadd.f32 %v771_v58, %v353_v53  ;;  %v397_v8 = vld [vmem:[%s1822_s11 + $0x408] sm:$0xff]  ;;  %v400_v14 = vld [vmem:[%s1822_s11 + $0x420] sm:$0xff]  ;;  %v800_v17 = vadd.f32 %v398_v9, %v396_v6 }
  0x97   : > { %v837_v18 = vadd.f32 %v399_v10, %v397_v8  ;;  %v412_v6 = vld [vmem:[%s1822_s11 + $0x480] sm:$0xff]  ;;  %v370_v10 = vld [vmem:[%s1822_s11 + $0x330] sm:$0xff] }
  0x98   : > { %v667_v24 = vadd.f32 %v666_v16, %v300_v11  ;;  %v704_v30 = vadd.f32 %v703_v22, %v301_v15  ;;  %v736_v11 = vadd.f32 %v735_v2, %v354_v59  ;;  %v773_v12 = vadd.f32 %v772_v3, %v355_v60  ;;  %v401_v15 = vld [vmem:[%s1822_s11 + $0x428] sm:$0xff]  ;;  %v318_v59 = vld [vmem:[%s1822_s11 + $0x190] sm:$0xff]  ;;  %v368_v2 = vld [vmem:[%s1822_s11 + $0x320] sm:$0xff] }
  0x99   : > { %v801_v28 = vadd.f32 %v800_v17, %v400_v14  ;;  %v838_v29 = vadd.f32 %v837_v18, %v401_v15  ;;  %v410_v60 = vld [vmem:[%s1822_s11 + $0x470] sm:$0xff]  ;;  %v369_v3 = vld [vmem:[%s1822_s11 + $0x328] sm:$0xff]  ;;  %v320_v15 = vld [vmem:[%s1822_s11 + $0x1a0] sm:$0xff] }
  0x9a   : > { %v668_v32 = vadd.f32 %v667_v24, %v302_v19  ;;  %v705_v38 = vadd.f32 %v704_v30, %v303_v23  ;;  %v314_v19 = vld [vmem:[%s1822_s11 + $0x170] sm:$0xff]  ;;  %v737_v23 = vadd.f32 %v736_v11, %v356_v0  ;;  %v774_v24 = vadd.f32 %v773_v12, %v357_v4  ;;  %v404_v30 = vld [vmem:[%s1822_s11 + $0x440] sm:$0xff]  ;;  %v371_v11 = vld [vmem:[%s1822_s11 + $0x338] sm:$0xff] }
  0x9b   : > { %v802_v37 = vadd.f32 %v801_v28, %v402_v20  ;;  %v415_v17 = vld [vmem:[%s1822_s11 + $0x498] sm:$0xff]  ;;  %v417_v28 = vld [vmem:[%s1822_s11 + $0x4a8] sm:$0xff] }
  0x9c   : > { %v669_v40 = vadd.f32 %v668_v32, %v304_v27  ;;  %v706_v46 = vadd.f32 %v705_v38, %v305_v31  ;;  %v361_v27 = vld [vmem:[%s1822_s11 + $0x2e8] sm:$0xff]  ;;  %v738_v32 = vadd.f32 %v737_v23, %v358_v5  ;;  %v775_v33 = vadd.f32 %v774_v24, %v359_v13 }
  0x9d   : > { %v405_v31 = vld [vmem:[%s1822_s11 + $0x448] sm:$0xff]  ;;  %v839_v38 = vadd.f32 %v838_v29, %v403_v21 }
  0x9e   : > { %v670_v48 = vadd.f32 %v669_v40, %v306_v35  ;;  %v707_v54 = vadd.f32 %v706_v46, %v307_v39  ;;  %v363_v35 = vld [vmem:[%s1822_s11 + $0x2f8] sm:$0xff]  ;;  %v316_v39 = vld [vmem:[%s1822_s11 + $0x180] sm:$0xff]  ;;  %v406_v40 = vld [vmem:[%s1822_s11 + $0x450] sm:$0xff]  ;;  %v776_v44 = vadd.f32 %v775_v33, %v361_v27 }
  0x9f   : > { %v364_v46 = vld [vmem:[%s1822_s11 + $0x300] sm:$0xff]  ;;  %v840_v49 = vadd.f32 %v839_v38, %v405_v31  ;;  %v321_v21 = vld [vmem:[%s1822_s11 + $0x1a8] sm:$0xff]  ;;  %v323_v31 = vld [vmem:[%s1822_s11 + $0x1b8] sm:$0xff] }
  0xa0   : > { %v671_v56 = vadd.f32 %v670_v48, %v308_v43  ;;  %v708_v61 = vadd.f32 %v707_v54, %v309_v47  ;;  %v739_v43 = vadd.f32 %v738_v32, %v360_v26  ;;  %v365_v47 = vld [vmem:[%s1822_s11 + $0x308] sm:$0xff]  ;;  %v803_v48 = vadd.f32 %v802_v37, %v404_v30  ;;  %v366_v54 = vld [vmem:[%s1822_s11 + $0x310] sm:$0xff]  ;;  %v416_v27 = vld [vmem:[%s1822_s11 + $0x4a0] sm:$0xff] }
  0xa1   : > { %v777_v53 = vadd.f32 %v776_v44, %v363_v35  ;;  %v841_v58 = vadd.f32 %v840_v49, %v407_v41  ;;  %v373_v23 = vld [vmem:[%s1822_s11 + $0x348] sm:$0xff]  ;;  %v322_v26 = vld [vmem:[%s1822_s11 + $0x1b0] sm:$0xff]  ;;  %v375_v33 = vld [vmem:[%s1822_s11 + $0x358] sm:$0xff] }
  0xa2   : > { %v672_v1 = vadd.f32 %v671_v56, %v310_v51  ;;  %v709_v7 = vadd.f32 %v708_v61, %v311_v55  ;;  %v409_v51 = vld [vmem:[%s1822_s11 + $0x468] sm:$0xff]  ;;  %v740_v52 = vadd.f32 %v739_v43, %v362_v34  ;;  %v367_v55 = vld [vmem:[%s1822_s11 + $0x318] sm:$0xff]  ;;  %v804_v57 = vadd.f32 %v803_v48, %v406_v40  ;;  %v374_v32 = vld [vmem:[%s1822_s11 + $0x350] sm:$0xff] }
  0xa3   : > { %v411_v61 = vld [vmem:[%s1822_s11 + $0x478] sm:$0xff]  ;;  %v778_v0 = vadd.f32 %v777_v53, %v365_v47  ;;  %v842_v5 = vadd.f32 %v841_v58, %v409_v51  ;;  %v376_v34 = vld [vmem:[%s1822_s11 + $0x360] sm:$0xff]  ;;  %v377_v38 = vld [vmem:[%s1822_s11 + $0x368] sm:$0xff] }
  0xa4   : > { %v673_v16 = vadd.f32 %v672_v1, %v312_v62  ;;  %v710_v22 = vadd.f32 %v709_v7, %v313_v63  ;;  %v741_v63 = vadd.f32 %v740_v52, %v364_v46  ;;  %v319_v1 = vld [vmem:[%s1822_s11 + $0x198] sm:$0xff]  ;;  %v805_v4 = vadd.f32 %v804_v57, %v408_v50  ;;  %v413_v7 = vld [vmem:[%s1822_s11 + $0x488] sm:$0xff]  ;;  %v378_v44 = vld [vmem:[%s1822_s11 + $0x370] sm:$0xff] }
  0xa5   : > { %v779_v9 = vadd.f32 %v778_v0, %v367_v55  ;;  %v843_v14 = vadd.f32 %v842_v5, %v411_v61  ;;  %v419_v40 = vld [vmem:[%s1822_s11 + $0x4b8] sm:$0xff]  ;;  %v420_v46 = vld [vmem:[%s1822_s11 + $0x4c0] sm:$0xff]  ;;  %v421_v50 = vld [vmem:[%s1822_s11 + $0x4c8] sm:$0xff] }
  0xa6   : > { %v674_v36 = vadd.f32 %v673_v16, %v314_v19  ;;  %v711_v42 = vadd.f32 %v710_v22, %v315_v25  ;;  %v742_v8 = vadd.f32 %v741_v63, %v366_v54  ;;  %v806_v13 = vadd.f32 %v805_v4, %v410_v60  ;;  %v414_v16 = vld [vmem:[%s1822_s11 + $0x490] sm:$0xff]  ;;  %v372_v22 = vld [vmem:[%s1822_s11 + $0x340] sm:$0xff]  ;;  %v423_v52 = vld [vmem:[%s1822_s11 + $0x4d8] sm:$0xff] }
  0xa7   : > { %v780_v20 = vadd.f32 %v779_v9, %v369_v3  ;;  %v844_v25 = vadd.f32 %v843_v14, %v413_v7  ;;  %v324_v49 = vld [vmem:[%s1822_s11 + $0x1c0] sm:$0xff]  ;;  %v422_v51 = vld [vmem:[%s1822_s11 + $0x4d0] sm:$0xff]  ;;  %v325_v55 = vld [vmem:[%s1822_s11 + $0x1c8] sm:$0xff] }
  0xa8   : > { %v675_v56 = vadd.f32 %v674_v36, %v316_v39  ;;  %v712_v62 = vadd.f32 %v711_v42, %v317_v45  ;;  %v743_v19 = vadd.f32 %v742_v8, %v368_v2  ;;  %v807_v24 = vadd.f32 %v806_v13, %v412_v6  ;;  %v418_v39 = vld [vmem:[%s1822_s11 + $0x4b0] sm:$0xff]  ;;  %v379_v45 = vld [vmem:[%s1822_s11 + $0x378] sm:$0xff]  ;;  %v461_v60 = vld [vmem:[%s1822_s11 + $0x608] sm:$0xff] }
  0xa9   : > { %v781_v30 = vadd.f32 %v780_v20, %v371_v11  ;;  %v845_v37 = vadd.f32 %v844_v25, %v415_v17  ;;  %v462_v61 = vld [vmem:[%s1822_s11 + $0x610] sm:$0xff]  ;;  %v464_v2 = vld [vmem:[%s1822_s11 + $0x620] sm:$0xff]  ;;  %v465_v3 = vld [vmem:[%s1822_s11 + $0x628] sm:$0xff] }
  0xaa   : > { %v676_v12 = vadd.f32 %v675_v56, %v318_v59  ;;  %v713_v18 = vadd.f32 %v712_v62, %v319_v1  ;;  %v744_v29 = vadd.f32 %v743_v19, %v370_v10  ;;  %v808_v36 = vadd.f32 %v807_v24, %v414_v16  ;;  %v460_v59 = vld [vmem:[%s1822_s11 + $0x600] sm:$0xff]  ;;  %v463_v1 = vld [vmem:[%s1822_s11 + $0x618] sm:$0xff]  ;;  %v381_v6 = vld [vmem:[%s1822_s11 + $0x388] sm:$0xff] }
  0xab   : > { %v782_v43 = vadd.f32 %v781_v30, %v373_v23  ;;  %v846_v48 = vadd.f32 %v845_v37, %v417_v28  ;;  %v874_v4 = vadd.f32 %v462_v61, %v460_v59  ;;  %v380_v5 = vld [vmem:[%s1822_s11 + $0x380] sm:$0xff]  ;;  %v466_v9 = vld [vmem:[%s1822_s11 + $0x630] sm:$0xff]  ;;  %v911_v10 = vadd.f32 %v463_v1, %v461_v60  ;;  %v425_v13 = vld [vmem:[%s1822_s11 + $0x4e8] sm:$0xff] }
  0xac   : > { %v677_v35 = vadd.f32 %v676_v12, %v320_v15  ;;  %v714_v41 = vadd.f32 %v713_v18, %v321_v21  ;;  %v745_v42 = vadd.f32 %v744_v29, %v372_v22  ;;  %v809_v47 = vadd.f32 %v808_v36, %v416_v27  ;;  %v326_v11 = vld [vmem:[%s1822_s11 + $0x1d0] sm:$0xff]  ;;  %v424_v12 = vld [vmem:[%s1822_s11 + $0x4e0] sm:$0xff]  ;;  %v467_v16 = vld [vmem:[%s1822_s11 + $0x638] sm:$0xff] }
  0xad   : > { %v783_v54 = vadd.f32 %v782_v43, %v375_v33  ;;  %v847_v58 = vadd.f32 %v846_v48, %v419_v40  ;;  %v875_v17 = vadd.f32 %v874_v4, %v464_v2  ;;  %v327_v18 = vld [vmem:[%s1822_s11 + $0x1d8] sm:$0xff]  ;;  %v382_v19 = vld [vmem:[%s1822_s11 + $0x390] sm:$0xff]  ;;  %v468_v24 = vld [vmem:[%s1822_s11 + $0x640] sm:$0xff]  ;;  %v912_v25 = vadd.f32 %v911_v10, %v465_v3 }
  0xae   : > { %v746_v53 = vadd.f32 %v745_v42, %v374_v32  ;;  %v678_v56 = vadd.f32 %v677_v35, %v322_v26  ;;  %v810_v57 = vadd.f32 %v809_v47, %v418_v39  ;;  %v715_v62 = vadd.f32 %v714_v41, %v323_v31  ;;  %v383_v20 = vld [vmem:[%s1822_s11 + $0x398] sm:$0xff]  ;;  %v426_v26 = vld [vmem:[%s1822_s11 + $0x4f0] sm:$0xff]  ;;  %v469_v31 = vld [vmem:[%s1822_s11 + $0x648] sm:$0xff] }
  0xaf   : > { %v784_v0 = vadd.f32 %v783_v54, %v377_v38  ;;  %v848_v8 = vadd.f32 %v847_v58, %v421_v50  ;;  %v427_v27 = vld [vmem:[%s1822_s11 + $0x4f8] sm:$0xff]  ;;  %v876_v32 = vadd.f32 %v875_v17, %v466_v9  ;;  %v384_v33 = vld [vmem:[%s1822_s11 + $0x3a0] sm:$0xff]  ;;  %v470_v37 = vld [vmem:[%s1822_s11 + $0x650] sm:$0xff]  ;;  %v913_v38 = vadd.f32 %v912_v25, %v467_v16 }
  0xb0   : > { %v747_v63 = vadd.f32 %v746_v53, %v376_v34  ;;  %v811_v7 = vadd.f32 %v810_v57, %v420_v46  ;;  %v679_v21 = vadd.f32 %v678_v56, %v324_v49  ;;  %v716_v28 = vadd.f32 %v715_v62, %v325_v55  ;;  %v385_v34 = vld [vmem:[%s1822_s11 + $0x3a8] sm:$0xff]  ;;  %v328_v39 = vld [vmem:[%s1822_s11 + $0x1e0] sm:$0xff]  ;;  %v386_v47 = vld [vmem:[%s1822_s11 + $0x3b0] sm:$0xff] }
  0xb1   : > { %v785_v15 = vadd.f32 %v784_v0, %v379_v45  ;;  %v849_v23 = vadd.f32 %v848_v8, %v423_v52  ;;  %v428_v40 = vld [vmem:[%s1822_s11 + $0x500] sm:$0xff]  ;;  %v429_v41 = vld [vmem:[%s1822_s11 + $0x508] sm:$0xff]  ;;  %v877_v45 = vadd.f32 %v876_v32, %v468_v24  ;;  %v387_v48 = vld [vmem:[%s1822_s11 + $0x3b8] sm:$0xff]  ;;  %v914_v53 = vadd.f32 %v913_v38, %v469_v31 }
  0xb2   : > { %v748_v14 = vadd.f32 %v747_v63, %v378_v44  ;;  %v812_v22 = vadd.f32 %v811_v7, %v422_v51  ;;  %v471_v44 = vld [vmem:[%s1822_s11 + $0x658] sm:$0xff]  ;;  %v329_v46 = vld [vmem:[%s1822_s11 + $0x1e8] sm:$0xff]  ;;  %v680_v49 = vadd.f32 %v679_v21, %v326_v11  ;;  %v472_v52 = vld [vmem:[%s1822_s11 + $0x660] sm:$0xff]  ;;  %v717_v56 = vadd.f32 %v716_v28, %v327_v18 }
  0xb3   : > { %v786_v30 = vadd.f32 %v785_v15, %v381_v6  ;;  %v850_v36 = vadd.f32 %v849_v23, %v425_v13  ;;  %v430_v54 = vld [vmem:[%s1822_s11 + $0x510] sm:$0xff]  ;;  %v431_v55 = vld [vmem:[%s1822_s11 + $0x518] sm:$0xff]  ;;  %v473_v59 = vld [vmem:[%s1822_s11 + $0x668] sm:$0xff]  ;;  %v878_v60 = vadd.f32 %v877_v45, %v470_v37  ;;  %v915_v2 = vadd.f32 %v914_v53, %v471_v44 }
  0xb4   : > { %v749_v29 = vadd.f32 %v748_v14, %v380_v5  ;;  %v813_v35 = vadd.f32 %v812_v22, %v424_v12  ;;  %v388_v61 = vld [vmem:[%s1822_s11 + $0x3c0] sm:$0xff]  ;;  %v389_v62 = vld [vmem:[%s1822_s11 + $0x3c8] sm:$0xff]  ;;  %v474_v1 = vld [vmem:[%s1822_s11 + $0x670] sm:$0xff]  ;;  %v681_v12 = vadd.f32 %v680_v49, %v328_v39 }
  0xb5   : > { %v787_v43 = vadd.f32 %v786_v30, %v383_v20  ;;  %v851_v51 = vadd.f32 %v850_v36, %v427_v27  ;;  %v432_v3 = vld [vmem:[%s1822_s11 + $0x520] sm:$0xff]  ;;  %v433_v4 = vld [vmem:[%s1822_s11 + $0x528] sm:$0xff]  ;;  %v475_v7 = vld [vmem:[%s1822_s11 + $0x678] sm:$0xff]  ;;  %v879_v8 = vadd.f32 %v878_v60, %v472_v52  ;;  %v916_v16 = vadd.f32 %v915_v2, %v473_v59 }
  0xb6   : > { %v750_v42 = vadd.f32 %v749_v29, %v382_v19  ;;  %v814_v50 = vadd.f32 %v813_v35, %v426_v26  ;;  %v330_v9 = vld [vmem:[%s1822_s11 + $0x1f0] sm:$0xff]  ;;  %v391_v11 = vld [vmem:[%s1822_s11 + $0x3d8] sm:$0xff]  ;;  %v476_v15 = vld [vmem:[%s1822_s11 + $0x680] sm:$0xff]  ;;  %v718_v19 = vadd.f32 %v717_v56, %v329_v46 }
  0xb7   : > { %v788_v58 = vadd.f32 %v787_v43, %v385_v34  ;;  %v852_v0 = vadd.f32 %v851_v51, %v429_v41  ;;  %v390_v10 = vld [vmem:[%s1822_s11 + $0x3d0] sm:$0xff]  ;;  %v435_v18 = vld [vmem:[%s1822_s11 + $0x538] sm:$0xff]  ;;  %v477_v22 = vld [vmem:[%s1822_s11 + $0x688] sm:$0xff]  ;;  %v880_v23 = vadd.f32 %v879_v8, %v474_v1  ;;  %v917_v29 = vadd.f32 %v916_v16, %v475_v7 }
  0xb8   : > { %v751_v57 = vadd.f32 %v750_v42, %v384_v33  ;;  %v815_v63 = vadd.f32 %v814_v50, %v428_v40  ;;  %v434_v17 = vld [vmem:[%s1822_s11 + $0x530] sm:$0xff]  ;;  %v331_v24 = vld [vmem:[%s1822_s11 + $0x1f8] sm:$0xff]  ;;  %v392_v25 = vld [vmem:[%s1822_s11 + $0x3e0] sm:$0xff]  ;;  %v682_v44 = vadd.f32 %v681_v12, %v330_v9 }
  0xb9   : > { %v789_v6 = vadd.f32 %v788_v58, %v387_v48  ;;  %v853_v14 = vadd.f32 %v852_v0, %v431_v55  ;;  %v478_v28 = vld [vmem:[%s1822_s11 + $0x690] sm:$0xff]  ;;  %v436_v30 = vld [vmem:[%s1822_s11 + $0x540] sm:$0xff]  ;;  %v437_v31 = vld [vmem:[%s1822_s11 + $0x548] sm:$0xff]  ;;  %v881_v35 = vadd.f32 %v880_v23, %v476_v15  ;;  %v918_v41 = vadd.f32 %v917_v29, %v477_v22 }
  0xba   : > { %v752_v5 = vadd.f32 %v751_v57, %v386_v47  ;;  %v816_v13 = vadd.f32 %v815_v63, %v430_v54  ;;  %v479_v34 = vld [vmem:[%s1822_s11 + $0x698] sm:$0xff]  ;;  %v393_v36 = vld [vmem:[%s1822_s11 + $0x3e8] sm:$0xff]  ;;  %v394_v37 = vld [vmem:[%s1822_s11 + $0x3f0] sm:$0xff]  ;;  %v719_v45 = vadd.f32 %v718_v19, %v331_v24 }
  0xbb   : > { %v790_v21 = vadd.f32 %v789_v6, %v389_v62  ;;  %v854_v27 = vadd.f32 %v853_v14, %v433_v4  ;;  %v480_v40 = vld [vmem:[%s1822_s11 + $0x6a0] sm:$0xff]  ;;  %v438_v42 = vld [vmem:[%s1822_s11 + $0x550] sm:$0xff]  ;;  %v439_v43 = vld [vmem:[%s1822_s11 + $0x558] sm:$0xff]  ;;  %v882_v48 = vadd.f32 %v881_v35, %v478_v28  ;;  %v919_v54 = vadd.f32 %v918_v41, %v479_v34 }
  0xbc   : > { %v753_v20 = vadd.f32 %v752_v5, %v388_v61  ;;  %v817_v26 = vadd.f32 %v816_v13, %v432_v3  ;;  %v481_v47 = vld [vmem:[%s1822_s11 + $0x6a8] sm:$0xff]  ;;  %v395_v49 = vld [vmem:[%s1822_s11 + $0x3f8] sm:$0xff]  ;;  %v440_v50 = vld [vmem:[%s1822_s11 + $0x560] sm:$0xff]  ;;  %v683_v4 = vrot.slane %v682_v44, 4  ;;  %v720_v5 = vrot.slane %v719_v45, 4 }
  0xbd   : > { %v791_v33 = vadd.f32 %v790_v21, %v391_v11  ;;  %v855_v39 = vadd.f32 %v854_v27, %v435_v18  ;;  %v482_v53 = vld [vmem:[%s1822_s11 + $0x6b0] sm:$0xff]  ;;  %v441_v55 = vld [vmem:[%s1822_s11 + $0x568] sm:$0xff]  ;;  %v483_v59 = vld [vmem:[%s1822_s11 + $0x6b8] sm:$0xff]  ;;  %v883_v60 = vadd.f32 %v882_v48, %v480_v40  ;;  %v920_v2 = vadd.f32 %v919_v54, %v481_v47 }
  0xbe   : > { %v754_v32 = vadd.f32 %v753_v20, %v390_v10  ;;  %v818_v38 = vadd.f32 %v817_v26, %v434_v17  ;;  %v442_v56 = vld [vmem:[%s1822_s11 + $0x570] sm:$0xff]  ;;  %v443_v61 = vld [vmem:[%s1822_s11 + $0x578] sm:$0xff]  ;;  %v484_v0 = vld [vmem:[%s1822_s11 + $0x6c0] sm:$0xff] }
  0xbf   : > { %v856_v52 = vadd.f32 %v855_v39, %v437_v31  ;;  %v792_v58 = vadd.f32 %v791_v33, %v393_v36  ;;  %v485_v1 = vld [vmem:[%s1822_s11 + $0x6c8] sm:$0xff]  ;;  %v444_v3 = vld [vmem:[%s1822_s11 + $0x580] sm:$0xff]  ;;  %v486_v6 = vld [vmem:[%s1822_s11 + $0x6d0] sm:$0xff]  ;;  %v884_v9 = vadd.f32 %v883_v60, %v482_v53  ;;  %v921_v15 = vadd.f32 %v920_v2, %v483_v59 }
  0xc0   : > { %v755_v46 = vadd.f32 %v754_v32, %v392_v25  ;;  %v819_v51 = vadd.f32 %v818_v38, %v436_v30  ;;  %v524_v7 = vld [vmem:[%s1822_s11 + $0x800] sm:$0xff]  ;;  %v525_v8 = vld [vmem:[%s1822_s11 + $0x808] sm:$0xff]  ;;  %v526_v12 = vld [vmem:[%s1822_s11 + $0x810] sm:$0xff]  ;;  %v2048_v31 = vadd.f32 %v683_v4, %v682_v44  ;;  %v2050_v32 = vadd.f32 %v720_v5, %v719_v45 }
  0xc1   : > { %v857_v63 = vadd.f32 %v856_v52, %v439_v43  ;;  %v527_v13 = vld [vmem:[%s1822_s11 + $0x818] sm:$0xff]  ;;  %v528_v14 = vld [vmem:[%s1822_s11 + $0x820] sm:$0xff]  ;;  %v445_v16 = vld [vmem:[%s1822_s11 + $0x588] sm:$0xff]  ;;  %v793_v18 = vadd.f32 %v792_v58, %v395_v49  ;;  %v885_v21 = vadd.f32 %v884_v9, %v484_v0  ;;  %v948_v22 = vadd.f32 %v526_v12, %v524_v7 }
  0xc2   : > { %v756_v57 = vadd.f32 %v755_v46, %v394_v37  ;;  %v820_v62 = vadd.f32 %v819_v51, %v438_v42  ;;  %v487_v19 = vld [vmem:[%s1822_s11 + $0x6d8] sm:$0xff]  ;;  %v529_v20 = vld [vmem:[%s1822_s11 + $0x828] sm:$0xff]  ;;  %v446_v23 = vld [vmem:[%s1822_s11 + $0x590] sm:$0xff]  ;;  %v922_v28 = vadd.f32 %v921_v15, %v485_v1  ;;  %v985_v29 = vadd.f32 %v527_v13, %v525_v8 }
  0xc3   : > { %v858_v11 = vadd.f32 %v857_v63, %v441_v55  ;;  %v488_v26 = vld [vmem:[%s1822_s11 + $0x6e0] sm:$0xff]  ;;  %v530_v27 = vld [vmem:[%s1822_s11 + $0x830] sm:$0xff]  ;;  %v447_v30 = vld [vmem:[%s1822_s11 + $0x598] sm:$0xff]  ;;  %v886_v35 = vadd.f32 %v885_v21, %v486_v6  ;;  %v949_v36 = vadd.f32 %v948_v22, %v528_v14  ;;  %v794_v45 = vrot.slane %v793_v18, 4 }
  0xc4   : > { %v821_v10 = vadd.f32 %v820_v62, %v440_v50  ;;  %v757_v17 = vrot.slane %v756_v57, 4  ;;  %v489_v33 = vld [vmem:[%s1822_s11 + $0x6e8] sm:$0xff]  ;;  %v531_v34 = vld [vmem:[%s1822_s11 + $0x838] sm:$0xff]  ;;  %v448_v37 = vld [vmem:[%s1822_s11 + $0x5a0] sm:$0xff]  ;;  %v923_v42 = vadd.f32 %v922_v28, %v487_v19  ;;  %v986_v43 = vadd.f32 %v985_v29, %v529_v20 }
  0xc5   : > { %v859_v25 = vadd.f32 %v858_v11, %v443_v61  ;;  %v490_v40 = vld [vmem:[%s1822_s11 + $0x6f0] sm:$0xff]  ;;  %v532_v41 = vld [vmem:[%s1822_s11 + $0x840] sm:$0xff]  ;;  %v449_v44 = vld [vmem:[%s1822_s11 + $0x5a8] sm:$0xff]  ;;  %v887_v49 = vadd.f32 %v886_v35, %v488_v26  ;;  %v950_v50 = vadd.f32 %v949_v36, %v530_v27  ;;  %v722_v60 = vrot.slane %v2050_v32, 2 }
  0xc6   : > { %v822_v24 = vadd.f32 %v821_v10, %v442_v56  ;;  %v758_v46 = vadd.f32 %v757_v17, %v756_v57  ;;  %v491_v47 = vld [vmem:[%s1822_s11 + $0x6f8] sm:$0xff]  ;;  %v533_v48 = vld [vmem:[%s1822_s11 + $0x848] sm:$0xff]  ;;  %v450_v51 = vld [vmem:[%s1822_s11 + $0x5b0] sm:$0xff]  ;;  %v924_v56 = vadd.f32 %v923_v42, %v489_v33  ;;  %v987_v58 = vadd.f32 %v986_v43, %v531_v34 }
  0xc7   : > { %v860_v39 = vadd.f32 %v859_v25, %v445_v16  ;;  %v492_v54 = vld [vmem:[%s1822_s11 + $0x700] sm:$0xff]  ;;  %v534_v55 = vld [vmem:[%s1822_s11 + $0x850] sm:$0xff]  ;;  %v451_v59 = vld [vmem:[%s1822_s11 + $0x5b8] sm:$0xff]  ;;  %v685_v57 = vrot.slane %v2048_v31, 2  ;;  %v888_v63 = vadd.f32 %v887_v49, %v490_v40  ;;  %v951_v0 = vadd.f32 %v950_v50, %v532_v41 }
  0xc8   : > { %v823_v38 = vadd.f32 %v822_v24, %v444_v3  ;;  %v493_v61 = vld [vmem:[%s1822_s11 + $0x708] sm:$0xff]  ;;  %v535_v62 = vld [vmem:[%s1822_s11 + $0x858] sm:$0xff]  ;;  %v452_v1 = vld [vmem:[%s1822_s11 + $0x5c0] sm:$0xff]  ;;  %v925_v6 = vadd.f32 %v924_v56, %v491_v47  ;;  %v988_v7 = vadd.f32 %v987_v58, %v533_v48  ;;  %v759_v9 = vrot.slane %v758_v46, 2 }
  0xc9   : > { %v861_v53 = vadd.f32 %v860_v39, %v447_v30  ;;  %v494_v4 = vld [vmem:[%s1822_s11 + $0x710] sm:$0xff]  ;;  %v536_v5 = vld [vmem:[%s1822_s11 + $0x860] sm:$0xff]  ;;  %v453_v8 = vld [vmem:[%s1822_s11 + $0x5c8] sm:$0xff]  ;;  %v795_v10 = vadd.f32 %v794_v45, %v793_v18  ;;  %v889_v13 = vadd.f32 %v888_v63, %v492_v54  ;;  %v952_v14 = vadd.f32 %v951_v0, %v534_v55 }
  0xca   : > { %v824_v52 = vadd.f32 %v823_v38, %v446_v23  ;;  %v495_v11 = vld [vmem:[%s1822_s11 + $0x718] sm:$0xff]  ;;  %v537_v12 = vld [vmem:[%s1822_s11 + $0x868] sm:$0xff]  ;;  %v538_v17 = vld [vmem:[%s1822_s11 + $0x870] sm:$0xff]  ;;  %v926_v19 = vadd.f32 %v925_v6, %v493_v61  ;;  %v989_v20 = vadd.f32 %v988_v7, %v535_v62  ;;  %v686_v35 = vadd.f32 %v685_v57, %v2048_v31 }
  0xcb   : > { %v862_v3 = vadd.f32 %v861_v53, %v449_v44  ;;  %v454_v21 = vld [vmem:[%s1822_s11 + $0x5d0] sm:$0xff]  ;;  %v455_v22 = vld [vmem:[%s1822_s11 + $0x5d8] sm:$0xff]  ;;  %v890_v24 = vadd.f32 %v889_v13, %v494_v4  ;;  %v953_v25 = vadd.f32 %v952_v14, %v536_v5  ;;  %v456_v18 = vld [vmem:[%s1822_s11 + $0x5e0] sm:$0xff]  ;;  %v723_v36 = vadd.f32 %v722_v60, %v2050_v32 }
  0xcc   : > { %v825_v2 = vadd.f32 %v824_v52, %v448_v37  ;;  %v539_v23 = vld [vmem:[%s1822_s11 + $0x878] sm:$0xff]  ;;  %v496_v28 = vld [vmem:[%s1822_s11 + $0x720] sm:$0xff]  ;;  %v927_v30 = vadd.f32 %v926_v19, %v495_v11  ;;  %v990_v33 = vadd.f32 %v989_v20, %v537_v12  ;;  %v457_v34 = vld [vmem:[%s1822_s11 + $0x5e8] sm:$0xff]  ;;  %v796_v37 = vrot.slane %v795_v10, 2 }
  0xcd   : > { %v863_v16 = vadd.f32 %v862_v3, %v451_v59  ;;  %v540_v29 = vld [vmem:[%s1822_s11 + $0x880] sm:$0xff]  ;;  %v497_v38 = vld [vmem:[%s1822_s11 + $0x728] sm:$0xff]  ;;  %v954_v40 = vadd.f32 %v953_v25, %v538_v17  ;;  %v760_v41 = vadd.f32 %v759_v9, %v758_v46  ;;  %v542_v44 = vld [vmem:[%s1822_s11 + $0x890] sm:$0xff]  ;;  %v891_v50 = vadd.f32 %v890_v24, %v496_v28 }
  0xce   : > { %v826_v15 = vadd.f32 %v825_v2, %v450_v51  ;;  %v541_v39 = vld [vmem:[%s1822_s11 + $0x888] sm:$0xff]  ;;  %v991_v45 = vadd.f32 %v990_v33, %v539_v23  ;;  %v458_v47 = vld [vmem:[%s1822_s11 + $0x5f0] sm:$0xff]  ;;  %v459_v48 = vld [vmem:[%s1822_s11 + $0x5f8] sm:$0xff]  ;;  %v928_v54 = vadd.f32 %v927_v30, %v497_v38  ;;  %v687_v55 = vrot.slane %v686_v35, 1 }
  0xcf   : > { %v864_v27 = vadd.f32 %v863_v16, %v453_v8  ;;  %v543_v49 = vld [vmem:[%s1822_s11 + $0x898] sm:$0xff]  ;;  %v955_v31 = vadd.f32 %v954_v40, %v540_v29  ;;  %v498_v52 = vld [vmem:[%s1822_s11 + $0x730] sm:$0xff]  ;;  %v544_v53 = vld [vmem:[%s1822_s11 + $0x8a0] sm:$0xff]  ;;  %v724_v56 = vrot.slane %v723_v36, 1  ;;  %v797_v58 = vadd.f32 %v796_v37, %v795_v10 }
  0xd0   : > { %v827_v26 = vadd.f32 %v826_v15, %v452_v1  ;;  %v992_v46 = vadd.f32 %v991_v45, %v541_v39  ;;  %v499_v59 = vld [vmem:[%s1822_s11 + $0x738] sm:$0xff]  ;;  %v545_v57 = vld [vmem:[%s1822_s11 + $0x8a8] sm:$0xff]  ;;  %v761_v61 = vrot.slane %v760_v41, 1  ;;  %v546_v0 = vld [vmem:[%s1822_s11 + $0x8b0] sm:$0xff]  ;;  %v892_v5 = vadd.f32 %v891_v50, %v498_v52 }
  0xd1   : > { %v865_v43 = vadd.f32 %v864_v27, %v455_v22  ;;  %v956_v60 = vadd.f32 %v955_v31, %v542_v44  ;;  %v500_v2 = vld [vmem:[%s1822_s11 + $0x740] sm:$0xff]  ;;  %v501_v3 = vld [vmem:[%s1822_s11 + $0x748] sm:$0xff]  ;;  %v547_v4 = vld [vmem:[%s1822_s11 + $0x8b8] sm:$0xff]  ;;  %v929_v12 = vadd.f32 %v928_v54, %v499_v59  ;;  %v688_v14 = vadd.f32 %v687_v55, %v686_v35 }
  0xd2   : > { %v828_v42 = vadd.f32 %v827_v26, %v454_v21  ;;  %v993_v1 = vadd.f32 %v992_v46, %v543_v49  ;;  %v548_v9 = vld [vmem:[%s1822_s11 + $0x8c0] sm:$0xff]  ;;  %v549_v10 = vld [vmem:[%s1822_s11 + $0x8c8] sm:$0xff]  ;;  %v725_v15 = vadd.f32 %v724_v56, %v723_v36  ;;  %v798_v16 = vrot.slane %v797_v58, 1  ;;  %v590_v19 = vld [vmem:[%s1822_s11 + $0xa10] sm:$0xff] }
  0xd3   : > { %v866_v51 = vadd.f32 %v865_v43, %v457_v34  ;;  %v957_v6 = vadd.f32 %v956_v60, %v544_v53  ;;  %v588_v11 = vld [vmem:[%s1822_s11 + $0xa00] sm:$0xff]  ;;  %v589_v17 = vld [vmem:[%s1822_s11 + $0xa08] sm:$0xff]  ;;  %v591_v20 = vld [vmem:[%s1822_s11 + $0xa18] sm:$0xff]  ;;  %v762_v22 = vadd.f32 %v761_v61, %v760_v41  ;;  %v893_v30 = vadd.f32 %v892_v5, %v500_v2 }
  0xd4   : > { %v829_v32 = vadd.f32 %v828_v42, %v456_v18  ;;  %v994_v13 = vadd.f32 %v993_v1, %v545_v57  ;;  %v550_v25 = vld [vmem:[%s1822_s11 + $0x8d0] sm:$0xff]  ;;  %v592_v18 = vld [vmem:[%s1822_s11 + $0xa20] sm:$0xff]  ;;  %v593_v26 = vld [vmem:[%s1822_s11 + $0xa28] sm:$0xff]  ;;  %v1022_v34 = vadd.f32 %v590_v19, %v588_v11  ;;  %v1059_v35 = vadd.f32 %v591_v20, %v589_v17 }
  0xd5   : > { %v867_v63 = vadd.f32 %v866_v51, %v459_v48  ;;  %v958_v21 = vadd.f32 %v957_v6, %v546_v0  ;;  %v502_v28 = vld [vmem:[%s1822_s11 + $0x750] sm:$0xff]  ;;  %v551_v29 = vld [vmem:[%s1822_s11 + $0x8d8] sm:$0xff]  ;;  %v552_v38 = vld [vmem:[%s1822_s11 + $0x8e0] sm:$0xff]  ;;  %v930_v41 = vadd.f32 %v929_v12, %v501_v3  ;;  %v799_v43 = vadd.f32 %v798_v16, %v797_v58 }
  0xd6   : > { %v830_v62 = vadd.f32 %v829_v32, %v458_v47  ;;  %v995_v27 = vadd.f32 %v994_v13, %v547_v4  ;;  %v594_v39 = vld [vmem:[%s1822_s11 + $0xa30] sm:$0xff]  ;;  %v595_v40 = vld [vmem:[%s1822_s11 + $0xa38] sm:$0xff]  ;;  %v553_v45 = vld [vmem:[%s1822_s11 + $0x8e8] sm:$0xff]  ;;  %v1023_v48 = vadd.f32 %v1022_v34, %v592_v18  ;;  %v1060_v49 = vadd.f32 %v1059_v35, %v593_v26 }
  0xd7   : > { %v868_v8 = vrot.slane %v867_v63, 4  ;;  %v959_v33 = vadd.f32 %v958_v21, %v548_v9  ;;  %v503_v44 = vld [vmem:[%s1822_s11 + $0x758] sm:$0xff]  ;;  %v1109_v32 = vsel %vm1108_vm0, %v762_v22, %v688_v14  ;;  %v554_v51 = vld [vmem:[%s1822_s11 + $0x8f0] sm:$0xff]  ;;  %v596_v52 = vld [vmem:[%s1822_s11 + $0xa40] sm:$0xff]  ;;  %v894_v56 = vadd.f32 %v893_v30, %v502_v28 }
  0xd8   : > { %v831_v7 = vrot.slane %v830_v62, 4  ;;  %v996_v42 = vadd.f32 %v995_v27, %v549_v10  ;;  %v597_v53 = vld [vmem:[%s1822_s11 + $0xa48] sm:$0xff]  ;;  %v504_v46 = vld [vmem:[%s1822_s11 + $0x760] sm:$0xff]  ;;  %v555_v55 = vld [vmem:[%s1822_s11 + $0x8f8] sm:$0xff]  ;;  %v1024_v59 = vadd.f32 %v1023_v48, %v594_v39  ;;  %v1061_v57 = vadd.f32 %v1060_v49, %v595_v40 }
  0xd9   : > { %v869_v24 = vadd.f32 %v868_v8, %v867_v63  ;;  %v960_v47 = vadd.f32 %v959_v33, %v550_v25  ;;  %v598_v63 = vld [vmem:[%s1822_s11 + $0xa50] sm:$0xff]  ;;  %v599_v0 = vld [vmem:[%s1822_s11 + $0xa58] sm:$0xff]  ;;  %v931_v1 = vadd.f32 %v930_v41, %v503_v44  ;;  %v1112_v3 = vsel %vm1108_vm0, %v799_v43, %v725_v15  ;;  %v505_v4 = vld [vmem:[%s1822_s11 + $0x768] sm:$0xff] }
  0xda   : > { %v832_v23 = vadd.f32 %v831_v7, %v830_v62  ;;  %v997_v54 = vadd.f32 %v996_v42, %v551_v29  ;;  %v556_v62 = vld [vmem:[%s1822_s11 + $0x900] sm:$0xff]  ;;  %v557_v5 = vld [vmem:[%s1822_s11 + $0x908] sm:$0xff]  ;;  %v1025_v7 = vadd.f32 %v1024_v59, %v596_v52  ;;  %v1062_v8 = vadd.f32 %v1061_v57, %v597_v53  ;;  %v558_v11 = vld [vmem:[%s1822_s11 + $0x910] sm:$0xff] }
  0xdb   : > { %v870_v37 = vrot.slane %v869_v24, 2  ;;  %v961_v58 = vadd.f32 %v960_v47, %v552_v38  ;;  %v1143_v13 = vlaneseq  ;;  %v559_v14 = vld [vmem:[%s1822_s11 + $0x918] sm:$0xff]  ;;  %v600_v16 = vld [vmem:[%s1822_s11 + $0xa60] sm:$0xff]  ;;  %v895_v17 = vadd.f32 %v894_v56, %v504_v46  ;;  %v601_v25 = vld [vmem:[%s1822_s11 + $0xa68] sm:$0xff] }
  0xdc   : > { %v833_v36 = vrot.slane %v832_v23, 2  ;;  %v998_v2 = vadd.f32 %v997_v54, %v553_v45  ;;  %v1026_v19 = vadd.f32 %v1025_v7, %v598_v63  ;;  %v1063_v20 = vadd.f32 %v1062_v8, %v599_v0  ;;  %v507_v29 = vld [vmem:[%s1822_s11 + $0x778] sm:$0xff]  ;;  %v561_v30 = vld [vmem:[%s1822_s11 + $0x928] sm:$0xff]  ;;  %v602_v33 = vld [vmem:[%s1822_s11 + $0xa70] sm:$0xff] }
  0xdd   : > { %v871_v31 = vadd.f32 %v870_v37, %v869_v24  ;;  %v962_v6 = vadd.f32 %v961_v58, %v554_v51  ;;  %v560_v24 = vld [vmem:[%s1822_s11 + $0x920] sm:$0xff]  ;;  %v932_v18 = vadd.f32 %v931_v1, %v505_v4  ;;  %v603_v37 = vld [vmem:[%s1822_s11 + $0xa78] sm:$0xff]  ;;  %v2144_v45 = vshrl.u32 %v1143_v13, 7  ;;  %v605_v49 = vld [vmem:[%s1822_s11 + $0xa88] sm:$0xff] }
  0xde   : > { %v834_v50 = vadd.f32 %v833_v36, %v832_v23  ;;  %v999_v12 = vadd.f32 %v998_v2, %v555_v55  ;;  %v506_v23 = vld [vmem:[%s1822_s11 + $0x770] sm:$0xff]  ;;  %v1027_v39 = vadd.f32 %v1026_v19, %v600_v16  ;;  %v563_v40 = vld [vmem:[%s1822_s11 + $0x938] sm:$0xff]  ;;  %v604_v41 = vld [vmem:[%s1822_s11 + $0xa80] sm:$0xff]  ;;  %v1064_v44 = vadd.f32 %v1063_v20, %v601_v25 }
  0xdf   : > { %v872_v61 = vrot.slane %v871_v31, 1  ;;  %v963_v15 = vadd.f32 %v962_v6, %v556_v62  ;;  %v562_v36 = vld [vmem:[%s1822_s11 + $0x930] sm:$0xff]  ;;  %v896_v42 = vadd.f32 %v895_v17, %v506_v23  ;;  %v508_v47 = vld [vmem:[%s1822_s11 + $0x780] sm:$0xff]  ;;  %v509_v51 = vld [vmem:[%s1822_s11 + $0x788] sm:$0xff]  ;;  %v2157_v0 = vsub.s32 0, %v2144_v45 }
  0xe0   : > { %v835_v60 = vrot.slane %v834_v50, 1  ;;  %v1000_v26 = vadd.f32 %v999_v12, %v557_v5  ;;  %v564_v48 = vld [vmem:[%s1822_s11 + $0x940] sm:$0xff]  ;;  %v565_v52 = vld [vmem:[%s1822_s11 + $0x948] sm:$0xff]  ;;  %v606_v53 = vld [vmem:[%s1822_s11 + $0xa90] sm:$0xff]  ;;  %v1065_v46 = vadd.f32 %v1064_v44, %v603_v37  ;;  %v2166_v12 = vsub.s32 1, %v2144_v45 }
  0xe1   : > { %v873_v10 = vadd.f32 %v872_v61, %v871_v31  ;;  %v964_v34 = vadd.f32 %v963_v15, %v558_v11  ;;  %v566_v55 = vld [vmem:[%s1822_s11 + $0x950] sm:$0xff]  ;;  %v607_v56 = vld [vmem:[%s1822_s11 + $0xa98] sm:$0xff]  ;;  %v897_v61 = vadd.f32 %v896_v42, %v508_v47  ;;  %v568_v2 = vld [vmem:[%s1822_s11 + $0x960] sm:$0xff] }
  0xe2   : > { %v836_v9 = vadd.f32 %v835_v60, %v834_v50  ;;  %v1001_v38 = vadd.f32 %v1000_v26, %v559_v14  ;;  %v933_v50 = vadd.f32 %v932_v18, %v507_v29  ;;  %v567_v57 = vld [vmem:[%s1822_s11 + $0x958] sm:$0xff]  ;;  %v608_v60 = vld [vmem:[%s1822_s11 + $0xaa0] sm:$0xff]  ;;  %v1066_v63 = vadd.f32 %v1065_v46, %v605_v49  ;;  %v510_v1 = vld [vmem:[%s1822_s11 + $0x790] sm:$0xff] }
  0xe3   : > { %v1113_v22 = vsel %vm1110_vm1, %v873_v10, %v1112_v3  ;;  %v965_v43 = vadd.f32 %v964_v34, %v560_v24  ;;  %v609_v3 = vld [vmem:[%s1822_s11 + $0xaa8] sm:$0xff]  ;;  %v511_v7 = vld [vmem:[%s1822_s11 + $0x798] sm:$0xff]  ;;  %v570_v14 = vld [vmem:[%s1822_s11 + $0x970] sm:$0xff] }
  0xe4   : > { %v1111_v21 = vsel %vm1110_vm1, %v836_v9, %v1109_v32  ;;  %v1124_v28 = vsel %vm1122_vm2, %v1113_v22, 0.0  ;;  %v1002_v31 = vadd.f32 %v1001_v38, %v561_v30  ;;  %v1028_v32 = vadd.f32 %v1027_v39, %v602_v33  ;;  %v569_v8 = vld [vmem:[%s1822_s11 + $0x968] sm:$0xff]  ;;  %v610_v9 = vld [vmem:[%s1822_s11 + $0xab0] sm:$0xff]  ;;  %v611_v16 = vld [vmem:[%s1822_s11 + $0xab8] sm:$0xff] }
  0xe5   : > { %v1123_v27 = vsel %vm1122_vm2, %v1111_v21, 0.0  ;;  %v966_v54 = vadd.f32 %v965_v43, %v562_v36  ;;  %v934_v4 = vadd.f32 %v933_v50, %v509_v51  ;;  %v1067_v11 = vadd.f32 %v1066_v63, %v607_v56  ;;  %v2170_v19 = vld [vmem:[#allocation4] sm:$0x7]  ;;  %v571_v20 = vld [vmem:[%s1822_s11 + $0x978] sm:$0xff]  ;;  %v513_v33 = vld [vmem:[%s1822_s11 + $0x7a8] sm:$0xff] }
  0xe6   : > { %v1125_v35 = vadd.f32 %v1124_v28, %v1123_v27  ;;  %v1003_v58 = vadd.f32 %v1002_v31, %v563_v40  ;;  %v1029_v59 = vadd.f32 %v1028_v32, %v604_v41  ;;  %v612_v21 = vld [vmem:[%s1822_s11 + $0xac0] sm:$0xff]  ;;  %v898_v22 = vadd.f32 %v897_v61, %v510_v1  ;;  %v613_v27 = vld [vmem:[%s1822_s11 + $0xac8] sm:$0xff]  ;;  %v574_v39 = vld [vmem:[%s1822_s11 + $0x990] sm:$0xff] }
  0xe7   : > { %v967_v62 = vadd.f32 %v966_v54, %v564_v48  ;;  %v1068_v24 = vadd.f32 %v1067_v11, %v609_v3  ;;  %v1154_v25 = vrot.slane %v2170_v19, %v2157_v0  ;;  %v512_v18 = vld [vmem:[%s1822_s11 + $0x7a0] sm:$0xff]  ;;  %v935_v28 = vadd.f32 %v934_v4, %v511_v7  ;;  %v573_v34 = vld [vmem:[%s1822_s11 + $0x988] sm:$0xff]  ;;  %v615_v40 = vld [vmem:[%s1822_s11 + $0xad8] sm:$0xff] }
  0xe8   : > { %1126 = vadd.xlane.f32.xlu0 %v1125_v35  ;;  %v1004_v5 = vadd.f32 %v1003_v58, %v565_v52  ;;  %v1030_v6 = vadd.f32 %v1029_v59, %v606_v53  ;;  %v572_v26 = vld [vmem:[%s1822_s11 + $0x980] sm:$0xff]  ;;  %v614_v35 = vld [vmem:[%s1822_s11 + $0xad0] sm:$0xff]  ;;  %v1194_v38 = vrot.slane %v2170_v19, %v2166_v12  ;;  %v575_v43 = vld [vmem:[%s1822_s11 + $0x998] sm:$0xff]  ;;  %v899_v47 = vadd.f32 %v898_v22, %v512_v18 }
  0xe9   : > { %v968_v10 = vadd.f32 %v967_v62, %v566_v55  ;;  %v1069_v37 = vadd.f32 %v1068_v24, %v611_v16  ;;  %1157 = vbcast.lane.b32.xlu1 %v1154_v25, 256  ;;  %v616_v44 = vld [vmem:[%s1822_s11 + $0xae0] sm:$0xff]  ;;  %v514_v50 = vld [vmem:[%s1822_s11 + $0x7b0] sm:$0xff]  ;;  %v617_v32 = vld [vmem:[%s1822_s11 + $0xae8] sm:$0xff]  ;;  %v936_v51 = vadd.f32 %v935_v28, %v513_v33 }
  0xea   : > { %v1005_v17 = vadd.f32 %v1004_v5, %v567_v57  ;;  %v1031_v15 = vadd.f32 %v1030_v6, %v608_v60  ;;  %v576_v31 = vld [vmem:[%s1822_s11 + $0x9a0] sm:$0xff]  ;;  %v515_v54 = vld [vmem:[%s1822_s11 + $0x7b8] sm:$0xff]  ;;  %v577_v46 = vld [vmem:[%s1822_s11 + $0x9a8] sm:$0xff]  ;;  %v900_v1 = vadd.f32 %v899_v47, %v514_v50 }
  0xeb   : > { %v969_v23 = vadd.f32 %v968_v10, %v568_v2  ;;  %v1070_v49 = vadd.f32 %v1069_v37, %v613_v27  ;;  %v618_v55 = vld [vmem:[%s1822_s11 + $0xaf0] sm:$0xff]  ;;  %v619_v57 = vld [vmem:[%s1822_s11 + $0xaf8] sm:$0xff]  ;;  %v620_v63 = vld [vmem:[%s1822_s11 + $0xb00] sm:$0xff]  ;;  %v937_v7 = vadd.f32 %v936_v51, %v515_v54 }
  0xec   : > { %v1006_v29 = vadd.f32 %v1005_v17, %v569_v8  ;;  %v1032_v30 = vadd.f32 %v1031_v15, %v610_v9  ;;  %v578_v59 = vld [vmem:[%s1822_s11 + $0x9b0] sm:$0xff]  ;;  %v579_v62 = vld [vmem:[%s1822_s11 + $0x9b8] sm:$0xff]  ;;  %v516_v4 = vld [vmem:[%s1822_s11 + $0x7c0] sm:$0xff] }
  0xed   : > { %v970_v36 = vadd.f32 %v969_v23, %v570_v14  ;;  %v1071_v58 = vadd.f32 %v1070_v49, %v615_v40  ;;  %1197 = vbcast.lane.b32.xlu1 %v1194_v38, 256  ;;  %v580_v5 = vld [vmem:[%s1822_s11 + $0x9c0] sm:$0xff]  ;;  %v621_v6 = vld [vmem:[%s1822_s11 + $0xb08] sm:$0xff]  ;;  %v622_v14 = vld [vmem:[%s1822_s11 + $0xb10] sm:$0xff]  ;;  %v901_v23 = vadd.f32 %v900_v1, %v516_v4 }
  0xee   : > { %v1007_v41 = vadd.f32 %v1006_v29, %v571_v20  ;;  %v1033_v42 = vadd.f32 %v1032_v30, %v612_v21  ;;  %v517_v10 = vld [vmem:[%s1822_s11 + $0x7c8] sm:$0xff]  ;;  %v623_v15 = vld [vmem:[%s1822_s11 + $0xb18] sm:$0xff]  ;;  %v624_v22 = vld [vmem:[%s1822_s11 + $0xb20] sm:$0xff] }
  0xef   : > { %v971_v48 = vadd.f32 %v970_v36, %v572_v26  ;;  %v1072_v3 = vadd.f32 %v1071_v58, %v617_v32  ;;  %v581_v11 = vld [vmem:[%s1822_s11 + $0x9c8] sm:$0xff]  ;;  %v518_v18 = vld [vmem:[%s1822_s11 + $0x7d0] sm:$0xff]  ;;  %v938_v28 = vadd.f32 %v937_v7, %v517_v10  ;;  %v519_v33 = vld [vmem:[%s1822_s11 + $0x7d8] sm:$0xff] }
  0xf0   : > { %v1008_v52 = vadd.f32 %v1007_v41, %v573_v34  ;;  %v1034_v53 = vadd.f32 %v1033_v42, %v614_v35  ;;  %v582_v26 = vld [vmem:[%s1822_s11 + $0x9d0] sm:$0xff]  ;;  %v625_v27 = vld [vmem:[%s1822_s11 + $0xb28] sm:$0xff]  ;;  %v583_v34 = vld [vmem:[%s1822_s11 + $0x9d8] sm:$0xff]  ;;  %v902_v40 = vadd.f32 %v901_v23, %v518_v18 }
  0xf1   : > { %v972_v56 = vadd.f32 %v971_v48, %v574_v39  ;;  %v1073_v17 = vadd.f32 %v1072_v3, %v619_v57  ;;  %v626_v35 = vld [vmem:[%s1822_s11 + $0xb30] sm:$0xff]  ;;  %v627_v37 = vld [vmem:[%s1822_s11 + $0xb38] sm:$0xff]  ;;  %v628_v39 = vld [vmem:[%s1822_s11 + $0xb40] sm:$0xff]  ;;  %v939_v48 = vadd.f32 %v938_v28, %v519_v33 }
  0xf2   : > { %v1009_v60 = vadd.f32 %v1008_v52, %v575_v43  ;;  %v1035_v61 = vadd.f32 %v1034_v53, %v616_v44  ;;  %v520_v43 = vld [vmem:[%s1822_s11 + $0x7e0] sm:$0xff]  ;;  %v629_v47 = vld [vmem:[%s1822_s11 + $0xb48] sm:$0xff]  ;;  %v630_v51 = vld [vmem:[%s1822_s11 + $0xb50] sm:$0xff] }
  0xf3   : > { %v973_v2 = vadd.f32 %v972_v56, %v576_v31  ;;  %v1074_v25 = vadd.f32 %v1073_v17, %v621_v6  ;;  %v584_v44 = vld [vmem:[%s1822_s11 + $0x9e0] sm:$0xff]  ;;  %v521_v31 = vld [vmem:[%s1822_s11 + $0x7e8] sm:$0xff]  ;;  %v631_v53 = vld [vmem:[%s1822_s11 + $0xb58] sm:$0xff] }
  0xf4   : > { %v1010_v8 = vadd.f32 %v1009_v60, %v577_v46  ;;  %v1036_v9 = vadd.f32 %v1035_v61, %v618_v55  ;;  %v585_v32 = vld [vmem:[%s1822_s11 + $0x9e8] sm:$0xff]  ;;  %v632_v46 = vld [vmem:[%s1822_s11 + $0xb60] sm:$0xff]  ;;  %v903_v55 = vadd.f32 %v902_v40, %v520_v43  ;;  %v586_v57 = vld [vmem:[%s1822_s11 + $0x9f0] sm:$0xff]  ;;  %v940_v61 = vadd.f32 %v939_v48, %v521_v31 }
  0xf5   : > { %v974_v16 = vadd.f32 %v973_v2, %v578_v59  ;;  %v1075_v36 = vadd.f32 %v1074_v25, %v623_v15  ;;  %v522_v59 = vld [vmem:[%s1822_s11 + $0x7f0] sm:$0xff]  ;;  %v633_v60 = vld [vmem:[%s1822_s11 + $0xb68] sm:$0xff]  ;;  %v523_v1 = vld [vmem:[%s1822_s11 + $0x7f8] sm:$0xff] }
  0xf6   : > { %v1011_v20 = vadd.f32 %v1010_v8, %v579_v62  ;;  %v1037_v21 = vadd.f32 %v1036_v9, %v620_v63  ;;  %v587_v2 = vld [vmem:[%s1822_s11 + $0x9f8] sm:$0xff]  ;;  %v634_v3 = vld [vmem:[%s1822_s11 + $0xb70] sm:$0xff]  ;;  %v636_v7 = vld [vmem:[%s1822_s11 + $0xb80] sm:$0xff]  ;;  %v904_v8 = vadd.f32 %v903_v55, %v522_v59 }
  0xf7   : > { %v975_v24 = vadd.f32 %v974_v16, %v580_v5  ;;  %v1076_v42 = vadd.f32 %v1075_v36, %v625_v27  ;;  %v635_v5 = vld [vmem:[%s1822_s11 + $0xb78] sm:$0xff]  ;;  %v638_v15 = vld [vmem:[%s1822_s11 + $0xb90] sm:$0xff]  ;;  %v640_v23 = vld [vmem:[%s1822_s11 + $0xba0] sm:$0xff] }
  0xf8   : > { %v1012_v29 = vadd.f32 %v1011_v20, %v581_v11  ;;  %v1038_v30 = vadd.f32 %v1037_v21, %v622_v14  ;;  %v637_v11 = vld [vmem:[%s1822_s11 + $0xb88] sm:$0xff]  ;;  %v941_v14 = vadd.f32 %v940_v61, %v523_v1  ;;  %v639_v21 = vld [vmem:[%s1822_s11 + $0xb98] sm:$0xff]  ;;  %v644_v36 = vld [vmem:[%s1822_s11 + $0xbc0] sm:$0xff] }
  0xf9   : > { %v976_v41 = vadd.f32 %v975_v24, %v582_v26  ;;  %v1077_v52 = vadd.f32 %v1076_v42, %v627_v37  ;;  %v905_v24 = vrot.slane %v904_v8, 4  ;;  %v641_v26 = vld [vmem:[%s1822_s11 + $0xba8] sm:$0xff]  ;;  %v647_v48 = vld [vmem:[%s1822_s11 + $0xbd8] sm:$0xff]  ;;  %v650_v55 = vld [vmem:[%s1822_s11 + $0xbf0] sm:$0xff] }
  0xfa   : > { %v1039_v38 = vadd.f32 %v1038_v30, %v624_v22  ;;  %v1013_v49 = vadd.f32 %v1012_v29, %v583_v34  ;;  %v942_v27 = vrot.slane %v941_v14, 4  ;;  %v642_v30 = vld [vmem:[%s1822_s11 + $0xbb0] sm:$0xff]  ;;  %v643_v34 = vld [vmem:[%s1822_s11 + $0xbb8] sm:$0xff]  ;;  %v645_v40 = vld [vmem:[%s1822_s11 + $0xbc8] sm:$0xff] }
  0xfb   : > { %v977_v56 = vadd.f32 %v976_v41, %v584_v44  ;;  %v1078_v58 = vadd.f32 %v1077_v52, %v629_v47  ;;  %v906_v37 = vadd.f32 %v905_v24, %v904_v8  ;;  %v646_v44 = vld [vmem:[%s1822_s11 + $0xbd0] sm:$0xff]  ;;  %v649_v52 = vld [vmem:[%s1822_s11 + $0xbe8] sm:$0xff] }
  0xfc   : > { %v1040_v50 = vadd.f32 %v1039_v38, %v626_v35  ;;  %v1014_v62 = vadd.f32 %v1013_v49, %v585_v32  ;;  %v943_v41 = vadd.f32 %v942_v27, %v941_v14 }
  0xfd   : > { %v1079_v4 = vadd.f32 %v1078_v58, %v631_v53  ;;  %v978_v9 = vadd.f32 %v977_v56, %v586_v57  ;;  %v907_v31 = vrot.slane %v906_v37, 2  ;;  %v651_v58 = vld [vmem:[%s1822_s11 + $0xbf8] sm:$0xff] }
  0xfe   : > { %v1041_v54 = vadd.f32 %v1040_v50, %v628_v39  ;;  %v1015_v16 = vadd.f32 %v1014_v62, %v587_v2  ;;  %v648_v50 = vld [vmem:[%s1822_s11 + $0xbe0] sm:$0xff]  ;;  %v944_v53 = vrot.slane %v943_v41, 2 }
  0xff   : > { %v1080_v10 = vadd.f32 %v1079_v4, %v633_v60  ;;  %v979_v25 = vrot.slane %v978_v9, 4  ;;  %v908_v57 = vadd.f32 %v907_v31, %v906_v37 }
 0x100   : > { %v1042_v63 = vadd.f32 %v1041_v54, %v630_v51  ;;  %v1016_v28 = vrot.slane %v1015_v16, 4  ;;  %v945_v62 = vadd.f32 %v944_v53, %v943_v41 }
 0x101   : > { %v1081_v20 = vadd.f32 %v1080_v10, %v635_v5  ;;  %v980_v38 = vadd.f32 %v979_v25, %v978_v9  ;;  %v909_v4 = vrot.slane %v908_v57, 1 }
 0x102   : > { %v1043_v6 = vadd.f32 %v1042_v63, %v632_v46  ;;  %v1017_v42 = vadd.f32 %v1016_v28, %v1015_v16 }
 0x103   : > { %v1082_v18 = vadd.f32 %v1081_v20, %v637_v11  ;;  %v981_v32 = vrot.slane %v980_v38, 2  ;;  %v910_v14 = vadd.f32 %v909_v4, %v908_v57 }
 0x104   : > { %v1044_v17 = vadd.f32 %v1043_v6, %v634_v3  ;;  %v1018_v54 = vrot.slane %v1017_v42, 2 }
 0x105   : > { %v1083_v33 = vadd.f32 %v1082_v18, %v639_v21  ;;  %v982_v60 = vadd.f32 %v981_v32, %v980_v38 }
 0x106   : > { %v1045_v22 = vadd.f32 %v1044_v17, %v636_v7  ;;  %v1019_v63 = vadd.f32 %v1018_v54, %v1017_v42  ;;  %v946_v7 = vrot.slane %v945_v62, 1 }
 0x107   : > { %v1084_v39 = vadd.f32 %v1083_v33, %v641_v26  ;;  %v983_v5 = vrot.slane %v982_v60, 1 }
 0x108   : > { %v1046_v29 = vadd.f32 %v1045_v22, %v638_v15  ;;  %v1020_v8 = vrot.slane %v1019_v63, 1  ;;  %v947_v15 = vadd.f32 %v946_v7, %v945_v62 }
 0x109   : > { %v1085_v47 = vadd.f32 %v1084_v39, %v643_v34  ;;  %v984_v16 = vadd.f32 %v983_v5, %v982_v60 }
 0x10a   : > { %v1047_v35 = vadd.f32 %v1046_v29, %v640_v23  ;;  %v1021_v20 = vadd.f32 %v1020_v8, %v1019_v63  ;;  %v1392_v63 = vld [vmem:[#allocation6] ss:$0 sm:$0xff] }
 0x10b   : > { %v1086_v51 = vadd.f32 %v1085_v47, %v645_v40  ;;  %v1114_v25 = vsel %vm1108_vm0, %v984_v16, %v910_v14 }
 0x10c   : > { %v1048_v43 = vadd.f32 %v1047_v35, %v642_v30  ;;  %v1116_v26 = vsel %vm1108_vm0, %v1021_v20, %v947_v15  ;;  %v1223_v35 = vsub.s32 2, %v2144_v45 }
 0x10d   : > { %v1087_v56 = vadd.f32 %v1086_v51, %v647_v48 }
 0x10e   : > { %v1049_v49 = vadd.f32 %v1048_v43, %v644_v36  ;;  %v1639_v36 = vmov 0   ;;  %v1232_v37 = vrot.slane %v2170_v19, %v1223_v35 }
 0x10f   : > { %v1088_v61 = vadd.f32 %v1087_v56, %v649_v52  ;;  %1500 = vset.pattern.permute.xlu1 %v1639_v36  ;;  %1501 = vset.pattern.permute.xlu0 %v1639_v36  ;;  %v1171_v56 = vand.u32 127, %v1143_v13 }
 0x110   : > { %v1050_v46 = vadd.f32 %v1049_v49, %v646_v44 }
 0x111   : > { %v1089_v2 = vadd.f32 %v1088_v61, %v651_v58 }
 0x112   : > { %v1051_v59 = vadd.f32 %v1050_v46, %v648_v50 }
 0x113   : > { %v1090_v6 = vrot.slane %v1089_v2, 4 }
 0x114   : > { %v1052_v1 = vadd.f32 %v1051_v59, %v650_v55 }
 0x115   : > { %v1091_v10 = vadd.f32 %v1090_v6, %v1089_v2 }
 0x116   : > { %v1053_v3 = vrot.slane %v1052_v1, 4 }
 0x117   : > { %v1092_v17 = vrot.slane %v1091_v10, 2 }
 0x118   : > { %v1054_v9 = vadd.f32 %v1053_v3, %v1052_v1 }
 0x119   : > { %v1093_v22 = vadd.f32 %v1092_v17, %v1091_v10 }
 0x11a   : > { %v1055_v11 = vrot.slane %v1054_v9, 2 }
 0x11b   : > { %v1094_v24 = vrot.slane %v1093_v22, 1 }
 0x11c   : > { %v1056_v21 = vadd.f32 %v1055_v11, %v1054_v9 }
 0x11d   : > { %v1095_v27 = vadd.f32 %v1094_v24, %v1093_v22 }
 0x11e   : > { %v1057_v23 = vrot.slane %v1056_v21, 1 }
 0x11f   : > { %v1117_v29 = vsel %vm1110_vm1, %v1095_v27, %v1116_v26 }
 0x120   : > { %v1058_v18 = vadd.f32 %v1057_v23, %v1056_v21  ;;  %v1129_v33 = vsel %vm1122_vm2, %v1117_v29, 0.0 }
 0x122   : > { %v1115_v28 = vsel %vm1110_vm1, %v1058_v18, %v1114_v25 }
 0x123   : > { %v1128_v30 = vsel %vm1122_vm2, %v1115_v28, 0.0 }
 0x124   : > { %v1130_v34 = vadd.f32 %v1129_v33, %v1128_v30 }
 0x126   : > { %1131 = vadd.xlane.f32.xlu0 %v1130_v34 }
 0x13c   : > { %1235 = vbcast.lane.b32.xlu0 %v1232_v37, 256 }
 0x15b   : > { %v1158_v41 = vpop.permute.xlu1 %1157 }
 0x15f   : > { %v1198_v50 = vpop.permute.xlu1 %1197 }
 0x175   : > { %v1127_v38 = vpop.xlane.xlu0 %1126 }
 0x176   : > { %v1133_v39 = vmul.f32 1.5258789e-05, %v1127_v38 }
 0x178   : > { %v1146_v40 = vrot.slane %v1133_v39, %v2157_v0  ;;  %v1186_v48 = vrot.slane %v1133_v39, %v2166_v12  ;;  %v1224_v52 = vrot.slane %v1133_v39, %v1223_v35 }
 0x17a   : > { %v1160_v42 = vmul.f32 %v1158_v41, %v1146_v40  ;;  %v1200_v31 = vmul.f32 %v1198_v50, %v1186_v48 }
 0x17c   : > { %1165 = vperm.xlu1 %1500, %v1160_v42  }
 0x1b3   : > { %v1132_v43 = vpop.xlane.xlu0 %1131 }
 0x1b4   : > { %v1134_v44 = vmul.f32 1.5258789e-05, %v1132_v43 }
 0x1b6   : > { %v1150_v47 = vrot.slane %v1134_v44, %v2157_v0  ;;  %v1190_v19 = vrot.slane %v1134_v44, %v2166_v12  ;;  %v1228_v53 = vrot.slane %v1134_v44, %v1223_v35  ;;  %v1174_v12 = vsub.s32 %v1171_v56, %v2144_v45 }
 0x1b7   : > { %v1236_v51 = vpop.permute.xlu0 %1235 }
 0x1b8   : > { %v1161_v49 = vmul.f32 %v1158_v41, %v1150_v47  ;;  %v1201_v32 = vmul.f32 %v1198_v50, %v1190_v19  ;;  %v1238_v54 = vmul.f32 %v1236_v51, %v1224_v52  ;;  %v1239_v0 = vmul.f32 %v1236_v51, %v1228_v53 }
 0x1ba   : > { %1168 = vperm.xlu1 %1500, %v1161_v49  }
 0x1be   : > { %1205 = vperm.xlu1 %1500, %v1200_v31  }
 0x1c2   : > { %1208 = vperm.xlu1 %1500, %v1201_v32  }
 0x1c6   : > { %1243 = vperm.xlu1 %1500, %v1238_v54  }
 0x1ca   : > { %1246 = vperm.xlu1 %1500, %v1239_v0  }
 0x1fb   : > { %v1166_v46 = vpop.permute.xlu1 %1165 }
 0x1fc   : > { %v1175_v60 = vrot.slane %v1166_v46, %v1174_v12 }
 0x239   : > { %v1169_v55 = vpop.permute.xlu1 %1168 }
 0x23a   : > { %v1179_v57 = vrot.slane %v1169_v55, %v1174_v12 }
 0x23c   : > { %v1180_v1 = vsel %vm1108_vm0, %v1179_v57, %v1175_v60 }
 0x23d   : > { %v1206_v58 = vpop.permute.xlu1 %1205  ;;  %v1182_v13 = vadd.f32 %v1392_v63, %v1180_v1 }
 0x23e   : > { %v1213_v2 = vrot.slane %v1206_v58, %v1174_v12 }
 0x241   : > { %v1209_v59 = vpop.permute.xlu1 %1208 }
 0x242   : > { %v1217_v61 = vrot.slane %v1209_v59, %v1174_v12 }
 0x244   : > { %v1218_v3 = vsel %vm1108_vm0, %v1217_v61, %v1213_v2 }
 0x245   : > { %v1244_v62 = vpop.permute.xlu1 %1243  ;;  %v1220_v45 = vadd.f32 %v1218_v3, %v1182_v13 }
 0x246   : > { %v1251_v5 = vrot.slane %v1244_v62, %v1174_v12 }
 0x249   : > { %v1247_v4 = vpop.permute.xlu1 %1246 }
 0x24a   : > { %v1255_v6 = vrot.slane %v1247_v4, %v1174_v12 }
 0x24c   : > { %v1256_v7 = vsel %vm1108_vm0, %v1255_v6, %v1251_v5 }
 0x24d   : > { %v1258_v8 = vadd.f32 %v1256_v7, %v1220_v45 }
 0x24f   : > { %1260 = vst.msk [vmem:[%s267_s16] sm:$0x3] %vm1259_vm3, %v1258_v8 }
 0x250 PF: > { %s17_s19 = sadd.s32 1, %s1628_s19   ;;  %s2315_s12 = smov %s1604_s13 }
 0x251   : > { %p14_p2 = scmp.ge.s32.totalorder %s17_s19, 6   ;;  %s2316_s13 = smov %s1608_s14 }
 0x252   : > { %s2317_s14 = smov %s1736_s4  ;;  %s2318_s15 = smov %s1620_s17 }
 0x253   : > { %s2319_s16 = smov %s1624_s18  ;;  %s2320_s17 = smov %s2323_s21 }
 0x254   : > { %s2321_s18 = smov %s2327_s22  ;;  %16 = sbr.rel (!%p14_p2) target bundleno = 9 (0x9), region = 85 }
 0x25b   :  { %1288 = vsyncpa [#allocation3], 1 }
 0x25c   :  { %1290 = vsyncpa [#allocation3 + $0x1], 1 }
 0x25d   :  { %1291 = vsyncpa [#allocation5], 1 }

// kernel: forward.3
= control target key start
LH: loop header
LB: loop body
LE: loop exit
PB: predicated region body
PF: predicated region fallthrough
CT: control target
= control target key end

     0   :  { %v2637_v0 = vmov 1   ;;  %v2638_v1 = vmov 0   ;;  %v2639_v4 = vmov 2   ;;  %v2640_v5 = vmov 3   ;;  %s5396_s2 = inlined_call_operand.vmem [shape: f32[3,7], index: 2, kind: input, shape index: {}]   ;;  %s5397_s4 = inlined_call_operand.vmem [shape: f32[3,1], index: 4, kind: input, shape index: {}]   ;;  %s5398_s0 = inlined_call_operand.vmem [shape: f32[2,7,4096], index: 0, kind: input, shape index: {}]   ;;  %s5399_s3 = inlined_call_operand.vmem [shape: f32[3,3], index: 3, kind: input, shape index: {}]   ;;  %s5400_s1 = inlined_call_operand.vmem [shape: f32[2,3,4096], index: 1, kind: input, shape index: {}]   ;;  %s5401_s5 = inlined_call_operand.vmem [shape: f32[1,3,4096], index: 5, kind: output, shape index: {}]  }
   0x1   :  { %2628 = vset.pattern.permute.xlu1 %v2637_v0  ;;  %2627 = vset.pattern.permute.xlu0 %v2638_v1  ;;  %v534_v2 = vld [vmem:[%s5396_s2] sm:$0x7]  ;;  %v2641_v6 = vmov 4   ;;  %v2642_v7 = vmov 6   ;;  %v547_v8 = vlaneseq  ;;  %v2643_v9 = vmov 5  }
   0x2   :  { %740 = vperm.xlu1 %2628, %v534_v2   ;;  %544 = vperm.xlu0 %2627, %v534_v2   ;;  %v536_v3 = vld [vmem:[%s5397_s4] sm:$0x7]  ;;  %vm84_vm0 = vcmask 1046528   ;;  %v21_v13 = vld [vmem:[%s5398_s0 + $0x8] sm:$0x7f]  ;;  %vm405_vm1 = vcmask 1042432  }
   0x3   :  { %v20_v10 = vld [vmem:[%s5398_s0] sm:$0x7f]  ;;  %v2686_v12 = vshrl.u32 %v547_v8, 7  ;;  %v22_v14 = vld [vmem:[%s5398_s0 + $0x10] sm:$0x7f]  ;;  %v88_v25 = vsel %vm84_vm0, %v21_v13, 0.0 }
   0x4   :  { %v535_v11 = vld [vmem:[%s5399_s3] sm:$0x7]  ;;  %v85_v15 = vsel %vm84_vm0, %v20_v10, 0.0  ;;  %v23_v16 = vld [vmem:[%s5398_s0 + $0x18] sm:$0x7f]  ;;  %v91_v36 = vsel %vm84_vm0, %v22_v14, 0.0 }
   0x5   :  { %v52_v17 = vld [vmem:[%s5398_s0 + $0x100] sm:$0x7f]  ;;  %v53_v18 = vld [vmem:[%s5398_s0 + $0x108] sm:$0x7f]  ;;  %v54_v21 = vld [vmem:[%s5398_s0 + $0x110] sm:$0x7f] }
   0x6   :  { %2629 = vset.pattern.permute.xlu1 %v2639_v4  ;;  %539 = vperm.xlu0 %2627, %v536_v3   ;;  %v24_v19 = vld [vmem:[%s5398_s0 + $0x20] sm:$0x7f]  ;;  %v25_v20 = vld [vmem:[%s5398_s0 + $0x28] sm:$0x7f]  ;;  %v2714_v22 = vsub.s32 1, %v2686_v12  ;;  %v86_v30 = vsel %vm84_vm0, %v52_v17, 0.0 }
   0x7   :  { %936 = vperm.xlu1 %2629, %v534_v2   ;;  %v26_v23 = vld [vmem:[%s5398_s0 + $0x30] sm:$0x7f]  ;;  %v55_v24 = vld [vmem:[%s5398_s0 + $0x118] sm:$0x7f]  ;;  %v28_v27 = vld [vmem:[%s5398_s0 + $0x40] sm:$0x7f]  ;;  %v2746_v35 = vadd.f32 %v86_v30, %v85_v15 }
   0x8   :  { %5541 = vst [vmem:[#allocation2_spill] sm:$0xff] %v2714_v22  ;;  %v27_v26 = vld [vmem:[%s5398_s0 + $0x38] sm:$0x7f]  ;;  %v56_v28 = vld [vmem:[%s5398_s0 + $0x120] sm:$0x7f]  ;;  %v89_v31 = vsel %vm84_vm0, %v53_v18, 0.0 }
   0x9   :  { %v57_v29 = vld [vmem:[%s5398_s0 + $0x128] sm:$0x7f]  ;;  %v58_v33 = vld [vmem:[%s5398_s0 + $0x130] sm:$0x7f]  ;;  %v59_v34 = vld [vmem:[%s5398_s0 + $0x138] sm:$0x7f]  ;;  %v2756_v40 = vadd.f32 %v89_v31, %v88_v25 }
   0xa   :  { %2630 = vset.pattern.permute.xlu0 %v2640_v5  ;;  %v29_v32 = vld [vmem:[%s5398_s0 + $0x48] sm:$0x7f]  ;;  %v92_v37 = vsel %vm84_vm0, %v54_v21, 0.0  ;;  %v30_v38 = vld [vmem:[%s5398_s0 + $0x50] sm:$0x7f]  ;;  %v94_v41 = vsel %vm84_vm0, %v23_v16, 0.0 }
   0xb   :  { %2631 = vset.pattern.permute.xlu1 %v2641_v6  ;;  %1132 = vperm.xlu0 %2630, %v534_v2   ;;  %v60_v39 = vld [vmem:[%s5398_s0 + $0x140] sm:$0x7f]  ;;  %v95_v42 = vsel %vm84_vm0, %v55_v24, 0.0  ;;  %v97_v43 = vsel %vm84_vm0, %v24_v19, 0.0  ;;  %v31_v44 = vld [vmem:[%s5398_s0 + $0x58] sm:$0x7f]  ;;  %v2770_v47 = vadd.f32 %v92_v37, %v91_v36 }
   0xc   :  { %1328 = vperm.xlu1 %2631, %v534_v2   ;;  %v32_v45 = vld [vmem:[%s5398_s0 + $0x60] sm:$0x7f]  ;;  %v61_v46 = vld [vmem:[%s5398_s0 + $0x148] sm:$0x7f]  ;;  %v98_v48 = vsel %vm84_vm0, %v56_v28, 0.0  ;;  %v100_v49 = vsel %vm84_vm0, %v25_v20, 0.0  ;;  %v2784_v54 = vadd.f32 %v95_v42, %v94_v41 }
   0xd   :  { %v101_v50 = vsel %vm84_vm0, %v57_v29, 0.0  ;;  %v33_v51 = vld [vmem:[%s5398_s0 + $0x68] sm:$0x7f]  ;;  %v62_v52 = vld [vmem:[%s5398_s0 + $0x150] sm:$0x7f]  ;;  %v2786_v55 = vadd.f32 %v98_v48, %v97_v43  ;;  %v103_v56 = vsel %vm84_vm0, %v26_v23, 0.0 }
   0xe   :  { %v63_v53 = vld [vmem:[%s5398_s0 + $0x158] sm:$0x7f]  ;;  %v104_v57 = vsel %vm84_vm0, %v58_v33, 0.0  ;;  %v34_v58 = vld [vmem:[%s5398_s0 + $0x70] sm:$0x7f]  ;;  %v2796_v60 = vadd.f32 %v101_v50, %v100_v49  ;;  %v106_v61 = vsel %vm84_vm0, %v27_v26, 0.0 }
   0xf   :  { %2633 = vset.pattern.permute.xlu0 %v2642_v7  ;;  %v64_v59 = vld [vmem:[%s5398_s0 + $0x160] sm:$0x7f]  ;;  %v107_v62 = vsel %vm84_vm0, %v59_v34, 0.0  ;;  %v109_v63 = vsel %vm84_vm0, %v28_v27, 0.0  ;;  %v2810_v3 = vadd.f32 %v104_v57, %v103_v56  ;;  %v112_v5 = vsel %vm84_vm0, %v29_v32, 0.0 }
  0x10   :  { %2632 = vset.pattern.permute.xlu1 %v2643_v9  ;;  %1720 = vperm.xlu0 %2633, %v534_v2   ;;  %v113_v6 = vsel %vm84_vm0, %v61_v46, 0.0  ;;  %v37_v7 = vld [vmem:[%s5398_s0 + $0x88] sm:$0x7f]  ;;  %v66_v8 = vld [vmem:[%s5398_s0 + $0x170] sm:$0x7f]  ;;  %v2824_v10 = vadd.f32 %v107_v62, %v106_v61  ;;  %v115_v13 = vsel %vm84_vm0, %v30_v38, 0.0 }
  0x11   :  { %1524 = vperm.xlu1 %2632, %v534_v2   ;;  %v65_v2 = vld [vmem:[%s5398_s0 + $0x168] sm:$0x7f]  ;;  %v67_v9 = vld [vmem:[%s5398_s0 + $0x178] sm:$0x7f]  ;;  %v116_v14 = vsel %vm84_vm0, %v62_v52, 0.0  ;;  %v2836_v17 = vadd.f32 %v113_v6, %v112_v5  ;;  %v118_v18 = vsel %vm84_vm0, %v31_v44, 0.0 }
  0x12   :  { %v38_v15 = vld [vmem:[%s5398_s0 + $0x90] sm:$0x7f]  ;;  %v68_v16 = vld [vmem:[%s5398_s0 + $0x180] sm:$0x7f]  ;;  %v119_v19 = vsel %vm84_vm0, %v63_v53, 0.0  ;;  %v121_v20 = vsel %vm84_vm0, %v32_v45, 0.0  ;;  %v2850_v25 = vadd.f32 %v116_v14, %v115_v13 }
  0x13   :  { %v39_v21 = vld [vmem:[%s5398_s0 + $0x98] sm:$0x7f]  ;;  %v40_v23 = vld [vmem:[%s5398_s0 + $0xa0] sm:$0x7f]  ;;  %v69_v24 = vld [vmem:[%s5398_s0 + $0x188] sm:$0x7f]  ;;  %v2864_v32 = vadd.f32 %v119_v19, %v118_v18 }
  0x14   :  { %2636 = vset.pattern.permute.xlu0 %v2639_v4  ;;  %v110_v4 = vsel %vm84_vm0, %v60_v39, 0.0  ;;  %v122_v26 = vsel %vm84_vm0, %v64_v59, 0.0  ;;  %v124_v27 = vsel %vm84_vm0, %v33_v51, 0.0  ;;  %v125_v28 = vsel %vm84_vm0, %v65_v2, 0.0  ;;  %v41_v29 = vld [vmem:[%s5398_s0 + $0xa8] sm:$0x7f] }
  0x15   :  { %2634 = vset.pattern.permute.xlu1 %v2638_v1  ;;  %2309 = vperm.xlu0 %2636, %v535_v11   ;;  %v36_v1 = vld [vmem:[%s5398_s0 + $0x80] sm:$0x7f]  ;;  %v70_v30 = vld [vmem:[%s5398_s0 + $0x190] sm:$0x7f]  ;;  %v71_v31 = vld [vmem:[%s5398_s0 + $0x198] sm:$0x7f]  ;;  %v2866_v33 = vadd.f32 %v122_v26, %v121_v20  ;;  %v2876_v39 = vadd.f32 %v125_v28, %v124_v27 }
  0x16   :  { %1917 = vperm.xlu1 %2634, %v535_v11   ;;  %v127_v34 = vsel %vm84_vm0, %v34_v58, 0.0  ;;  %v128_v36 = vsel %vm84_vm0, %v66_v8, 0.0  ;;  %v42_v37 = vld [vmem:[%s5398_s0 + $0xb0] sm:$0x7f]  ;;  %v72_v38 = vld [vmem:[%s5398_s0 + $0x1a0] sm:$0x7f] }
  0x17   :  { %v131_v42 = vsel %vm84_vm0, %v67_v9, 0.0  ;;  %v133_v43 = vsel %vm84_vm0, %v36_v1, 0.0  ;;  %v43_v44 = vld [vmem:[%s5398_s0 + $0xb8] sm:$0x7f]  ;;  %v44_v45 = vld [vmem:[%s5398_s0 + $0xc0] sm:$0x7f]  ;;  %v2890_v48 = vadd.f32 %v128_v36, %v127_v34 }
  0x18   :  { %v73_v46 = vld [vmem:[%s5398_s0 + $0x1a8] sm:$0x7f]  ;;  %v134_v49 = vsel %vm84_vm0, %v68_v16, 0.0  ;;  %v136_v50 = vsel %vm84_vm0, %v37_v7, 0.0  ;;  %v137_v51 = vsel %vm84_vm0, %v69_v24, 0.0  ;;  %v139_v59 = vsel %vm84_vm0, %v38_v15, 0.0 }
  0x19   :  { %v45_v52 = vld [vmem:[%s5398_s0 + $0xc8] sm:$0x7f]  ;;  %v74_v53 = vld [vmem:[%s5398_s0 + $0x1b0] sm:$0x7f]  ;;  %v75_v56 = vld [vmem:[%s5398_s0 + $0x1b8] sm:$0x7f]  ;;  %v2906_v58 = vadd.f32 %v134_v49, %v133_v43 }
  0x1a   :  { %2635 = vset.pattern.permute.xlu1 %v2637_v0  ;;  %v35_v0 = vld [vmem:[%s5398_s0 + $0x78] sm:$0x7f]  ;;  %v140_v61 = vsel %vm84_vm0, %v70_v30, 0.0  ;;  %v46_v62 = vld [vmem:[%s5398_s0 + $0xd0] sm:$0x7f]  ;;  %v142_v1 = vsel %vm84_vm0, %v39_v21, 0.0 }
  0x1b   :  { %2113 = vperm.xlu1 %2635, %v535_v11   ;;  %v2826_v11 = vadd.f32 %v110_v4, %v109_v63  ;;  %v130_v41 = vsel %vm84_vm0, %v35_v0, 0.0  ;;  %v76_v63 = vld [vmem:[%s5398_s0 + $0x1c0] sm:$0x7f]  ;;  %v2916_v0 = vadd.f32 %v137_v51, %v136_v50  ;;  %v143_v2 = vsel %vm84_vm0, %v71_v31, 0.0  ;;  %v47_v5 = vld [vmem:[%s5398_s0 + $0xd8] sm:$0x7f] }
  0x1c   :  { %v2904_v57 = vadd.f32 %v131_v42, %v130_v41  ;;  %v145_v4 = vsel %vm84_vm0, %v40_v23, 0.0  ;;  %v48_v6 = vld [vmem:[%s5398_s0 + $0xe0] sm:$0x7f]  ;;  %v77_v7 = vld [vmem:[%s5398_s0 + $0x1c8] sm:$0x7f]  ;;  %v2930_v8 = vadd.f32 %v140_v61, %v139_v59  ;;  %v146_v9 = vsel %vm84_vm0, %v72_v38, 0.0 }
  0x1d   :  { %v148_v13 = vsel %vm84_vm0, %v41_v29, 0.0  ;;  %v149_v14 = vsel %vm84_vm0, %v73_v46, 0.0  ;;  %v49_v15 = vld [vmem:[%s5398_s0 + $0xe8] sm:$0x7f]  ;;  %v78_v16 = vld [vmem:[%s5398_s0 + $0x1d0] sm:$0x7f]  ;;  %v144_v19 = vadd.f32 %v143_v2, %v142_v1  ;;  %v147_v20 = vadd.f32 %v146_v9, %v145_v4 }
  0x1e   :  { %v79_v18 = vld [vmem:[%s5398_s0 + $0x1d8] sm:$0x7f]  ;;  %v151_v21 = vsel %vm84_vm0, %v42_v37, 0.0  ;;  %v152_v23 = vsel %vm84_vm0, %v74_v53, 0.0  ;;  %v50_v24 = vld [vmem:[%s5398_s0 + $0xf0] sm:$0x7f]  ;;  %v150_v27 = vadd.f32 %v149_v14, %v148_v13 }
  0x1f   :  { %v80_v26 = vld [vmem:[%s5398_s0 + $0x1e0] sm:$0x7f]  ;;  %v154_v28 = vsel %vm84_vm0, %v43_v44, 0.0  ;;  %v155_v29 = vsel %vm84_vm0, %v75_v56, 0.0  ;;  %v157_v30 = vsel %vm84_vm0, %v44_v45, 0.0  ;;  %v153_v34 = vadd.f32 %v152_v23, %v151_v21 }
  0x20   :  { %v81_v31 = vld [vmem:[%s5398_s0 + $0x1e8] sm:$0x7f]  ;;  %v158_v36 = vsel %vm84_vm0, %v76_v63, 0.0  ;;  %v160_v37 = vsel %vm84_vm0, %v45_v52, 0.0  ;;  %v161_v38 = vsel %vm84_vm0, %v77_v7, 0.0  ;;  %v156_v43 = vadd.f32 %v155_v29, %v154_v28 }
  0x21   :  { %v51_v41 = vld [vmem:[%s5398_s0 + $0xf8] sm:$0x7f]  ;;  %v82_v42 = vld [vmem:[%s5398_s0 + $0x1f0] sm:$0x7f]  ;;  %v159_v44 = vadd.f32 %v158_v36, %v157_v30  ;;  %v163_v45 = vsel %vm84_vm0, %v46_v62, 0.0  ;;  %v164_v46 = vsel %vm84_vm0, %v78_v16, 0.0  ;;  %v162_v50 = vadd.f32 %v161_v38, %v160_v37 }
  0x22   :  { %v83_v49 = vld [vmem:[%s5398_s0 + $0x1f8] sm:$0x7f]  ;;  %v166_v51 = vsel %vm84_vm0, %v47_v5, 0.0  ;;  %v167_v52 = vsel %vm84_vm0, %v79_v18, 0.0  ;;  %v169_v53 = vsel %vm84_vm0, %v48_v6, 0.0  ;;  %v165_v56 = vadd.f32 %v164_v46, %v163_v45 }
  0x23   :  { %v170_v59 = vsel %vm84_vm0, %v80_v26, 0.0  ;;  %v172_v61 = vsel %vm84_vm0, %v49_v15, 0.0  ;;  %v173_v62 = vsel %vm84_vm0, %v81_v31, 0.0  ;;  %v168_v63 = vadd.f32 %v167_v52, %v166_v51  ;;  %v218_v52 = vld [vmem:[%s5400_s1 + $0x28] sm:$0x77] }
  0x24   :  { %v171_v1 = vadd.f32 %v170_v59, %v169_v53  ;;  %v175_v2 = vsel %vm84_vm0, %v50_v24, 0.0  ;;  %v176_v4 = vsel %vm84_vm0, %v82_v42, 0.0  ;;  %v174_v7 = vadd.f32 %v173_v62, %v172_v61  ;;  %v214_v61 = vld [vmem:[%s5400_s1 + $0x8] sm:$0x77]  ;;  %v219_v51 = vld [vmem:[%s5400_s1 + $0x30] sm:$0x77] }
  0x25   :  { %v177_v9 = vadd.f32 %v176_v4, %v175_v2  ;;  %v178_v5 = vsel %vm84_vm0, %v51_v41, 0.0  ;;  %v179_v13 = vsel %vm84_vm0, %v83_v49, 0.0  ;;  %v2983_v14 = vmul.f32 0.5, %v2746_v35  ;;  %v221_v62 = vld [vmem:[%s5400_s1 + $0x40] sm:$0x77] }
  0x26   :  { %v180_v6 = vadd.f32 %v179_v13, %v178_v5  ;;  %v2986_v15 = vmul.f32 0.5, %v2756_v40  ;;  %v2989_v16 = vmul.f32 0.5, %v2770_v47  ;;  %v2992_v18 = vmul.f32 0.5, %v2784_v54  ;;  %v213_v5 = vld [vmem:[%s5400_s1] sm:$0x77] }
  0x27   :  { %5542 = vst [vmem:[#allocation3_spill] sm:$0xff] %v2983_v14  ;;  %v2995_v21 = vmul.f32 0.5, %v2786_v55  ;;  %v2998_v23 = vmul.f32 0.5, %v2796_v60  ;;  %v3001_v24 = vmul.f32 0.5, %v2810_v3  ;;  %v3004_v35 = vmul.f32 0.5, %v2824_v10 }
  0x28   :  { %5543 = vst [vmem:[#allocation4_spill] sm:$0xff] %v2986_v15  ;;  %5544 = vst [vmem:[#allocation5_spill] sm:$0xff] %v2989_v16  ;;  %v3007_v40 = vmul.f32 0.5, %v2826_v11  ;;  %v3010_v47 = vmul.f32 0.5, %v2836_v17  ;;  %v3013_v54 = vmul.f32 0.5, %v2850_v25  ;;  %v3016_v55 = vmul.f32 0.5, %v2864_v32 }
  0x29   :  { %5545 = vst [vmem:[#allocation6_spill] sm:$0xff] %v2992_v18  ;;  %5546 = vst [vmem:[#allocation7_spill] sm:$0xff] %v2995_v21  ;;  %v3019_v60 = vmul.f32 0.5, %v2866_v33  ;;  %v3022_v3 = vmul.f32 0.5, %v2876_v39  ;;  %v3025_v10 = vmul.f32 0.5, %v2890_v48  ;;  %v3028_v11 = vmul.f32 0.5, %v2904_v57 }
  0x2a   :  { %5547 = vst [vmem:[#allocation8_spill] sm:$0xff] %v2998_v23  ;;  %5548 = vst [vmem:[#allocation9_spill] sm:$0xff] %v3001_v24  ;;  %v3031_v17 = vmul.f32 0.5, %v2906_v58  ;;  %v3034_v25 = vmul.f32 0.5, %v2916_v0  ;;  %v3037_v32 = vmul.f32 0.5, %v2930_v8  ;;  %v3039_v33 = vmul.f32 0.5, %v144_v19 }
  0x2b   :  { %5549 = vst [vmem:[#allocation10_spill] sm:$0xff] %v3004_v35  ;;  %5550 = vst [vmem:[#allocation11_spill] sm:$0xff] %v3007_v40  ;;  %v3041_v26 = vmul.f32 0.5, %v147_v20  ;;  %v3043_v39 = vmul.f32 0.5, %v150_v27  ;;  %v3045_v48 = vmul.f32 0.5, %v153_v34  ;;  %v3047_v28 = vmul.f32 0.5, %v156_v43 }
  0x2c   :  { %5551 = vst [vmem:[#allocation12_spill] sm:$0xff] %v3010_v47  ;;  %5552 = vst [vmem:[#allocation13_spill] sm:$0xff] %v3013_v54  ;;  %v3049_v57 = vmul.f32 0.5, %v159_v44  ;;  %v3051_v58 = vmul.f32 0.5, %v162_v50  ;;  %v3053_v29 = vmul.f32 0.5, %v165_v56  ;;  %v3055_v0 = vmul.f32 0.5, %v168_v63 }
  0x2d   :  { %5553 = vst [vmem:[#allocation14_spill] sm:$0xff] %v3016_v55  ;;  %5554 = vst [vmem:[#allocation15_spill] sm:$0xff] %v3019_v60  ;;  %v3057_v8 = vmul.f32 0.5, %v171_v1  ;;  %v3059_v19 = vmul.f32 0.5, %v174_v7  ;;  %v3061_v20 = vmul.f32 0.5, %v177_v9  ;;  %v3063_v27 = vmul.f32 0.5, %v180_v6 }
  0x2e   :  { %5555 = vst [vmem:[#allocation16_spill] sm:$0xff] %v3022_v3  ;;  %5556 = vst [vmem:[#allocation17_spill] sm:$0xff] %v3025_v10  ;;  %v3133_v9 = vsub.s32 0, %v2686_v12  ;;  %v3136_v1 = vsub.s32 2, %v2686_v12  ;;  %v3139_v13 = vsub.s32 3, %v2686_v12  ;;  %v3142_v6 = vsub.s32 4, %v2686_v12 }
  0x2f   :  { %5557 = vst [vmem:[#allocation18_spill] sm:$0xff] %v3028_v11  ;;  %5558 = vst [vmem:[#allocation19_spill] sm:$0xff] %v3031_v17  ;;  %v3145_v2 = vsub.s32 5, %v2686_v12  ;;  %v3148_v4 = vsub.s32 6, %v2686_v12  ;;  %v3150_v63 = vclamps-f32 %v213_v5, 1.0 }
  0x30   :  { %5559 = vst [vmem:[#allocation20_spill] sm:$0xff] %v3034_v25  ;;  %5560 = vst [vmem:[#allocation21_spill] sm:$0xff] %v3037_v32  ;;  %v215_v56 = vld [vmem:[%s5400_s1 + $0x10] sm:$0x77]  ;;  %v216_v12 = vld [vmem:[%s5400_s1 + $0x18] sm:$0x77] }
  0x31   :  { %5561 = vst [vmem:[#allocation22_spill] sm:$0xff] %v3039_v33  ;;  %5562 = vst [vmem:[#allocation23_spill] sm:$0xff] %v3041_v26  ;;  %v217_v5 = vld [vmem:[%s5400_s1 + $0x20] sm:$0x77]  ;;  %v220_v7 = vld [vmem:[%s5400_s1 + $0x38] sm:$0x77] }
  0x32   :  { %5563 = vst [vmem:[#allocation24_spill] sm:$0xff] %v3043_v39  ;;  %5564 = vst [vmem:[#allocation25_spill] sm:$0xff] %v3045_v48  ;;  %v222_v46 = vld [vmem:[%s5400_s1 + $0x48] sm:$0x77]  ;;  %v223_v45 = vld [vmem:[%s5400_s1 + $0x50] sm:$0x77] }
  0x33   :  { %5565 = vst [vmem:[#allocation26_spill] sm:$0xff] %v3047_v28  ;;  %5566 = vst [vmem:[#allocation27_spill] sm:$0xff] %v3049_v57  ;;  %v224_v59 = vld [vmem:[%s5400_s1 + $0x58] sm:$0x77]  ;;  %v225_v53 = vld [vmem:[%s5400_s1 + $0x60] sm:$0x77] }
  0x34   :  { %5567 = vst [vmem:[#allocation28_spill] sm:$0xff] %v3051_v58  ;;  %5568 = vst [vmem:[#allocation29_spill] sm:$0xff] %v3053_v29  ;;  %v226_v42 = vld [vmem:[%s5400_s1 + $0x68] sm:$0x77]  ;;  %v227_v41 = vld [vmem:[%s5400_s1 + $0x70] sm:$0x77] }
  0x35   :  { %5569 = vst [vmem:[#allocation30_spill] sm:$0xff] %v3055_v0  ;;  %5570 = vst [vmem:[#allocation31_spill] sm:$0xff] %v3057_v8  ;;  %v228_v50 = vld [vmem:[%s5400_s1 + $0x78] sm:$0x77]  ;;  %v229_v49 = vld [vmem:[%s5400_s1 + $0x80] sm:$0x77] }
  0x36   :  { %5571 = vst [vmem:[#allocation32_spill] sm:$0xff] %v3059_v19  ;;  %5572 = vst [vmem:[#allocation33_spill] sm:$0xff] %v3061_v20  ;;  %v230_v36 = vld [vmem:[%s5400_s1 + $0x88] sm:$0x77]  ;;  %v231_v34 = vld [vmem:[%s5400_s1 + $0x90] sm:$0x77] }
  0x37   :  { %5573 = vst [vmem:[#allocation34_spill] sm:$0xff] %v3063_v27  ;;  %5574 = vst [vmem:[#allocation35_spill] sm:$0xff] %v3133_v9  ;;  %v232_v44 = vld [vmem:[%s5400_s1 + $0x98] sm:$0x77]  ;;  %v233_v43 = vld [vmem:[%s5400_s1 + $0xa0] sm:$0x77] }
  0x38   :  { %5575 = vst [vmem:[#allocation36_spill] sm:$0xff] %v3136_v1  ;;  %5576 = vst [vmem:[#allocation37_spill] sm:$0xff] %v3139_v13  ;;  %v234_v37 = vld [vmem:[%s5400_s1 + $0xa8] sm:$0x77]  ;;  %v235_v38 = vld [vmem:[%s5400_s1 + $0xb0] sm:$0x77] }
  0x39   :  { %5577 = vst [vmem:[#allocation38_spill] sm:$0xff] %v3142_v6  ;;  %5578 = vst [vmem:[#allocation39_spill] sm:$0xff] %v3145_v2  ;;  %v236_v31 = vld [vmem:[%s5400_s1 + $0xb8] sm:$0x77]  ;;  %v237_v30 = vld [vmem:[%s5400_s1 + $0xc0] sm:$0x77] }
  0x3a   :  { %5579 = vst [vmem:[#allocation40_spill] sm:$0xff] %v3148_v4  ;;  %v3288_v4 = vclamps-f32 %v214_v61, 1.0  ;;  %v3290_v2 = vclamps-f32 %v215_v56, 1.0  ;;  %v3292_v6 = vclamps-f32 %v216_v12, 1.0  ;;  %v3294_v9 = vclamps-f32 %v217_v5, 1.0 }
  0x3b   :  { %v238_v22 = vld [vmem:[%s5400_s1 + $0xc8] sm:$0x77]  ;;  %v239_v13 = vld [vmem:[%s5400_s1 + $0xd0] sm:$0x77]  ;;  %v240_v27 = vld [vmem:[%s5400_s1 + $0xd8] sm:$0x77] }
  0x3c   :  { %v241_v56 = vld [vmem:[%s5400_s1 + $0xe0] sm:$0x77]  ;;  %v3308_v61 = vclamps-f32 %v218_v52, 1.0  ;;  %v3310_v12 = vclamps-f32 %v219_v51, 1.0  ;;  %v3312_v5 = vclamps-f32 %v220_v7, 1.0  ;;  %v3314_v20 = vclamps-f32 %v221_v62, 1.0 }
  0x3d   :  { %v242_v19 = vld [vmem:[%s5400_s1 + $0xe8] sm:$0x77]  ;;  %v3319_v8 = vclamps-f32 %v222_v46, 1.0  ;;  %v3321_v0 = vclamps-f32 %v223_v45, 1.0  ;;  %v3323_v29 = vclamps-f32 %v224_v59, 1.0  ;;  %v3325_v58 = vclamps-f32 %v225_v53, 1.0 }
  0x3e   :  { %v243_v51 = vld [vmem:[%s5400_s1 + $0xf0] sm:$0x77]  ;;  %v3330_v52 = vclamps-f32 %v226_v42, 1.0  ;;  %v3332_v62 = vclamps-f32 %v227_v41, 1.0  ;;  %v3334_v7 = vclamps-f32 %v228_v50, 1.0  ;;  %v2604_v57 = vclamps-f32 %v229_v49, 1.0 }
  0x3f   :  { %v244_v45 = vld [vmem:[%s5400_s1 + $0xf8] sm:$0x77]  ;;  %v2605_v46 = vclamps-f32 %v230_v36, 1.0  ;;  %v3339_v59 = vclamps-f32 %v231_v34, 1.0  ;;  %v3341_v53 = vclamps-f32 %v232_v44, 1.0  ;;  %v3343_v28 = vclamps-f32 %v233_v43, 1.0 }
  0x40   :  { %v3345_v48 = vclamps-f32 %v234_v37, 1.0  ;;  %v3347_v42 = vclamps-f32 %v235_v38, 1.0  ;;  %v3349_v41 = vclamps-f32 %v236_v31, 1.0  ;;  %v3351_v50 = vclamps-f32 %v237_v30, 1.0 }
  0x41   :  { %v3353_v49 = vclamps-f32 %v238_v22, 1.0  ;;  %v3355_v39 = vclamps-f32 %v239_v13, 1.0  ;;  %v3357_v26 = vclamps-f32 %v240_v27, 1.0  ;;  %v3359_v34 = vclamps-f32 %v241_v56, 1.0 }
  0x42   :  { %v3361_v36 = vclamps-f32 %v242_v19, 1.0  ;;  %v3363_v43 = vclamps-f32 %v243_v51, 1.0  ;;  %v3365_v37 = vclamps-f32 %v244_v45, 1.0  ;;  %v341_v31 = vcombine.high %v3150_v63, %v3150_v63 }
  0x43   :  { %v342_v30 = vcombine.high %v3288_v4, %v3288_v4  ;;  %v343_v22 = vcombine.high %v3290_v2, %v3290_v2  ;;  %v344_v27 = vcombine.high %v3292_v6, %v3292_v6  ;;  %v345_v19 = vcombine.high %v3294_v9, %v3294_v9 }
  0x44   :  { %v346_v38 = vcombine.high %v3308_v61, %v3308_v61  ;;  %v357_v25 = vcombine.high %v2604_v57, %v2604_v57  ;;  %v358_v51 = vcombine.high %v2605_v46, %v2605_v46  ;;  %v359_v45 = vcombine.high %v3339_v59, %v3339_v59 }
  0x45   :  { %v360_v33 = vcombine.high %v3341_v53, %v3341_v53  ;;  %v361_v32 = vcombine.high %v3343_v28, %v3343_v28  ;;  %v362_v44 = vcombine.high %v3345_v48, %v3345_v48  ;;  %v363_v13 = vcombine.high %v3347_v42, %v3347_v42 }
  0x46   :  { %v364_v56 = vcombine.high %v3349_v41, %v3349_v41  ;;  %v365_v17 = vcombine.high %v3351_v50, %v3351_v50  ;;  %v406_v11 = vsel %vm405_vm1, %v3150_v63, 0.0  ;;  %v407_v10 = vsel %vm405_vm1, %v2604_v57, 0.0 }
  0x47   :  { %v409_v40 = vsel %vm405_vm1, %v341_v31, 0.0  ;;  %v410_v3 = vsel %vm405_vm1, %v357_v25, 0.0  ;;  %v412_v60 = vsel %vm405_vm1, %v3288_v4, 0.0  ;;  %v3434_v35 = vadd.f32 %v407_v10, %v406_v11 }
  0x48   :  { %v3436_v55 = vadd.f32 %v410_v3, %v409_v40  ;;  %v413_v54 = vsel %vm405_vm1, %v2605_v46, 0.0  ;;  %v415_v47 = vsel %vm405_vm1, %v342_v30, 0.0  ;;  %v416_v63 = vsel %vm405_vm1, %v358_v51, 0.0 }
  0x49   :  { %v3440_v24 = vadd.f32 %v413_v54, %v412_v60  ;;  %v418_v57 = vsel %vm405_vm1, %v3290_v2, 0.0  ;;  %v419_v25 = vsel %vm405_vm1, %v3339_v59, 0.0  ;;  %v3447_v31 = vadd.f32 %v416_v63, %v415_v47 }
  0x4a   :  { %v3449_v10 = vadd.f32 %v419_v25, %v418_v57  ;;  %v421_v40 = vsel %vm405_vm1, %v343_v22, 0.0  ;;  %v422_v3 = vsel %vm405_vm1, %v359_v45, 0.0  ;;  %v424_v54 = vsel %vm405_vm1, %v3292_v6, 0.0 }
  0x4b   :  { %v3453_v11 = vadd.f32 %v422_v3, %v421_v40  ;;  %v425_v60 = vsel %vm405_vm1, %v3341_v53, 0.0  ;;  %v427_v2 = vsel %vm405_vm1, %v344_v27, 0.0  ;;  %v428_v47 = vsel %vm405_vm1, %v360_v33, 0.0 }
  0x4c   :  { %v3460_v4 = vadd.f32 %v425_v60, %v424_v54  ;;  %v430_v46 = vsel %vm405_vm1, %v3294_v9, 0.0  ;;  %v431_v59 = vsel %vm405_vm1, %v3343_v28, 0.0  ;;  %v3467_v30 = vadd.f32 %v428_v47, %v427_v2 }
  0x4d   :  { %v3469_v22 = vadd.f32 %v431_v59, %v430_v46  ;;  %v433_v6 = vsel %vm405_vm1, %v345_v19, 0.0  ;;  %v434_v53 = vsel %vm405_vm1, %v361_v32, 0.0  ;;  %v436_v27 = vsel %vm405_vm1, %v3308_v61, 0.0 }
  0x4e   :  { %v3473_v51 = vadd.f32 %v434_v53, %v433_v6  ;;  %v437_v33 = vsel %vm405_vm1, %v3345_v48, 0.0  ;;  %v439_v9 = vsel %vm405_vm1, %v346_v38, 0.0  ;;  %v440_v28 = vsel %vm405_vm1, %v362_v44, 0.0 }
  0x4f   :  { %v3480_v45 = vadd.f32 %v437_v33, %v436_v27  ;;  %v442_v63 = vsel %vm405_vm1, %v3310_v12, 0.0  ;;  %v443_v32 = vsel %vm405_vm1, %v3347_v42, 0.0  ;;  %v3487_v19 = vadd.f32 %v440_v28, %v439_v9 }
  0x50   :  { %v3489_v57 = vadd.f32 %v443_v32, %v442_v63  ;;  %v5580_v61 = vcombine.high %v3310_v12, %v3310_v12  ;;  %v446_v38 = vsel %vm405_vm1, %v363_v13, 0.0  ;;  %v448_v44 = vsel %vm405_vm1, %v3312_v5, 0.0 }
  0x51   :  { %v449_v40 = vsel %vm405_vm1, %v3349_v41, 0.0  ;;  %v5581_v42 = vcombine.high %v3312_v5, %v3312_v5  ;;  %v452_v12 = vsel %vm405_vm1, %v364_v56, 0.0  ;;  %v454_v13 = vsel %vm405_vm1, %v3314_v20, 0.0 }
  0x52   :  { %v445_v48 = vsel %vm405_vm1, %v5580_v61, 0.0  ;;  %v3506_v54 = vadd.f32 %v449_v40, %v448_v44  ;;  %v455_v60 = vsel %vm405_vm1, %v3351_v50, 0.0  ;;  %v5582_v41 = vcombine.high %v3314_v20, %v3314_v20 }
  0x53   :  { %v3496_v25 = vadd.f32 %v446_v38, %v445_v48  ;;  %v451_v3 = vsel %vm405_vm1, %v5581_v42, 0.0  ;;  %v456_v47 = vadd.f32 %v455_v60, %v454_v13  ;;  %v458_v5 = vsel %vm405_vm1, %v365_v17, 0.0 }
  0x54   :  { %v453_v2 = vadd.f32 %v452_v12, %v451_v3  ;;  %v457_v46 = vsel %vm405_vm1, %v5582_v41, 0.0  ;;  %v460_v6 = vsel %vm405_vm1, %v3319_v8, 0.0  ;;  %v461_v56 = vsel %vm405_vm1, %v3353_v49, 0.0 }
  0x55   :  { %v459_v59 = vadd.f32 %v458_v5, %v457_v46  ;;  %v5583_v53 = vcombine.high %v3319_v8, %v3319_v8  ;;  %v462_v27 = vadd.f32 %v461_v56, %v460_v6  ;;  %v5584_v20 = vcombine.high %v3353_v49, %v3353_v49 }
  0x56   :  { %v466_v17 = vsel %vm405_vm1, %v3321_v0, 0.0  ;;  %v467_v9 = vsel %vm405_vm1, %v3355_v39, 0.0  ;;  %v5585_v32 = vcombine.high %v3321_v0, %v3321_v0  ;;  %v5586_v61 = vcombine.high %v3355_v39, %v3355_v39 }
  0x57   :  { %v463_v50 = vsel %vm405_vm1, %v5583_v53, 0.0  ;;  %v464_v33 = vsel %vm405_vm1, %v5584_v20, 0.0  ;;  %v468_v63 = vadd.f32 %v467_v9, %v466_v17  ;;  %v472_v38 = vsel %vm405_vm1, %v3323_v29, 0.0 }
  0x58   :  { %v465_v28 = vadd.f32 %v464_v33, %v463_v50  ;;  %v469_v8 = vsel %vm405_vm1, %v5585_v32, 0.0  ;;  %v470_v49 = vsel %vm405_vm1, %v5586_v61, 0.0  ;;  %v473_v44 = vsel %vm405_vm1, %v3357_v26, 0.0 }
  0x59   :  { %v471_v48 = vadd.f32 %v470_v49, %v469_v8  ;;  %v5587_v40 = vcombine.high %v3323_v29, %v3323_v29  ;;  %v474_v0 = vadd.f32 %v473_v44, %v472_v38  ;;  %v5588_v3 = vcombine.high %v3357_v26, %v3357_v26 }
  0x5a   :  { %v478_v12 = vsel %vm405_vm1, %v3325_v58, 0.0  ;;  %v479_v13 = vsel %vm405_vm1, %v3359_v34, 0.0  ;;  %v5589_v46 = vcombine.high %v3325_v58, %v3325_v58  ;;  %v5590_v5 = vcombine.high %v3359_v34, %v3359_v34 }
  0x5b   :  { %v475_v42 = vsel %vm405_vm1, %v5587_v40, 0.0  ;;  %v476_v39 = vsel %vm405_vm1, %v5588_v3, 0.0  ;;  %v480_v41 = vadd.f32 %v479_v13, %v478_v12  ;;  %v484_v56 = vsel %vm405_vm1, %v3330_v52, 0.0 }
  0x5c   :  { %v477_v60 = vadd.f32 %v476_v39, %v475_v42  ;;  %v481_v29 = vsel %vm405_vm1, %v5589_v46, 0.0  ;;  %v482_v26 = vsel %vm405_vm1, %v5590_v5, 0.0  ;;  %v485_v53 = vsel %vm405_vm1, %v3361_v36, 0.0 }
  0x5d   :  { %v483_v6 = vadd.f32 %v482_v26, %v481_v29  ;;  %v5591_v50 = vcombine.high %v3330_v52, %v3330_v52  ;;  %v486_v58 = vadd.f32 %v485_v53, %v484_v56  ;;  %v5592_v33 = vcombine.high %v3361_v36, %v3361_v36 }
  0x5e   :  { %v490_v17 = vsel %vm405_vm1, %v3332_v62, 0.0  ;;  %v491_v9 = vsel %vm405_vm1, %v3363_v43, 0.0  ;;  %v5593_v61 = vcombine.high %v3332_v62, %v3332_v62  ;;  %v5594_v49 = vcombine.high %v3363_v43, %v3363_v43 }
  0x5f   :  { %v487_v20 = vsel %vm405_vm1, %v5591_v50, 0.0  ;;  %v488_v34 = vsel %vm405_vm1, %v5592_v33, 0.0  ;;  %v492_v8 = vadd.f32 %v491_v9, %v490_v17  ;;  %v496_v44 = vsel %vm405_vm1, %v3334_v7, 0.0  ;;  %v5629_v33 = vld [vmem:[#allocation9_spill] sm:$0xff]  ;;  %v5630_v17 = vld [vmem:[#allocation10_spill] sm:$0xff] }
  0x60   :  { %v489_v32 = vadd.f32 %v488_v34, %v487_v20  ;;  %v493_v52 = vsel %vm405_vm1, %v5593_v61, 0.0  ;;  %v494_v36 = vsel %vm405_vm1, %v5594_v49, 0.0  ;;  %v497_v40 = vsel %vm405_vm1, %v3365_v37, 0.0  ;;  %v5632_v61 = vld [vmem:[#allocation12_spill] sm:$0xff]  ;;  %v5633_v49 = vld [vmem:[#allocation13_spill] sm:$0xff]  ;;  %v5646_v9 = vld [vmem:[#allocation26_spill] sm:$0xff] }
  0x61   :  { %v495_v38 = vadd.f32 %v494_v36, %v493_v52  ;;  %v5595_v42 = vcombine.high %v3334_v7, %v3334_v7  ;;  %v498_v62 = vadd.f32 %v497_v40, %v496_v44  ;;  %v5596_v39 = vcombine.high %v3365_v37, %v3365_v37  ;;  %v5635_v40 = vld [vmem:[#allocation15_spill] sm:$0xff]  ;;  %v5640_v36 = vld [vmem:[#allocation20_spill] sm:$0xff]  ;;  %v5641_v44 = vld [vmem:[#allocation21_spill] sm:$0xff] }
  0x62   :  { %v3603_v12 = vmul.f32 0.5, %v3434_v35  ;;  %v3606_v13 = vmul.f32 0.5, %v3436_v55  ;;  %v3609_v29 = vmul.f32 0.5, %v3440_v24  ;;  %v3612_v7 = vmul.f32 0.5, %v3447_v31  ;;  %v5639_v52 = vld [vmem:[#allocation19_spill] sm:$0xff]  ;;  %v5649_v20 = vld [vmem:[#allocation29_spill] sm:$0xff] }
  0x63   :  { %v499_v3 = vsel %vm405_vm1, %v5595_v42, 0.0  ;;  %v500_v43 = vsel %vm405_vm1, %v5596_v39, 0.0  ;;  %v3615_v5 = vmul.f32 0.5, %v3449_v10  ;;  %v3618_v37 = vmul.f32 0.5, %v3453_v11  ;;  %v5637_v39 = vld [vmem:[#allocation17_spill] sm:$0xff]  ;;  %v5642_v42 = vld [vmem:[#allocation22_spill] sm:$0xff] }
  0x64   :  { %5597 = vst [vmem:[#allocation41_spill] sm:$0xff] %v3603_v12  ;;  %5598 = vst [vmem:[#allocation42_spill] sm:$0xff] %v3606_v13  ;;  %v501_v46 = vadd.f32 %v500_v43, %v499_v3  ;;  %v3621_v26 = vmul.f32 0.5, %v3460_v4  ;;  %v3624_v35 = vmul.f32 0.5, %v3467_v30  ;;  %v3627_v55 = vmul.f32 0.5, %v3469_v22  ;;  %v5636_v3 = vld [vmem:[#allocation16_spill] sm:$0xff] }
  0x65   :  { %5599 = vst [vmem:[#allocation43_spill] sm:$0xff] %v3609_v29  ;;  %5600 = vst [vmem:[#allocation44_spill] sm:$0xff] %v3612_v7  ;;  %v3630_v24 = vmul.f32 0.5, %v3473_v51  ;;  %v3633_v31 = vmul.f32 0.5, %v3480_v45  ;;  %v3636_v10 = vmul.f32 0.5, %v3487_v19  ;;  %v3639_v11 = vmul.f32 0.5, %v3489_v57 }
  0x66   :  { %5601 = vst [vmem:[#allocation45_spill] sm:$0xff] %v3615_v5  ;;  %5602 = vst [vmem:[#allocation46_spill] sm:$0xff] %v3618_v37  ;;  %v3642_v4 = vmul.f32 0.5, %v3496_v25  ;;  %v3645_v30 = vmul.f32 0.5, %v3506_v54  ;;  %v3647_v22 = vmul.f32 0.5, %v453_v2  ;;  %v3649_v56 = vmul.f32 0.5, %v456_v47 }
  0x67   :  { %5603 = vst [vmem:[#allocation47_spill] sm:$0xff] %v3621_v26  ;;  %5604 = vst [vmem:[#allocation48_spill] sm:$0xff] %v3624_v35  ;;  %v3651_v51 = vmul.f32 0.5, %v459_v59  ;;  %v3653_v45 = vmul.f32 0.5, %v462_v27  ;;  %v3655_v53 = vmul.f32 0.5, %v465_v28  ;;  %v3657_v19 = vmul.f32 0.5, %v468_v63 }
  0x68   :  { %5605 = vst [vmem:[#allocation49_spill] sm:$0xff] %v3627_v55  ;;  %5606 = vst [vmem:[#allocation50_spill] sm:$0xff] %v3630_v24  ;;  %v3659_v57 = vmul.f32 0.5, %v471_v48  ;;  %v3661_v50 = vmul.f32 0.5, %v474_v0  ;;  %v3663_v25 = vmul.f32 0.5, %v477_v60  ;;  %v3665_v54 = vmul.f32 0.5, %v480_v41 }
  0x69   :  { %5607 = vst [vmem:[#allocation51_spill] sm:$0xff] %v3633_v31  ;;  %5608 = vst [vmem:[#allocation52_spill] sm:$0xff] %v3636_v10  ;;  %v3667_v2 = vmul.f32 0.5, %v483_v6  ;;  %v3669_v47 = vmul.f32 0.5, %v486_v58  ;;  %v3671_v59 = vmul.f32 0.5, %v489_v32  ;;  %v3673_v27 = vmul.f32 0.5, %v492_v8 }
  0x6a   :  { %5609 = vst [vmem:[#allocation53_spill] sm:$0xff] %v3639_v11  ;;  %5610 = vst [vmem:[#allocation54_spill] sm:$0xff] %v3642_v4  ;;  %v3675_v28 = vmul.f32 0.5, %v495_v38  ;;  %v3677_v63 = vmul.f32 0.5, %v498_v62  ;;  %v3679_v48 = vmul.f32 0.5, %v501_v46  ;;  %v5631_v32 = vld [vmem:[#allocation11_spill] sm:$0xff] }
  0x6b   :  { %5611 = vst [vmem:[#allocation55_spill] sm:$0xff] %v3645_v30  ;;  %5612 = vst [vmem:[#allocation56_spill] sm:$0xff] %v3647_v22  ;;  %v5634_v38 = vld [vmem:[#allocation14_spill] sm:$0xff]  ;;  %v5643_v62 = vld [vmem:[#allocation23_spill] sm:$0xff] }
  0x6c   :  { %5613 = vst [vmem:[#allocation57_spill] sm:$0xff] %v3649_v56  ;;  %5614 = vst [vmem:[#allocation58_spill] sm:$0xff] %v3651_v51  ;;  %v5638_v46 = vld [vmem:[#allocation18_spill] sm:$0xff]  ;;  %v5644_v43 = vld [vmem:[#allocation24_spill] sm:$0xff] }
  0x6d   :  { %5615 = vst [vmem:[#allocation59_spill] sm:$0xff] %v3653_v45  ;;  %5616 = vst [vmem:[#allocation60_spill] sm:$0xff] %v3655_v53  ;;  %v5645_v8 = vld [vmem:[#allocation25_spill] sm:$0xff]  ;;  %v5647_v34 = vld [vmem:[#allocation27_spill] sm:$0xff] }
  0x6e   :  { %5617 = vst [vmem:[#allocation61_spill] sm:$0xff] %v3657_v19  ;;  %5618 = vst [vmem:[#allocation62_spill] sm:$0xff] %v3659_v57  ;;  %v5648_v58 = vld [vmem:[#allocation28_spill] sm:$0xff]  ;;  %v5650_v6 = vld [vmem:[#allocation30_spill] sm:$0xff] }
  0x6f   :  { %5619 = vst [vmem:[#allocation63_spill] sm:$0xff] %v3661_v50  ;;  %5620 = vst [vmem:[#allocation64_spill] sm:$0xff] %v3663_v25  ;;  %v5651_v41 = vld [vmem:[#allocation31_spill] sm:$0xff]  ;;  %v5652_v60 = vld [vmem:[#allocation32_spill] sm:$0xff] }
  0x70   :  { %5621 = vst [vmem:[#allocation65_spill] sm:$0xff] %v3665_v54  ;;  %5622 = vst [vmem:[#allocation66_spill] sm:$0xff] %v3667_v2  ;;  %v5653_v0 = vld [vmem:[#allocation33_spill] sm:$0xff] }
  0x71   :  { %5623 = vst [vmem:[#allocation67_spill] sm:$0xff] %v3669_v47  ;;  %5624 = vst [vmem:[#allocation68_spill] sm:$0xff] %v3671_v59 }
  0x72   :  { %5625 = vst [vmem:[#allocation69_spill] sm:$0xff] %v3673_v27  ;;  %5626 = vst [vmem:[#allocation70_spill] sm:$0xff] %v3675_v28  ;;  %v5656_v28 = vld [vmem:[#allocation2_spill] sm:$0xff] }
  0x73   :  { %5627 = vst [vmem:[#allocation71_spill] sm:$0xff] %v3677_v63  ;;  %5628 = vst [vmem:[#allocation72_spill] sm:$0xff] %v3679_v48  ;;  %v5654_v48 = vld [vmem:[#allocation34_spill] sm:$0xff]  ;;  %v5657_v57 = vrot.slane %v2983_v14, %v5656_v28  ;;  %v5658_v59 = vrot.slane %v2986_v15, %v5656_v28  ;;  %v5659_v2 = vrot.slane %v2989_v16, %v5656_v28 }
  0x74   :  { %v5660_v25 = vrot.slane %v2992_v18, %v5656_v28  ;;  %v5661_v50 = vrot.slane %v2995_v21, %v5656_v28  ;;  %v5662_v45 = vrot.slane %v2998_v23, %v5656_v28  ;;  %v5663_v51 = vrot.slane %v5629_v33, %v5656_v28 }
  0x75   :  { %v5664_v56 = vrot.slane %v5630_v17, %v5656_v28  ;;  %v5665_v22 = vrot.slane %v5631_v32, %v5656_v28  ;;  %v5666_v30 = vrot.slane %v5632_v61, %v5656_v28  ;;  %v5668_v4 = vrot.slane %v5633_v49, %v5656_v28 }
  0x76   :  { %v5670_v11 = vrot.slane %v5634_v38, %v5656_v28  ;;  %v5672_v10 = vrot.slane %v5635_v40, %v5656_v28  ;;  %v5674_v31 = vrot.slane %v5636_v3, %v5656_v28  ;;  %v5676_v24 = vrot.slane %v5637_v39, %v5656_v28 }
  0x77   :  { %v5678_v55 = vrot.slane %v5638_v46, %v5656_v28  ;;  %v5680_v35 = vrot.slane %v5639_v52, %v5656_v28  ;;  %v5682_v26 = vrot.slane %v5640_v36, %v5656_v28  ;;  %v5684_v37 = vrot.slane %v5641_v44, %v5656_v28 }
  0x78   :  { %v5686_v5 = vrot.slane %v5642_v42, %v5656_v28  ;;  %v5688_v7 = vrot.slane %v5643_v62, %v5656_v28  ;;  %v5690_v29 = vrot.slane %v5644_v43, %v5656_v28  ;;  %v5692_v13 = vrot.slane %v5645_v8, %v5656_v28 }
  0x79   :  { %v5694_v12 = vrot.slane %v5646_v9, %v5656_v28  ;;  %v5696_v63 = vrot.slane %v5647_v34, %v5656_v28  ;;  %v5698_v1 = vrot.slane %v5648_v58, %v5656_v28 }
  0x81   :  { %v741_v47 = vpop.permute.xlu1 %740 }
  0x82   :  { %v3750_v27 = vmul.f32 %v5657_v57, %v741_v47  ;;  %v3755_v19 = vmul.f32 %v5658_v59, %v741_v47  ;;  %v3760_v54 = vmul.f32 %v5659_v2, %v741_v47  ;;  %v3765_v53 = vmul.f32 %v5660_v25, %v741_v47 }
  0x83   :  { %v3770_v57 = vmul.f32 %v5661_v50, %v741_v47  ;;  %v3775_v59 = vmul.f32 %v5662_v45, %v741_v47  ;;  %v3780_v2 = vmul.f32 %v5663_v51, %v741_v47  ;;  %v3785_v25 = vmul.f32 %v5664_v56, %v741_v47 }
  0x84   :  { %v3790_v50 = vmul.f32 %v5665_v22, %v741_v47  ;;  %v3795_v45 = vmul.f32 %v5666_v30, %v741_v47  ;;  %v3800_v51 = vmul.f32 %v5668_v4, %v741_v47  ;;  %v3805_v56 = vmul.f32 %v5670_v11, %v741_v47 }
  0x85   :  { %v3810_v22 = vmul.f32 %v5672_v10, %v741_v47  ;;  %v3815_v30 = vmul.f32 %v5674_v31, %v741_v47  ;;  %v3820_v4 = vmul.f32 %v5676_v24, %v741_v47  ;;  %v3825_v11 = vmul.f32 %v5678_v55, %v741_v47 }
  0x86   :  { %5667 = vst [vmem:[#allocation73_spill] sm:$0xff] %v3795_v45  ;;  %5669 = vst [vmem:[#allocation74_spill] sm:$0xff] %v3800_v51  ;;  %v3830_v10 = vmul.f32 %v5680_v35, %v741_v47  ;;  %v3835_v31 = vmul.f32 %v5682_v26, %v741_v47  ;;  %v3840_v24 = vmul.f32 %v5684_v37, %v741_v47 }
  0x87   :  { %5671 = vst [vmem:[#allocation75_spill] sm:$0xff] %v3805_v56  ;;  %5673 = vst [vmem:[#allocation76_spill] sm:$0xff] %v3810_v22  ;;  %v3845_v55 = vmul.f32 %v5686_v5, %v741_v47  ;;  %v3850_v35 = vmul.f32 %v5688_v7, %v741_v47  ;;  %v3855_v26 = vmul.f32 %v5690_v29, %v741_v47 }
  0x88   :  { %5675 = vst [vmem:[#allocation77_spill] sm:$0xff] %v3815_v30  ;;  %5677 = vst [vmem:[#allocation78_spill] sm:$0xff] %v3820_v4  ;;  %v3860_v37 = vmul.f32 %v5692_v13, %v741_v47  ;;  %v3865_v5 = vmul.f32 %v5694_v12, %v741_v47  ;;  %v3870_v7 = vmul.f32 %v5696_v63, %v741_v47 }
  0x89   :  { %5679 = vst [vmem:[#allocation79_spill] sm:$0xff] %v3825_v11  ;;  %5681 = vst [vmem:[#allocation80_spill] sm:$0xff] %v3830_v10  ;;  %v3875_v29 = vmul.f32 %v5698_v1, %v741_v47 }
  0x8a   :  { %5683 = vst [vmem:[#allocation81_spill] sm:$0xff] %v3835_v31  ;;  %5685 = vst [vmem:[#allocation82_spill] sm:$0xff] %v3840_v24 }
  0x8b   :  { %5687 = vst [vmem:[#allocation83_spill] sm:$0xff] %v3845_v55  ;;  %5689 = vst [vmem:[#allocation84_spill] sm:$0xff] %v3850_v35  ;;  %v5712_v35 = vld [vmem:[#allocation35_spill] sm:$0xff] }
  0x8c   :  { %5691 = vst [vmem:[#allocation85_spill] sm:$0xff] %v3855_v26  ;;  %5693 = vst [vmem:[#allocation86_spill] sm:$0xff] %v3860_v37  ;;  %v5700_v26 = vrot.slane %v5649_v20, %v5656_v28  ;;  %v5702_v37 = vrot.slane %v5650_v6, %v5656_v28  ;;  %v5714_v55 = vrot.slane %v2986_v15, %v5712_v35 }
  0x8d   :  { %5695 = vst [vmem:[#allocation87_spill] sm:$0xff] %v3865_v5  ;;  %5697 = vst [vmem:[#allocation88_spill] sm:$0xff] %v3870_v7  ;;  %v5704_v5 = vrot.slane %v5651_v41, %v5656_v28  ;;  %v5706_v7 = vrot.slane %v5652_v60, %v5656_v28  ;;  %v5719_v15 = vrot.slane %v5629_v33, %v5712_v35 }
  0x8e   :  { %5699 = vst [vmem:[#allocation89_spill] sm:$0xff] %v3875_v29  ;;  %v3880_v13 = vmul.f32 %v5700_v26, %v741_v47  ;;  %v3885_v12 = vmul.f32 %v5702_v37, %v741_v47  ;;  %v5708_v29 = vrot.slane %v5653_v0, %v5656_v28  ;;  %v5724_v33 = vrot.slane %v5634_v38, %v5712_v35 }
  0x8f   :  { %v3890_v63 = vmul.f32 %v5704_v5, %v741_v47  ;;  %v3895_v1 = vmul.f32 %v5706_v7, %v741_v47  ;;  %v5713_v5 = vrot.slane %v2983_v14, %v5712_v35  ;;  %v5729_v38 = vrot.slane %v5639_v52, %v5712_v35 }
  0x90   :  { %5701 = vst [vmem:[#allocation90_spill] sm:$0xff] %v3880_v13  ;;  %5703 = vst [vmem:[#allocation91_spill] sm:$0xff] %v3885_v12  ;;  %v3900_v26 = vmul.f32 %v5708_v29, %v741_v47  ;;  %v5710_v13 = vrot.slane %v5654_v48, %v5656_v28  ;;  %v545_v12 = vpop.permute.xlu0 %544  ;;  %v5716_v29 = vrot.slane %v2992_v18, %v5712_v35 }
  0x91   :  { %5705 = vst [vmem:[#allocation92_spill] sm:$0xff] %v3890_v63  ;;  %5707 = vst [vmem:[#allocation93_spill] sm:$0xff] %v3895_v1  ;;  %v675_v63 = vmul.f32 %v5713_v5, %v545_v12  ;;  %v676_v7 = vmul.f32 %v5714_v55, %v545_v12  ;;  %v5715_v1 = vrot.slane %v2989_v16, %v5712_v35 }
  0x92   :  { %5709 = vst [vmem:[#allocation94_spill] sm:$0xff] %v3900_v26  ;;  %v3905_v37 = vmul.f32 %v5710_v13, %v741_v47  ;;  %v678_v26 = vmul.f32 %v5716_v29, %v545_v12  ;;  %v5717_v47 = vrot.slane %v2995_v21, %v5712_v35  ;;  %v5718_v28 = vrot.slane %v2998_v23, %v5712_v35 }
  0x93   :  { %v677_v24 = vmul.f32 %v5715_v1, %v545_v12  ;;  %v681_v55 = vmul.f32 %v5719_v15, %v545_v12  ;;  %v5720_v16 = vrot.slane %v5630_v17, %v5712_v35  ;;  %v5721_v18 = vrot.slane %v5631_v32, %v5712_v35 }
  0x94   :  { %5711 = vst [vmem:[#allocation95_spill] sm:$0xff] %v3905_v37  ;;  %v679_v13 = vmul.f32 %v5717_v47, %v545_v12  ;;  %v680_v5 = vmul.f32 %v5718_v28, %v545_v12  ;;  %v5722_v21 = vrot.slane %v5632_v61, %v5712_v35  ;;  %v5723_v23 = vrot.slane %v5633_v49, %v5712_v35  ;;  %v540_v14 = vpop.permute.xlu0 %539 }
  0x95   :  { %v682_v1 = vmul.f32 %v5720_v16, %v545_v12  ;;  %v683_v29 = vmul.f32 %v5721_v18, %v545_v12  ;;  %v686_v15 = vmul.f32 %v5724_v33, %v545_v12  ;;  %v5725_v17 = vrot.slane %v5635_v40, %v5712_v35 }
  0x96   :  { %v684_v47 = vmul.f32 %v5722_v21, %v545_v12  ;;  %v685_v28 = vmul.f32 %v5723_v23, %v545_v12  ;;  %v5726_v32 = vrot.slane %v5636_v3, %v5712_v35  ;;  %v5727_v61 = vrot.slane %v5637_v39, %v5712_v35 }
  0x97   :  { %v687_v16 = vmul.f32 %v5725_v17, %v545_v12  ;;  %v5728_v49 = vrot.slane %v5638_v46, %v5712_v35  ;;  %v691_v33 = vmul.f32 %v5729_v38, %v545_v12  ;;  %v5730_v40 = vrot.slane %v5640_v36, %v5712_v35 }
  0x98   :  { %v688_v18 = vmul.f32 %v5726_v32, %v545_v12  ;;  %v689_v21 = vmul.f32 %v5727_v61, %v545_v12  ;;  %v5731_v3 = vrot.slane %v5641_v44, %v5712_v35  ;;  %v5732_v39 = vrot.slane %v5642_v42, %v5712_v35 }
  0x99   :  { %v690_v23 = vmul.f32 %v5728_v49, %v545_v12  ;;  %v692_v17 = vmul.f32 %v5730_v40, %v545_v12  ;;  %v5733_v46 = vrot.slane %v5643_v62, %v5712_v35  ;;  %v5734_v52 = vrot.slane %v5644_v43, %v5712_v35 }
  0x9a   :  { %v693_v32 = vmul.f32 %v5731_v3, %v545_v12  ;;  %v694_v61 = vmul.f32 %v5732_v39, %v545_v12  ;;  %v5735_v36 = vrot.slane %v5645_v8, %v5712_v35  ;;  %v5736_v44 = vrot.slane %v5646_v9, %v5712_v35 }
  0x9b   :  { %v695_v49 = vmul.f32 %v5733_v46, %v545_v12  ;;  %v696_v38 = vmul.f32 %v5734_v52, %v545_v12  ;;  %v5737_v39 = vrot.slane %v5647_v34, %v5712_v35  ;;  %v5738_v46 = vrot.slane %v5648_v58, %v5712_v35 }
  0x9c   :  { %v697_v40 = vmul.f32 %v5735_v36, %v545_v12  ;;  %v698_v3 = vmul.f32 %v5736_v44, %v545_v12  ;;  %v5739_v52 = vrot.slane %v5649_v20, %v5712_v35  ;;  %v5740_v36 = vrot.slane %v5650_v6, %v5712_v35 }
  0x9d   :  { %v699_v42 = vmul.f32 %v5737_v39, %v545_v12  ;;  %v700_v62 = vmul.f32 %v5738_v46, %v545_v12  ;;  %v5741_v44 = vrot.slane %v5651_v41, %v5712_v35  ;;  %v5742_v34 = vrot.slane %v5652_v60, %v5712_v35 }
  0x9e   :  { %v701_v43 = vmul.f32 %v5739_v52, %v545_v12  ;;  %v702_v8 = vmul.f32 %v5740_v36, %v545_v12  ;;  %v5743_v58 = vrot.slane %v5653_v0, %v5712_v35  ;;  %v5744_v20 = vrot.slane %v5654_v48, %v5712_v35 }
  0x9f   :  { %v703_v9 = vmul.f32 %v5741_v44, %v545_v12  ;;  %v704_v39 = vmul.f32 %v5742_v34, %v545_v12  ;;  %v707_v37 = vadd.f32 %v675_v63, %v540_v14  ;;  %v708_v31 = vadd.f32 %v676_v7, %v540_v14 }
  0xa0   :  { %v705_v46 = vmul.f32 %v5743_v58, %v545_v12  ;;  %v706_v52 = vmul.f32 %v5744_v20, %v545_v12  ;;  %v709_v6 = vadd.f32 %v677_v24, %v540_v14  ;;  %v710_v36 = vadd.f32 %v678_v26, %v540_v14 }
  0xa1   :  { %v711_v10 = vadd.f32 %v679_v13, %v540_v14  ;;  %v712_v11 = vadd.f32 %v680_v5, %v540_v14  ;;  %v713_v41 = vadd.f32 %v681_v55, %v540_v14  ;;  %v714_v44 = vadd.f32 %v682_v1, %v540_v14 }
  0xa2   :  { %v715_v4 = vadd.f32 %v683_v29, %v540_v14  ;;  %v716_v30 = vadd.f32 %v684_v47, %v540_v14  ;;  %v717_v60 = vadd.f32 %v685_v28, %v540_v14  ;;  %v718_v34 = vadd.f32 %v686_v15, %v540_v14 }
  0xa3   :  { %v719_v22 = vadd.f32 %v687_v16, %v540_v14  ;;  %v720_v56 = vadd.f32 %v688_v18, %v540_v14  ;;  %v721_v0 = vadd.f32 %v689_v21, %v540_v14  ;;  %v722_v58 = vadd.f32 %v690_v23, %v540_v14 }
  0xa4   :  { %v723_v51 = vadd.f32 %v691_v33, %v540_v14  ;;  %v724_v45 = vadd.f32 %v692_v17, %v540_v14  ;;  %v725_v35 = vadd.f32 %v693_v32, %v540_v14  ;;  %v726_v20 = vadd.f32 %v694_v61, %v540_v14  ;;  %v5757_v17 = vld [vmem:[#allocation84_spill] sm:$0xff] }
  0xa5   :  { %v727_v12 = vadd.f32 %v695_v49, %v540_v14  ;;  %v728_v63 = vadd.f32 %v696_v38, %v540_v14  ;;  %v729_v24 = vadd.f32 %v697_v40, %v540_v14  ;;  %v730_v26 = vadd.f32 %v698_v3, %v540_v14  ;;  %v5761_v49 = vld [vmem:[#allocation86_spill] sm:$0xff] }
  0xa6   :  { %v731_v7 = vadd.f32 %v699_v42, %v540_v14  ;;  %v732_v13 = vadd.f32 %v700_v62, %v540_v14  ;;  %v733_v5 = vadd.f32 %v701_v43, %v540_v14  ;;  %v734_v55 = vadd.f32 %v702_v8, %v540_v14  ;;  %v5747_v62 = vld [vmem:[#allocation75_spill] sm:$0xff] }
  0xa7   :  { %v735_v1 = vadd.f32 %v703_v9, %v540_v14  ;;  %v736_v29 = vadd.f32 %v704_v39, %v540_v14  ;;  %v737_v47 = vadd.f32 %v705_v46, %v540_v14  ;;  %v738_v28 = vadd.f32 %v706_v52, %v540_v14  ;;  %v5769_v46 = vld [vmem:[#allocation90_spill] sm:$0xff] }
  0xa8   :  { %v4004_v15 = vadd.f32 %v3750_v27, %v707_v37  ;;  %v4007_v16 = vadd.f32 %v3755_v19, %v708_v31  ;;  %v4010_v18 = vadd.f32 %v3760_v54, %v709_v6  ;;  %v4013_v21 = vadd.f32 %v3765_v53, %v710_v36  ;;  %v5745_v54 = vld [vmem:[#allocation73_spill] sm:$0xff]  ;;  %v5746_v53 = vld [vmem:[#allocation74_spill] sm:$0xff]  ;;  %v5771_v36 = vld [vmem:[#allocation91_spill] sm:$0xff] }
  0xa9   :  { %v4016_v42 = vadd.f32 %v3770_v57, %v711_v10  ;;  %v4019_v9 = vadd.f32 %v3775_v59, %v712_v11  ;;  %v4022_v14 = vadd.f32 %v3780_v2, %v713_v41  ;;  %v4025_v27 = vadd.f32 %v3785_v25, %v714_v44  ;;  %v5748_v57 = vld [vmem:[#allocation76_spill] sm:$0xff]  ;;  %v5749_v41 = vld [vmem:[#allocation77_spill] sm:$0xff]  ;;  %v5750_v25 = vld [vmem:[#allocation78_spill] sm:$0xff] }
  0xaa   :  { %v4028_v19 = vadd.f32 %v3790_v50, %v715_v4  ;;  %v4031_v6 = vadd.f32 %v5745_v54, %v716_v30  ;;  %v4034_v8 = vadd.f32 %v5746_v53, %v717_v60  ;;  %v4037_v43 = vadd.f32 %v5747_v62, %v718_v34  ;;  %v5751_v50 = vld [vmem:[#allocation79_spill] sm:$0xff]  ;;  %v5752_v30 = vld [vmem:[#allocation80_spill] sm:$0xff]  ;;  %v5753_v60 = vld [vmem:[#allocation81_spill] sm:$0xff] }
  0xab   :  { %v4040_v59 = vadd.f32 %v5748_v57, %v719_v22  ;;  %v4043_v2 = vadd.f32 %v5749_v41, %v720_v56  ;;  %v4046_v11 = vadd.f32 %v5750_v25, %v721_v0  ;;  %v4049_v4 = vadd.f32 %v5751_v50, %v722_v58  ;;  %v5754_v37 = vld [vmem:[#allocation82_spill] sm:$0xff]  ;;  %v5755_v22 = vld [vmem:[#allocation83_spill] sm:$0xff]  ;;  %v937_v56 = vpop.permute.xlu1 %936  ;;  %v5759_v0 = vld [vmem:[#allocation85_spill] sm:$0xff] }
  0xac   :  { %v4052_v10 = vadd.f32 %v5752_v30, %v723_v51  ;;  %v4055_v31 = vadd.f32 %v5753_v60, %v724_v45  ;;  %v4058_v23 = vadd.f32 %v5754_v37, %v725_v35  ;;  %v4061_v33 = vadd.f32 %v5755_v22, %v726_v20  ;;  %v5763_v51 = vld [vmem:[#allocation87_spill] sm:$0xff]  ;;  %v5765_v45 = vld [vmem:[#allocation88_spill] sm:$0xff]  ;;  %v5767_v35 = vld [vmem:[#allocation89_spill] sm:$0xff] }
  0xad   :  { %v4064_v32 = vadd.f32 %v5757_v17, %v727_v12  ;;  %v4067_v61 = vadd.f32 %v5759_v0, %v728_v63  ;;  %v4070_v38 = vadd.f32 %v5761_v49, %v729_v24  ;;  %v4073_v40 = vadd.f32 %v5763_v51, %v730_v26  ;;  %v5773_v34 = vld [vmem:[#allocation92_spill] sm:$0xff]  ;;  %v5775_v20 = vld [vmem:[#allocation93_spill] sm:$0xff]  ;;  %v5777_v63 = vld [vmem:[#allocation94_spill] sm:$0xff] }
  0xae   :  { %5756 = vst [vmem:[#allocation73_spill] sm:$0xff] %v4061_v33  ;;  %v4076_v3 = vadd.f32 %v5765_v45, %v731_v7  ;;  %v4079_v39 = vadd.f32 %v5767_v35, %v732_v13  ;;  %v4082_v52 = vadd.f32 %v5769_v46, %v733_v5  ;;  %v4085_v44 = vadd.f32 %v5771_v36, %v734_v55  ;;  %v5779_v26 = vld [vmem:[#allocation95_spill] sm:$0xff]  ;;  %v5782_v54 = vld [vmem:[#allocation36_spill] sm:$0xff]  ;;  %v5786_v41 = vld [vmem:[#allocation5_spill] sm:$0xff] }
  0xaf   :  { %5758 = vst [vmem:[#allocation74_spill] sm:$0xff] %v4064_v32  ;;  %5760 = vst [vmem:[#allocation75_spill] sm:$0xff] %v4067_v61  ;;  %v4088_v58 = vadd.f32 %v5773_v34, %v735_v1  ;;  %v4091_v12 = vadd.f32 %v5775_v20, %v736_v29  ;;  %v4094_v24 = vadd.f32 %v5777_v63, %v737_v47  ;;  %v5781_v13 = vld [vmem:[#allocation3_spill] sm:$0xff]  ;;  %v5784_v62 = vld [vmem:[#allocation4_spill] sm:$0xff] }
  0xb0   :  { %5762 = vst [vmem:[#allocation76_spill] sm:$0xff] %v4070_v38  ;;  %5764 = vst [vmem:[#allocation77_spill] sm:$0xff] %v4073_v40  ;;  %v4097_v7 = vadd.f32 %v5779_v26, %v738_v28  ;;  %v5783_v53 = vrot.slane %v5781_v13, %v5782_v54  ;;  %v5785_v55 = vrot.slane %v5784_v62, %v5782_v54  ;;  %v5788_v29 = vld [vmem:[#allocation6_spill] sm:$0xff]  ;;  %v5790_v30 = vld [vmem:[#allocation7_spill] sm:$0xff] }
  0xb1   :  { %5766 = vst [vmem:[#allocation78_spill] sm:$0xff] %v4076_v3  ;;  %5768 = vst [vmem:[#allocation79_spill] sm:$0xff] %v4079_v39  ;;  %v5787_v1 = vrot.slane %v5786_v41, %v5782_v54  ;;  %v5789_v50 = vrot.slane %v5788_v29, %v5782_v54  ;;  %v5791_v28 = vrot.slane %v5790_v30, %v5782_v54  ;;  %v5792_v37 = vld [vmem:[#allocation8_spill] sm:$0xff]  ;;  %v5794_v0 = vld [vmem:[#allocation9_spill] sm:$0xff] }
  0xb2   :  { %5770 = vst [vmem:[#allocation80_spill] sm:$0xff] %v4082_v52  ;;  %5772 = vst [vmem:[#allocation81_spill] sm:$0xff] %v4085_v44  ;;  %v1067_v5 = vmul.f32 %v5783_v53, %v937_v56  ;;  %v1068_v57 = vmul.f32 %v5785_v55, %v937_v56  ;;  %v5793_v22 = vrot.slane %v5792_v37, %v5782_v54  ;;  %v5796_v45 = vld [vmem:[#allocation10_spill] sm:$0xff]  ;;  %v5798_v36 = vld [vmem:[#allocation11_spill] sm:$0xff] }
  0xb3   :  { %5774 = vst [vmem:[#allocation82_spill] sm:$0xff] %v4088_v58  ;;  %5776 = vst [vmem:[#allocation83_spill] sm:$0xff] %v4091_v12  ;;  %v1069_v25 = vmul.f32 %v5787_v1, %v937_v56  ;;  %v1070_v47 = vmul.f32 %v5789_v50, %v937_v56  ;;  %v1071_v60 = vmul.f32 %v5791_v28, %v937_v56  ;;  %v5800_v63 = vld [vmem:[#allocation12_spill] sm:$0xff]  ;;  %v5802_v55 = vld [vmem:[#allocation13_spill] sm:$0xff] }
  0xb4   :  { %5778 = vst [vmem:[#allocation84_spill] sm:$0xff] %v4094_v24  ;;  %5780 = vst [vmem:[#allocation85_spill] sm:$0xff] %v4097_v7  ;;  %v1072_v17 = vmul.f32 %v5793_v22, %v937_v56  ;;  %v5795_v49 = vrot.slane %v5794_v0, %v5782_v54  ;;  %v5797_v35 = vrot.slane %v5796_v45, %v5782_v54  ;;  %v5804_v28 = vld [vmem:[#allocation14_spill] sm:$0xff]  ;;  %v5806_v13 = vld [vmem:[#allocation15_spill] sm:$0xff] }
  0xb5   :  { %v5799_v34 = vrot.slane %v5798_v36, %v5782_v54  ;;  %v5801_v26 = vrot.slane %v5800_v63, %v5782_v54  ;;  %v5803_v1 = vrot.slane %v5802_v55, %v5782_v54  ;;  %v5805_v22 = vrot.slane %v5804_v28, %v5782_v54  ;;  %v5808_v0 = vld [vmem:[#allocation16_spill] sm:$0xff]  ;;  %v5810_v37 = vld [vmem:[#allocation17_spill] sm:$0xff]  ;;  %v5812_v30 = vld [vmem:[#allocation18_spill] sm:$0xff] }
  0xb6   :  { %v1073_v51 = vmul.f32 %v5795_v49, %v937_v56  ;;  %v1074_v46 = vmul.f32 %v5797_v35, %v937_v56  ;;  %v5807_v45 = vrot.slane %v5806_v13, %v5782_v54  ;;  %v5809_v36 = vrot.slane %v5808_v0, %v5782_v54  ;;  %v5814_v29 = vld [vmem:[#allocation19_spill] sm:$0xff]  ;;  %v5816_v41 = vld [vmem:[#allocation20_spill] sm:$0xff]  ;;  %v5818_v62 = vld [vmem:[#allocation21_spill] sm:$0xff] }
  0xb7   :  { %v1075_v20 = vmul.f32 %v5799_v34, %v937_v56  ;;  %v1076_v53 = vmul.f32 %v5801_v26, %v937_v56  ;;  %v1077_v50 = vmul.f32 %v5803_v1, %v937_v56  ;;  %v1078_v49 = vmul.f32 %v5805_v22, %v937_v56  ;;  %v5820_v7 = vld [vmem:[#allocation22_spill] sm:$0xff]  ;;  %v5822_v24 = vld [vmem:[#allocation23_spill] sm:$0xff]  ;;  %v5824_v12 = vld [vmem:[#allocation24_spill] sm:$0xff] }
  0xb8   :  { %v1079_v35 = vmul.f32 %v5807_v45, %v937_v56  ;;  %v1080_v34 = vmul.f32 %v5809_v36, %v937_v56  ;;  %v5811_v63 = vrot.slane %v5810_v37, %v5782_v54  ;;  %v5813_v55 = vrot.slane %v5812_v30, %v5782_v54  ;;  %v5826_v58 = vld [vmem:[#allocation25_spill] sm:$0xff]  ;;  %v5828_v44 = vld [vmem:[#allocation26_spill] sm:$0xff]  ;;  %v5830_v52 = vld [vmem:[#allocation27_spill] sm:$0xff] }
  0xb9   :  { %v5815_v28 = vrot.slane %v5814_v29, %v5782_v54  ;;  %v5817_v13 = vrot.slane %v5816_v41, %v5782_v54  ;;  %v5819_v0 = vrot.slane %v5818_v62, %v5782_v54  ;;  %v5821_v37 = vrot.slane %v5820_v7, %v5782_v54  ;;  %v5832_v39 = vld [vmem:[#allocation28_spill] sm:$0xff]  ;;  %v5834_v3 = vld [vmem:[#allocation29_spill] sm:$0xff]  ;;  %v5836_v40 = vld [vmem:[#allocation30_spill] sm:$0xff] }
  0xba   :  { %v1081_v26 = vmul.f32 %v5811_v63, %v937_v56  ;;  %v1082_v1 = vmul.f32 %v5813_v55, %v937_v56  ;;  %v5823_v30 = vrot.slane %v5822_v24, %v5782_v54  ;;  %v5825_v29 = vrot.slane %v5824_v12, %v5782_v54  ;;  %v5838_v38 = vld [vmem:[#allocation31_spill] sm:$0xff]  ;;  %v5840_v61 = vld [vmem:[#allocation32_spill] sm:$0xff]  ;;  %v5842_v32 = vld [vmem:[#allocation33_spill] sm:$0xff] }
  0xbb   :  { %v1083_v22 = vmul.f32 %v5815_v28, %v937_v56  ;;  %v1084_v45 = vmul.f32 %v5817_v13, %v937_v56  ;;  %v1085_v36 = vmul.f32 %v5819_v0, %v937_v56  ;;  %v1086_v63 = vmul.f32 %v5821_v37, %v937_v56 }
  0xbc   :  { %v1087_v55 = vmul.f32 %v5823_v30, %v937_v56  ;;  %v1088_v28 = vmul.f32 %v5825_v29, %v937_v56  ;;  %v5827_v41 = vrot.slane %v5826_v58, %v5782_v54  ;;  %v5829_v62 = vrot.slane %v5828_v44, %v5782_v54 }
  0xbd   :  { %v5831_v7 = vrot.slane %v5830_v52, %v5782_v54  ;;  %v5833_v24 = vrot.slane %v5832_v39, %v5782_v54  ;;  %v5835_v12 = vrot.slane %v5834_v3, %v5782_v54  ;;  %v5837_v58 = vrot.slane %v5836_v40, %v5782_v54 }
  0xbe   :  { %v1089_v13 = vmul.f32 %v5827_v41, %v937_v56  ;;  %v1090_v0 = vmul.f32 %v5829_v62, %v937_v56  ;;  %v5839_v44 = vrot.slane %v5838_v38, %v5782_v54  ;;  %v5841_v52 = vrot.slane %v5840_v61, %v5782_v54 }
  0xbf   :  { %v1091_v37 = vmul.f32 %v5831_v7, %v937_v56  ;;  %v1092_v30 = vmul.f32 %v5833_v24, %v937_v56  ;;  %v1093_v29 = vmul.f32 %v5835_v12, %v937_v56  ;;  %v1094_v41 = vmul.f32 %v5837_v58, %v937_v56 }
  0xc0   :  { %v1095_v62 = vmul.f32 %v5839_v44, %v937_v56  ;;  %v1096_v7 = vmul.f32 %v5841_v52, %v937_v56  ;;  %v5843_v39 = vrot.slane %v5842_v32, %v5782_v54  ;;  %v5844_v3 = vrot.slane %v5654_v48, %v5782_v54  ;;  %v5894_v54 = vld [vmem:[#allocation17_spill] sm:$0xff] }
  0xc1   :  { %v4196_v33 = vadd.f32 %v1067_v5, %v4004_v15  ;;  %v4199_v58 = vadd.f32 %v1068_v57, %v4007_v16  ;;  %v4202_v44 = vadd.f32 %v1069_v25, %v4010_v18  ;;  %v4205_v61 = vadd.f32 %v1070_v47, %v4013_v21 }
  0xc2   :  { %v1097_v24 = vmul.f32 %v5843_v39, %v937_v56  ;;  %v1098_v12 = vmul.f32 %v5844_v3, %v937_v56  ;;  %v4208_v52 = vadd.f32 %v1071_v60, %v4016_v42  ;;  %v4211_v39 = vadd.f32 %v1072_v17, %v4019_v9 }
  0xc3   :  { %v4214_v56 = vadd.f32 %v1073_v51, %v4022_v14  ;;  %v4217_v15 = vadd.f32 %v1074_v46, %v4025_v27  ;;  %v4220_v16 = vadd.f32 %v1075_v20, %v4028_v19  ;;  %v4223_v18 = vadd.f32 %v1076_v53, %v4031_v6  ;;  %v5868_v51 = vld [vmem:[#allocation80_spill] sm:$0xff]  ;;  %v5870_v20 = vld [vmem:[#allocation81_spill] sm:$0xff] }
  0xc4   :  { %v4226_v21 = vadd.f32 %v1077_v50, %v4034_v8  ;;  %v4229_v42 = vadd.f32 %v1078_v49, %v4037_v43  ;;  %v4232_v9 = vadd.f32 %v1079_v35, %v4040_v59  ;;  %v4235_v14 = vadd.f32 %v1080_v34, %v4043_v2  ;;  %v5854_v59 = vld [vmem:[#allocation73_spill] sm:$0xff]  ;;  %v5856_v2 = vld [vmem:[#allocation74_spill] sm:$0xff]  ;;  %v5874_v35 = vld [vmem:[#allocation83_spill] sm:$0xff] }
  0xc5   :  { %v4238_v27 = vadd.f32 %v1081_v26, %v4046_v11  ;;  %v4241_v19 = vadd.f32 %v1082_v1, %v4049_v4  ;;  %v4244_v6 = vadd.f32 %v1083_v22, %v4052_v10  ;;  %v4247_v8 = vadd.f32 %v1084_v45, %v4055_v31  ;;  %v5858_v11 = vld [vmem:[#allocation75_spill] sm:$0xff]  ;;  %v5860_v4 = vld [vmem:[#allocation76_spill] sm:$0xff]  ;;  %v5862_v10 = vld [vmem:[#allocation77_spill] sm:$0xff] }
  0xc6   :  { %5845 = vst [vmem:[#allocation86_spill] sm:$0xff] %v4226_v21  ;;  %5846 = vst [vmem:[#allocation87_spill] sm:$0xff] %v4229_v42  ;;  %v4250_v43 = vadd.f32 %v1085_v36, %v4058_v23  ;;  %v4253_v3 = vadd.f32 %v1086_v63, %v5854_v59  ;;  %v4256_v5 = vadd.f32 %v1087_v55, %v5856_v2  ;;  %v5864_v31 = vld [vmem:[#allocation78_spill] sm:$0xff]  ;;  %v5866_v23 = vld [vmem:[#allocation79_spill] sm:$0xff] }
  0xc7   :  { %5847 = vst [vmem:[#allocation88_spill] sm:$0xff] %v4232_v9  ;;  %5848 = vst [vmem:[#allocation89_spill] sm:$0xff] %v4235_v14  ;;  %v4259_v57 = vadd.f32 %v1088_v28, %v5858_v11  ;;  %v4262_v25 = vadd.f32 %v1089_v13, %v5860_v4  ;;  %v4265_v47 = vadd.f32 %v1090_v0, %v5862_v10  ;;  %v5872_v50 = vld [vmem:[#allocation82_spill] sm:$0xff]  ;;  %v5876_v26 = vld [vmem:[#allocation84_spill] sm:$0xff] }
  0xc8   :  { %5849 = vst [vmem:[#allocation90_spill] sm:$0xff] %v4238_v27  ;;  %5850 = vst [vmem:[#allocation91_spill] sm:$0xff] %v4241_v19  ;;  %v4268_v60 = vadd.f32 %v1091_v37, %v5864_v31  ;;  %v4271_v17 = vadd.f32 %v1092_v30, %v5866_v23  ;;  %v4274_v46 = vadd.f32 %v1093_v29, %v5868_v51  ;;  %v5878_v22 = vld [vmem:[#allocation85_spill] sm:$0xff]  ;;  %v5881_v63 = vld [vmem:[#allocation4_spill] sm:$0xff] }
  0xc9   :  { %5851 = vst [vmem:[#allocation92_spill] sm:$0xff] %v4244_v6  ;;  %5852 = vst [vmem:[#allocation93_spill] sm:$0xff] %v4247_v8  ;;  %v4277_v53 = vadd.f32 %v1094_v41, %v5870_v20  ;;  %v4280_v49 = vadd.f32 %v1095_v62, %v5872_v50  ;;  %v4283_v34 = vadd.f32 %v1096_v7, %v5874_v35  ;;  %v5880_v36 = vld [vmem:[#allocation37_spill] sm:$0xff]  ;;  %v5883_v0 = vld [vmem:[#allocation6_spill] sm:$0xff] }
  0xca   :  { %5853 = vst [vmem:[#allocation94_spill] sm:$0xff] %v4250_v43  ;;  %5855 = vst [vmem:[#allocation95_spill] sm:$0xff] %v4253_v3  ;;  %v4286_v1 = vadd.f32 %v1097_v24, %v5876_v26  ;;  %v4289_v45 = vadd.f32 %v1098_v12, %v5878_v22  ;;  %v1142_v55 = vrot.slane %v5881_v63, %v5880_v36  ;;  %v5882_v28 = vld [vmem:[#allocation5_spill] sm:$0xff]  ;;  %v5884_v30 = vld [vmem:[#allocation7_spill] sm:$0xff] }
  0xcb   :  { %5857 = vst [vmem:[#allocation73_spill] sm:$0xff] %v4256_v5  ;;  %5859 = vst [vmem:[#allocation74_spill] sm:$0xff] %v4259_v57  ;;  %v1146_v13 = vrot.slane %v5882_v28, %v5880_v36  ;;  %v1150_v37 = vrot.slane %v5883_v0, %v5880_v36  ;;  %v1154_v29 = vrot.slane %v5884_v30, %v5880_v36  ;;  %v5885_v41 = vld [vmem:[#allocation8_spill] sm:$0xff]  ;;  %v5886_v7 = vld [vmem:[#allocation9_spill] sm:$0xff]  ;;  %v1133_v30 = vpop.permute.xlu0 %1132 }
  0xcc   :  { %5861 = vst [vmem:[#allocation75_spill] sm:$0xff] %v4262_v25  ;;  %5863 = vst [vmem:[#allocation76_spill] sm:$0xff] %v4265_v47  ;;  %v1158_v62 = vrot.slane %v5885_v41, %v5880_v36  ;;  %v1162_v24 = vrot.slane %v5886_v7, %v5880_v36  ;;  %v5887_v12 = vld [vmem:[#allocation10_spill] sm:$0xff]  ;;  %v5888_v2 = vld [vmem:[#allocation11_spill] sm:$0xff] }
  0xcd   :  { %5865 = vst [vmem:[#allocation77_spill] sm:$0xff] %v4268_v60  ;;  %5867 = vst [vmem:[#allocation78_spill] sm:$0xff] %v4271_v17  ;;  %v1166_v59 = vrot.slane %v5887_v12, %v5880_v36  ;;  %v1170_v11 = vrot.slane %v5888_v2, %v5880_v36  ;;  %v5889_v4 = vld [vmem:[#allocation12_spill] sm:$0xff]  ;;  %v5890_v31 = vld [vmem:[#allocation13_spill] sm:$0xff]  ;;  %v1194_v12 = vrot.slane %v5894_v54, %v5880_v36 }
  0xce   :  { %5869 = vst [vmem:[#allocation79_spill] sm:$0xff] %v4274_v46  ;;  %5871 = vst [vmem:[#allocation80_spill] sm:$0xff] %v4277_v53  ;;  %v1174_v10 = vrot.slane %v5889_v4, %v5880_v36  ;;  %v1178_v23 = vrot.slane %v5890_v31, %v5880_v36  ;;  %v5891_v51 = vld [vmem:[#allocation14_spill] sm:$0xff]  ;;  %v5892_v50 = vld [vmem:[#allocation15_spill] sm:$0xff]  ;;  %v1265_v57 = vmul.f32 %v1146_v13, %v1133_v30 }
  0xcf   :  { %5873 = vst [vmem:[#allocation81_spill] sm:$0xff] %v4280_v49  ;;  %5875 = vst [vmem:[#allocation82_spill] sm:$0xff] %v4283_v34  ;;  %v1182_v20 = vrot.slane %v5891_v51, %v5880_v36  ;;  %v1186_v35 = vrot.slane %v5892_v50, %v5880_v36  ;;  %v5893_v26 = vld [vmem:[#allocation16_spill] sm:$0xff]  ;;  %v5895_v2 = vld [vmem:[#allocation18_spill] sm:$0xff]  ;;  %v1266_v5 = vmul.f32 %v1150_v37, %v1133_v30 }
  0xd0   :  { %5877 = vst [vmem:[#allocation83_spill] sm:$0xff] %v4286_v1  ;;  %5879 = vst [vmem:[#allocation84_spill] sm:$0xff] %v4289_v45  ;;  %v1190_v22 = vrot.slane %v5893_v26, %v5880_v36  ;;  %v1198_v7 = vrot.slane %v5895_v2, %v5880_v36  ;;  %v5896_v4 = vld [vmem:[#allocation19_spill] sm:$0xff]  ;;  %v5897_v31 = vld [vmem:[#allocation20_spill] sm:$0xff]  ;;  %v1268_v3 = vmul.f32 %v1158_v62, %v1133_v30 }
  0xd1   :  { %v1202_v41 = vrot.slane %v5896_v4, %v5880_v36  ;;  %v1206_v0 = vrot.slane %v5897_v31, %v5880_v36  ;;  %v5898_v51 = vld [vmem:[#allocation21_spill] sm:$0xff]  ;;  %v5899_v50 = vld [vmem:[#allocation22_spill] sm:$0xff]  ;;  %v5900_v26 = vld [vmem:[#allocation23_spill] sm:$0xff]  ;;  %v1269_v43 = vmul.f32 %v1162_v24, %v1133_v30  ;;  %v1271_v8 = vmul.f32 %v1170_v11, %v1133_v30 }
  0xd2   :  { %v1210_v28 = vrot.slane %v5898_v51, %v5880_v36  ;;  %v1214_v63 = vrot.slane %v5899_v50, %v5880_v36  ;;  %v1218_v45 = vrot.slane %v5900_v26, %v5880_v36  ;;  %v5901_v54 = vld [vmem:[#allocation24_spill] sm:$0xff]  ;;  %v5902_v2 = vld [vmem:[#allocation25_spill] sm:$0xff]  ;;  %v5903_v4 = vld [vmem:[#allocation26_spill] sm:$0xff]  ;;  %v1246_v26 = vrot.slane %v5836_v40, %v5880_v36 }
  0xd3   :  { %v1222_v1 = vrot.slane %v5901_v54, %v5880_v36  ;;  %v1226_v34 = vrot.slane %v5902_v2, %v5880_v36  ;;  %v1230_v49 = vrot.slane %v5903_v4, %v5880_v36  ;;  %v5904_v31 = vld [vmem:[#allocation27_spill] sm:$0xff]  ;;  %v5905_v51 = vld [vmem:[#allocation28_spill] sm:$0xff]  ;;  %v5906_v50 = vld [vmem:[#allocation29_spill] sm:$0xff]  ;;  %v1250_v54 = vrot.slane %v5838_v38, %v5880_v36 }
  0xd4   :  { %v1234_v53 = vrot.slane %v5904_v31, %v5880_v36  ;;  %v1238_v46 = vrot.slane %v5905_v51, %v5880_v36  ;;  %v1242_v17 = vrot.slane %v5906_v50, %v5880_v36  ;;  %v5907_v2 = vld [vmem:[#allocation32_spill] sm:$0xff]  ;;  %v1258_v4 = vrot.slane %v5842_v32, %v5880_v36  ;;  %v5908_v47 = vld [vmem:[#allocation3_spill] sm:$0xff] }
  0xd5   :  { %v1254_v60 = vrot.slane %v5907_v2, %v5880_v36  ;;  %v1262_v31 = vrot.slane %v5654_v48, %v5880_v36  ;;  %v5909_v51 = vrot.slane %v5908_v47, %v5880_v36  ;;  %v1264_v50 = vmul.f32 %v1142_v55, %v1133_v30 }
  0xd6   :  { %v1267_v40 = vmul.f32 %v1154_v29, %v1133_v30  ;;  %v1270_v38 = vmul.f32 %v1166_v59, %v1133_v30  ;;  %v1272_v6 = vmul.f32 %v1174_v10, %v1133_v30  ;;  %v1273_v2 = vmul.f32 %v1178_v23, %v1133_v30 }
  0xd7   :  { %v1263_v25 = vmul.f32 %v5909_v51, %v1133_v30  ;;  %v1274_v19 = vmul.f32 %v1182_v20, %v1133_v30  ;;  %v1275_v27 = vmul.f32 %v1186_v35, %v1133_v30  ;;  %v1276_v32 = vmul.f32 %v1190_v22, %v1133_v30 }
  0xd8   :  { %v1277_v14 = vmul.f32 %v1194_v12, %v1133_v30  ;;  %v1278_v9 = vmul.f32 %v1198_v7, %v1133_v30  ;;  %v1279_v48 = vmul.f32 %v1202_v41, %v1133_v30  ;;  %v1280_v42 = vmul.f32 %v1206_v0, %v1133_v30  ;;  %v5942_v7 = vld [vmem:[#allocation79_spill] sm:$0xff] }
  0xd9   :  { %v1281_v21 = vmul.f32 %v1210_v28, %v1133_v30  ;;  %v1282_v36 = vmul.f32 %v1214_v63, %v1133_v30  ;;  %v1283_v51 = vmul.f32 %v1218_v45, %v1133_v30  ;;  %v1284_v55 = vmul.f32 %v1222_v1, %v1133_v30 }
  0xda   :  { %v1285_v13 = vmul.f32 %v1226_v34, %v1133_v30  ;;  %v1286_v37 = vmul.f32 %v1230_v49, %v1133_v30  ;;  %v1287_v29 = vmul.f32 %v1234_v53, %v1133_v30  ;;  %v1288_v62 = vmul.f32 %v1238_v46, %v1133_v30 }
  0xdb   :  { %v1289_v24 = vmul.f32 %v1242_v17, %v1133_v30  ;;  %v1290_v59 = vmul.f32 %v1246_v26, %v1133_v30  ;;  %v1291_v11 = vmul.f32 %v1250_v54, %v1133_v30  ;;  %v1292_v10 = vmul.f32 %v1254_v60, %v1133_v30  ;;  %v5948_v26 = vld [vmem:[#allocation82_spill] sm:$0xff] }
  0xdc   :  { %v1293_v23 = vmul.f32 %v1258_v4, %v1133_v30  ;;  %v1294_v20 = vmul.f32 %v1262_v31, %v1133_v30  ;;  %v4357_v35 = vadd.f32 %v1263_v25, %v4196_v33  ;;  %v4360_v41 = vadd.f32 %v1264_v50, %v4199_v58  ;;  %v5946_v31 = vld [vmem:[#allocation81_spill] sm:$0xff] }
  0xdd   :  { %v4363_v63 = vadd.f32 %v1265_v57, %v4202_v44  ;;  %v4366_v34 = vadd.f32 %v1266_v5, %v4205_v61  ;;  %v4369_v46 = vadd.f32 %v1267_v40, %v4208_v52  ;;  %v4372_v54 = vadd.f32 %v1268_v3, %v4211_v39  ;;  %v5910_v61 = vld [vmem:[#allocation86_spill] sm:$0xff]  ;;  %v5912_v40 = vld [vmem:[#allocation87_spill] sm:$0xff]  ;;  %v5914_v39 = vld [vmem:[#allocation88_spill] sm:$0xff] }
  0xde   :  { %v4375_v60 = vadd.f32 %v1269_v43, %v4214_v56  ;;  %v4378_v33 = vadd.f32 %v1270_v38, %v4217_v15  ;;  %v4381_v58 = vadd.f32 %v1271_v8, %v4220_v16  ;;  %v4384_v44 = vadd.f32 %v1272_v6, %v4223_v18  ;;  %v5916_v56 = vld [vmem:[#allocation89_spill] sm:$0xff]  ;;  %v5918_v38 = vld [vmem:[#allocation90_spill] sm:$0xff]  ;;  %v5920_v16 = vld [vmem:[#allocation91_spill] sm:$0xff] }
  0xdf   :  { %v4387_v5 = vadd.f32 %v1273_v2, %v5910_v61  ;;  %v4390_v52 = vadd.f32 %v1274_v19, %v5912_v40  ;;  %v4393_v3 = vadd.f32 %v1275_v27, %v5914_v39  ;;  %v4396_v43 = vadd.f32 %v1276_v32, %v5916_v56  ;;  %v5922_v18 = vld [vmem:[#allocation92_spill] sm:$0xff]  ;;  %v5924_v57 = vld [vmem:[#allocation93_spill] sm:$0xff]  ;;  %v5926_v19 = vld [vmem:[#allocation94_spill] sm:$0xff] }
  0xe0   :  { %v4399_v15 = vadd.f32 %v1277_v14, %v5918_v38  ;;  %v4402_v8 = vadd.f32 %v1278_v9, %v5920_v16  ;;  %v4405_v6 = vadd.f32 %v1279_v48, %v5922_v18  ;;  %v4408_v25 = vadd.f32 %v1280_v42, %v5924_v57  ;;  %v5928_v27 = vld [vmem:[#allocation95_spill] sm:$0xff]  ;;  %v5930_v32 = vld [vmem:[#allocation73_spill] sm:$0xff]  ;;  %v5932_v14 = vld [vmem:[#allocation74_spill] sm:$0xff] }
  0xe1   :  { %5911 = vst [vmem:[#allocation85_spill] sm:$0xff] %v4387_v5  ;;  %5913 = vst [vmem:[#allocation37_spill] sm:$0xff] %v4390_v52  ;;  %v4411_v17 = vadd.f32 %v1281_v21, %v5926_v19  ;;  %v4414_v53 = vadd.f32 %v1282_v36, %v5928_v27  ;;  %v4417_v49 = vadd.f32 %v1283_v51, %v5930_v32  ;;  %v5934_v9 = vld [vmem:[#allocation75_spill] sm:$0xff]  ;;  %v5936_v48 = vld [vmem:[#allocation76_spill] sm:$0xff] }
  0xe2   :  { %5915 = vst [vmem:[#allocation86_spill] sm:$0xff] %v4393_v3  ;;  %5917 = vst [vmem:[#allocation87_spill] sm:$0xff] %v4396_v43  ;;  %v4420_v1 = vadd.f32 %v1284_v55, %v5932_v14  ;;  %v4423_v45 = vadd.f32 %v1285_v13, %v5934_v9  ;;  %v4426_v28 = vadd.f32 %v1286_v37, %v5936_v48  ;;  %v5938_v42 = vld [vmem:[#allocation77_spill] sm:$0xff]  ;;  %v5940_v21 = vld [vmem:[#allocation78_spill] sm:$0xff] }
  0xe3   :  { %5919 = vst [vmem:[#allocation88_spill] sm:$0xff] %v4399_v15  ;;  %5921 = vst [vmem:[#allocation89_spill] sm:$0xff] %v4402_v8  ;;  %v4429_v0 = vadd.f32 %v1287_v29, %v5938_v42  ;;  %v4432_v30 = vadd.f32 %v1288_v62, %v5940_v21  ;;  %v4435_v12 = vadd.f32 %v1289_v24, %v5942_v7  ;;  %v5944_v2 = vld [vmem:[#allocation80_spill] sm:$0xff]  ;;  %v5950_v36 = vld [vmem:[#allocation83_spill] sm:$0xff] }
  0xe4   :  { %5923 = vst [vmem:[#allocation90_spill] sm:$0xff] %v4405_v6  ;;  %5925 = vst [vmem:[#allocation91_spill] sm:$0xff] %v4408_v25  ;;  %v4438_v4 = vadd.f32 %v1290_v59, %v5944_v2  ;;  %v4441_v50 = vadd.f32 %v1291_v11, %v5946_v31  ;;  %v4444_v22 = vadd.f32 %v1292_v10, %v5948_v26  ;;  %v5952_v55 = vld [vmem:[#allocation84_spill] sm:$0xff]  ;;  %v5954_v37 = vld [vmem:[#allocation38_spill] sm:$0xff] }
  0xe5   :  { %5927 = vst [vmem:[#allocation92_spill] sm:$0xff] %v4411_v17  ;;  %5929 = vst [vmem:[#allocation93_spill] sm:$0xff] %v4414_v53  ;;  %v4447_v51 = vadd.f32 %v1293_v23, %v5950_v36  ;;  %v4450_v13 = vadd.f32 %v1294_v20, %v5952_v55  ;;  %v1334_v29 = vrot.slane %v5908_v47, %v5954_v37  ;;  %v5955_v62 = vld [vmem:[#allocation4_spill] sm:$0xff]  ;;  %v5956_v59 = vld [vmem:[#allocation5_spill] sm:$0xff] }
  0xe6   :  { %5931 = vst [vmem:[#allocation94_spill] sm:$0xff] %v4417_v49  ;;  %5933 = vst [vmem:[#allocation95_spill] sm:$0xff] %v4420_v1  ;;  %v1338_v24 = vrot.slane %v5955_v62, %v5954_v37  ;;  %v1342_v61 = vrot.slane %v5956_v59, %v5954_v37  ;;  %v5957_v11 = vld [vmem:[#allocation6_spill] sm:$0xff]  ;;  %v5958_v10 = vld [vmem:[#allocation7_spill] sm:$0xff] }
  0xe7   :  { %5935 = vst [vmem:[#allocation73_spill] sm:$0xff] %v4423_v45  ;;  %5937 = vst [vmem:[#allocation74_spill] sm:$0xff] %v4426_v28  ;;  %v1346_v40 = vrot.slane %v5957_v11, %v5954_v37  ;;  %v1350_v39 = vrot.slane %v5958_v10, %v5954_v37  ;;  %v5959_v23 = vld [vmem:[#allocation8_spill] sm:$0xff]  ;;  %v5960_v20 = vld [vmem:[#allocation9_spill] sm:$0xff] }
  0xe8   :  { %5939 = vst [vmem:[#allocation75_spill] sm:$0xff] %v4429_v0  ;;  %5941 = vst [vmem:[#allocation76_spill] sm:$0xff] %v4432_v30  ;;  %v1354_v56 = vrot.slane %v5959_v23, %v5954_v37  ;;  %v1358_v38 = vrot.slane %v5960_v20, %v5954_v37  ;;  %v5961_v16 = vld [vmem:[#allocation10_spill] sm:$0xff]  ;;  %v5962_v57 = vld [vmem:[#allocation11_spill] sm:$0xff]  ;;  %v1329_v20 = vpop.permute.xlu1 %1328 }
  0xe9   :  { %5943 = vst [vmem:[#allocation77_spill] sm:$0xff] %v4435_v12  ;;  %5945 = vst [vmem:[#allocation78_spill] sm:$0xff] %v4438_v4  ;;  %v1362_v18 = vrot.slane %v5961_v16, %v5954_v37  ;;  %v1366_v19 = vrot.slane %v5962_v57, %v5954_v37  ;;  %v5963_v27 = vld [vmem:[#allocation12_spill] sm:$0xff]  ;;  %v5964_v14 = vld [vmem:[#allocation13_spill] sm:$0xff]  ;;  %v1459_v45 = vmul.f32 %v1334_v29, %v1329_v20 }
  0xea   :  { %5947 = vst [vmem:[#allocation79_spill] sm:$0xff] %v4441_v50  ;;  %5949 = vst [vmem:[#allocation80_spill] sm:$0xff] %v4444_v22  ;;  %v1370_v32 = vrot.slane %v5963_v27, %v5954_v37  ;;  %v1374_v9 = vrot.slane %v5964_v14, %v5954_v37  ;;  %v5965_v48 = vld [vmem:[#allocation14_spill] sm:$0xff]  ;;  %v5966_v21 = vld [vmem:[#allocation15_spill] sm:$0xff]  ;;  %v1461_v1 = vmul.f32 %v1342_v61, %v1329_v20 }
  0xeb   :  { %5951 = vst [vmem:[#allocation81_spill] sm:$0xff] %v4447_v51  ;;  %5953 = vst [vmem:[#allocation82_spill] sm:$0xff] %v4450_v13  ;;  %v1378_v42 = vrot.slane %v5965_v48, %v5954_v37  ;;  %v1382_v7 = vrot.slane %v5966_v21, %v5954_v37  ;;  %v5967_v2 = vld [vmem:[#allocation16_spill] sm:$0xff]  ;;  %v5968_v26 = vld [vmem:[#allocation17_spill] sm:$0xff]  ;;  %v1462_v49 = vmul.f32 %v1346_v40, %v1329_v20 }
  0xec   :  { %v1386_v31 = vrot.slane %v5967_v2, %v5954_v37  ;;  %v1390_v36 = vrot.slane %v5968_v26, %v5954_v37  ;;  %v5969_v55 = vld [vmem:[#allocation18_spill] sm:$0xff]  ;;  %v5970_v27 = vld [vmem:[#allocation19_spill] sm:$0xff]  ;;  %v5971_v14 = vld [vmem:[#allocation20_spill] sm:$0xff]  ;;  %v1464_v53 = vmul.f32 %v1354_v56, %v1329_v20  ;;  %v1465_v17 = vmul.f32 %v1358_v38, %v1329_v20 }
  0xed   :  { %v1394_v57 = vrot.slane %v5969_v55, %v5954_v37  ;;  %v1398_v16 = vrot.slane %v5970_v27, %v5954_v37  ;;  %v1402_v23 = vrot.slane %v5971_v14, %v5954_v37  ;;  %v5972_v48 = vld [vmem:[#allocation21_spill] sm:$0xff]  ;;  %v5973_v21 = vld [vmem:[#allocation22_spill] sm:$0xff]  ;;  %v5974_v2 = vld [vmem:[#allocation23_spill] sm:$0xff]  ;;  %v1467_v25 = vmul.f32 %v1366_v19, %v1329_v20 }
  0xee   :  { %v1406_v10 = vrot.slane %v5972_v48, %v5954_v37  ;;  %v1410_v11 = vrot.slane %v5973_v21, %v5954_v37  ;;  %v1414_v59 = vrot.slane %v5974_v2, %v5954_v37  ;;  %v5975_v26 = vld [vmem:[#allocation24_spill] sm:$0xff]  ;;  %v5976_v55 = vld [vmem:[#allocation25_spill] sm:$0xff]  ;;  %v5977_v27 = vld [vmem:[#allocation26_spill] sm:$0xff]  ;;  %v1468_v6 = vmul.f32 %v1370_v32, %v1329_v20 }
  0xef   :  { %v1418_v62 = vrot.slane %v5975_v26, %v5954_v37  ;;  %v1422_v47 = vrot.slane %v5976_v55, %v5954_v37  ;;  %v1426_v13 = vrot.slane %v5977_v27, %v5954_v37  ;;  %v5978_v14 = vld [vmem:[#allocation27_spill] sm:$0xff]  ;;  %v5979_v48 = vld [vmem:[#allocation28_spill] sm:$0xff]  ;;  %v5980_v21 = vld [vmem:[#allocation29_spill] sm:$0xff]  ;;  %v1470_v8 = vmul.f32 %v1378_v42, %v1329_v20 }
  0xf0   :  { %v1430_v51 = vrot.slane %v5978_v14, %v5954_v37  ;;  %v1434_v22 = vrot.slane %v5979_v48, %v5954_v37  ;;  %v1438_v50 = vrot.slane %v5980_v21, %v5954_v37  ;;  %v5981_v2 = vld [vmem:[#allocation30_spill] sm:$0xff]  ;;  %v5982_v26 = vld [vmem:[#allocation31_spill] sm:$0xff]  ;;  %v5983_v55 = vld [vmem:[#allocation32_spill] sm:$0xff]  ;;  %v1460_v48 = vmul.f32 %v1338_v24, %v1329_v20 }
  0xf1   :  { %v1442_v4 = vrot.slane %v5981_v2, %v5954_v37  ;;  %v1446_v12 = vrot.slane %v5982_v26, %v5954_v37  ;;  %v1450_v30 = vrot.slane %v5983_v55, %v5954_v37  ;;  %v5984_v27 = vld [vmem:[#allocation33_spill] sm:$0xff]  ;;  %v5985_v14 = vld [vmem:[#allocation34_spill] sm:$0xff]  ;;  %v1463_v21 = vmul.f32 %v1350_v39, %v1329_v20 }
  0xf2   :  { %v1454_v0 = vrot.slane %v5984_v27, %v5954_v37  ;;  %v1458_v28 = vrot.slane %v5985_v14, %v5954_v37  ;;  %v1466_v2 = vmul.f32 %v1362_v18, %v1329_v20  ;;  %v1469_v26 = vmul.f32 %v1374_v9, %v1329_v20 }
  0xf3   :  { %v1471_v15 = vmul.f32 %v1382_v7, %v1329_v20  ;;  %v1472_v55 = vmul.f32 %v1386_v31, %v1329_v20  ;;  %v1473_v43 = vmul.f32 %v1390_v36, %v1329_v20  ;;  %v1474_v3 = vmul.f32 %v1394_v57, %v1329_v20  ;;  %v6022_v31 = vld [vmem:[#allocation79_spill] sm:$0xff]  ;;  %v6024_v36 = vld [vmem:[#allocation80_spill] sm:$0xff] }
  0xf4   :  { %v1475_v27 = vmul.f32 %v1398_v16, %v1329_v20  ;;  %v1476_v52 = vmul.f32 %v1402_v23, %v1329_v20  ;;  %v1477_v5 = vmul.f32 %v1406_v10, %v1329_v20  ;;  %v1478_v37 = vmul.f32 %v1410_v11, %v1329_v20  ;;  %v6012_v10 = vld [vmem:[#allocation74_spill] sm:$0xff] }
  0xf5   :  { %v1479_v29 = vmul.f32 %v1414_v59, %v1329_v20  ;;  %v1480_v24 = vmul.f32 %v1418_v62, %v1329_v20  ;;  %v1481_v61 = vmul.f32 %v1422_v47, %v1329_v20  ;;  %v1482_v40 = vmul.f32 %v1426_v13, %v1329_v20 }
  0xf6   :  { %v1483_v39 = vmul.f32 %v1430_v51, %v1329_v20  ;;  %v1484_v56 = vmul.f32 %v1434_v22, %v1329_v20  ;;  %v1485_v38 = vmul.f32 %v1438_v50, %v1329_v20  ;;  %v1486_v18 = vmul.f32 %v1442_v4, %v1329_v20  ;;  %v6006_v51 = vld [vmem:[#allocation94_spill] sm:$0xff] }
  0xf7   :  { %v1487_v19 = vmul.f32 %v1446_v12, %v1329_v20  ;;  %v1488_v32 = vmul.f32 %v1450_v30, %v1329_v20  ;;  %v1489_v9 = vmul.f32 %v1454_v0, %v1329_v20  ;;  %v1490_v42 = vmul.f32 %v1458_v28, %v1329_v20  ;;  %v6000_v0 = vld [vmem:[#allocation91_spill] sm:$0xff] }
  0xf8   :  { %v4517_v7 = vadd.f32 %v1459_v45, %v4357_v35  ;;  %v4520_v16 = vadd.f32 %v1460_v48, %v4360_v41  ;;  %v4523_v11 = vadd.f32 %v1461_v1, %v4363_v63  ;;  %v4526_v47 = vadd.f32 %v1462_v49, %v4366_v34  ;;  %v5986_v34 = vld [vmem:[#allocation85_spill] sm:$0xff] }
  0xf9   :  { %v4529_v22 = vadd.f32 %v1463_v21, %v4369_v46  ;;  %v4532_v12 = vadd.f32 %v1464_v53, %v4372_v54  ;;  %v4535_v28 = vadd.f32 %v1465_v17, %v4375_v60  ;;  %v4538_v35 = vadd.f32 %v1466_v2, %v4378_v33  ;;  %v5988_v46 = vld [vmem:[#allocation37_spill] sm:$0xff]  ;;  %v5990_v54 = vld [vmem:[#allocation86_spill] sm:$0xff]  ;;  %v5992_v60 = vld [vmem:[#allocation87_spill] sm:$0xff] }
  0xfa   :  { %v4541_v41 = vadd.f32 %v1467_v25, %v4381_v58  ;;  %v4544_v63 = vadd.f32 %v1468_v6, %v4384_v44  ;;  %v4547_v49 = vadd.f32 %v1469_v26, %v5986_v34  ;;  %v4550_v1 = vadd.f32 %v1470_v8, %v5988_v46  ;;  %v5994_v33 = vld [vmem:[#allocation88_spill] sm:$0xff]  ;;  %v5996_v58 = vld [vmem:[#allocation89_spill] sm:$0xff]  ;;  %v5998_v44 = vld [vmem:[#allocation90_spill] sm:$0xff] }
  0xfb   :  { %v4553_v53 = vadd.f32 %v1471_v15, %v5990_v54  ;;  %v4556_v17 = vadd.f32 %v1472_v55, %v5992_v60  ;;  %v4559_v45 = vadd.f32 %v1473_v43, %v5994_v33  ;;  %v4562_v25 = vadd.f32 %v1474_v3, %v5996_v58  ;;  %v6002_v8 = vld [vmem:[#allocation92_spill] sm:$0xff]  ;;  %v6004_v15 = vld [vmem:[#allocation93_spill] sm:$0xff]  ;;  %v6008_v43 = vld [vmem:[#allocation95_spill] sm:$0xff] }
  0xfc   :  { %5987 = vst [vmem:[#allocation83_spill] sm:$0xff] %v4547_v49  ;;  %5989 = vst [vmem:[#allocation84_spill] sm:$0xff] %v4550_v1  ;;  %v4565_v6 = vadd.f32 %v1475_v27, %v5998_v44  ;;  %v4568_v30 = vadd.f32 %v1476_v52, %v6000_v0  ;;  %v4571_v4 = vadd.f32 %v1477_v5, %v6002_v8  ;;  %v6010_v3 = vld [vmem:[#allocation73_spill] sm:$0xff]  ;;  %v6014_v52 = vld [vmem:[#allocation75_spill] sm:$0xff] }
  0xfd   :  { %5991 = vst [vmem:[#allocation38_spill] sm:$0xff] %v4553_v53  ;;  %5993 = vst [vmem:[#allocation34_spill] sm:$0xff] %v4556_v17  ;;  %v4574_v50 = vadd.f32 %v1478_v37, %v6004_v15  ;;  %v4577_v13 = vadd.f32 %v1479_v29, %v6006_v51  ;;  %v4580_v62 = vadd.f32 %v1480_v24, %v6008_v43  ;;  %v6016_v5 = vld [vmem:[#allocation76_spill] sm:$0xff]  ;;  %v6018_v27 = vld [vmem:[#allocation77_spill] sm:$0xff] }
  0xfe   :  { %5995 = vst [vmem:[#allocation85_spill] sm:$0xff] %v4559_v45  ;;  %5997 = vst [vmem:[#allocation37_spill] sm:$0xff] %v4562_v25  ;;  %v4583_v59 = vadd.f32 %v1481_v61, %v6010_v3  ;;  %v4586_v23 = vadd.f32 %v1482_v40, %v6012_v10  ;;  %v4589_v20 = vadd.f32 %v1483_v39, %v6014_v52  ;;  %v6020_v21 = vld [vmem:[#allocation78_spill] sm:$0xff]  ;;  %v6026_v37 = vld [vmem:[#allocation81_spill] sm:$0xff] }
  0xff   :  { %5999 = vst [vmem:[#allocation86_spill] sm:$0xff] %v4565_v6  ;;  %6001 = vst [vmem:[#allocation87_spill] sm:$0xff] %v4568_v30  ;;  %v4592_v57 = vadd.f32 %v1484_v56, %v6016_v5  ;;  %v4595_v48 = vadd.f32 %v1485_v38, %v6018_v27  ;;  %v4598_v2 = vadd.f32 %v1486_v18, %v6020_v21  ;;  %v6028_v24 = vld [vmem:[#allocation82_spill] sm:$0xff]  ;;  %v6030_v40 = vld [vmem:[#allocation39_spill] sm:$0xff] }
 0x100   :  { %6003 = vst [vmem:[#allocation88_spill] sm:$0xff] %v4571_v4  ;;  %6005 = vst [vmem:[#allocation89_spill] sm:$0xff] %v4574_v50  ;;  %v4601_v26 = vadd.f32 %v1487_v19, %v6022_v31  ;;  %v4604_v55 = vadd.f32 %v1488_v32, %v6024_v36  ;;  %v4607_v29 = vadd.f32 %v1489_v9, %v6026_v37  ;;  %v6031_v39 = vld [vmem:[#allocation3_spill] sm:$0xff]  ;;  %v6032_v38 = vld [vmem:[#allocation4_spill] sm:$0xff] }
 0x101   :  { %6007 = vst [vmem:[#allocation90_spill] sm:$0xff] %v4577_v13  ;;  %6009 = vst [vmem:[#allocation91_spill] sm:$0xff] %v4580_v62  ;;  %v4610_v61 = vadd.f32 %v1490_v42, %v6028_v24  ;;  %v1530_v56 = vrot.slane %v6031_v39, %v6030_v40  ;;  %v1534_v34 = vrot.slane %v6032_v38, %v6030_v40  ;;  %v6033_v18 = vld [vmem:[#allocation5_spill] sm:$0xff]  ;;  %v6034_v19 = vld [vmem:[#allocation6_spill] sm:$0xff] }
 0x102   :  { %6011 = vst [vmem:[#allocation92_spill] sm:$0xff] %v4583_v59  ;;  %6013 = vst [vmem:[#allocation93_spill] sm:$0xff] %v4586_v23  ;;  %v1538_v46 = vrot.slane %v6033_v18, %v6030_v40  ;;  %v1542_v54 = vrot.slane %v6034_v19, %v6030_v40  ;;  %v6035_v32 = vld [vmem:[#allocation7_spill] sm:$0xff]  ;;  %v6036_v9 = vld [vmem:[#allocation8_spill] sm:$0xff] }
 0x103   :  { %6015 = vst [vmem:[#allocation94_spill] sm:$0xff] %v4589_v20  ;;  %6017 = vst [vmem:[#allocation95_spill] sm:$0xff] %v4592_v57  ;;  %v1546_v60 = vrot.slane %v6035_v32, %v6030_v40  ;;  %v1550_v33 = vrot.slane %v6036_v9, %v6030_v40  ;;  %v6037_v42 = vld [vmem:[#allocation9_spill] sm:$0xff]  ;;  %v6038_v44 = vld [vmem:[#allocation10_spill] sm:$0xff]  ;;  %v1525_v9 = vpop.permute.xlu1 %1524 }
 0x104   :  { %6019 = vst [vmem:[#allocation73_spill] sm:$0xff] %v4595_v48  ;;  %6021 = vst [vmem:[#allocation74_spill] sm:$0xff] %v4598_v2  ;;  %v1554_v58 = vrot.slane %v6037_v42, %v6030_v40  ;;  %v1558_v0 = vrot.slane %v6038_v44, %v6030_v40  ;;  %v6039_v8 = vld [vmem:[#allocation11_spill] sm:$0xff]  ;;  %v6040_v51 = vld [vmem:[#allocation12_spill] sm:$0xff]  ;;  %v1655_v59 = vmul.f32 %v1530_v56, %v1525_v9 }
 0x105   :  { %6023 = vst [vmem:[#allocation75_spill] sm:$0xff] %v4601_v26  ;;  %6025 = vst [vmem:[#allocation76_spill] sm:$0xff] %v4604_v55  ;;  %v1562_v15 = vrot.slane %v6039_v8, %v6030_v40  ;;  %v1566_v43 = vrot.slane %v6040_v51, %v6030_v40  ;;  %v6041_v3 = vld [vmem:[#allocation13_spill] sm:$0xff]  ;;  %v6042_v52 = vld [vmem:[#allocation14_spill] sm:$0xff]  ;;  %v1657_v62 = vmul.f32 %v1538_v46, %v1525_v9 }
 0x106   :  { %6027 = vst [vmem:[#allocation77_spill] sm:$0xff] %v4607_v29  ;;  %6029 = vst [vmem:[#allocation78_spill] sm:$0xff] %v4610_v61  ;;  %v1570_v10 = vrot.slane %v6041_v3, %v6030_v40  ;;  %v1574_v5 = vrot.slane %v6042_v52, %v6030_v40  ;;  %v6043_v27 = vld [vmem:[#allocation15_spill] sm:$0xff]  ;;  %v6044_v31 = vld [vmem:[#allocation16_spill] sm:$0xff]  ;;  %v1658_v13 = vmul.f32 %v1542_v54, %v1525_v9 }
 0x107   :  { %v1578_v21 = vrot.slane %v6043_v27, %v6030_v40  ;;  %v1582_v36 = vrot.slane %v6044_v31, %v6030_v40  ;;  %v6045_v37 = vld [vmem:[#allocation17_spill] sm:$0xff]  ;;  %v6046_v8 = vld [vmem:[#allocation18_spill] sm:$0xff]  ;;  %v6047_v51 = vld [vmem:[#allocation19_spill] sm:$0xff]  ;;  %v1660_v50 = vmul.f32 %v1550_v33, %v1525_v9  ;;  %v1661_v4 = vmul.f32 %v1554_v58, %v1525_v9 }
 0x108   :  { %v1586_v24 = vrot.slane %v6045_v37, %v6030_v40  ;;  %v1590_v44 = vrot.slane %v6046_v8, %v6030_v40  ;;  %v1594_v42 = vrot.slane %v6047_v51, %v6030_v40  ;;  %v6048_v3 = vld [vmem:[#allocation20_spill] sm:$0xff]  ;;  %v6049_v52 = vld [vmem:[#allocation21_spill] sm:$0xff]  ;;  %v6050_v27 = vld [vmem:[#allocation22_spill] sm:$0xff]  ;;  %v1663_v30 = vmul.f32 %v1562_v15, %v1525_v9 }
 0x109   :  { %v1598_v32 = vrot.slane %v6048_v3, %v6030_v40  ;;  %v1602_v19 = vrot.slane %v6049_v52, %v6030_v40  ;;  %v1606_v18 = vrot.slane %v6050_v27, %v6030_v40  ;;  %v6051_v31 = vld [vmem:[#allocation23_spill] sm:$0xff]  ;;  %v6052_v37 = vld [vmem:[#allocation24_spill] sm:$0xff]  ;;  %v6053_v8 = vld [vmem:[#allocation25_spill] sm:$0xff]  ;;  %v1664_v6 = vmul.f32 %v1566_v43, %v1525_v9 }
 0x10a   :  { %v1610_v38 = vrot.slane %v6051_v31, %v6030_v40  ;;  %v1614_v39 = vrot.slane %v6052_v37, %v6030_v40  ;;  %v1618_v61 = vrot.slane %v6053_v8, %v6030_v40  ;;  %v6054_v51 = vld [vmem:[#allocation26_spill] sm:$0xff]  ;;  %v6055_v3 = vld [vmem:[#allocation27_spill] sm:$0xff]  ;;  %v6056_v52 = vld [vmem:[#allocation28_spill] sm:$0xff]  ;;  %v1666_v25 = vmul.f32 %v1574_v5, %v1525_v9 }
 0x10b   :  { %v1622_v29 = vrot.slane %v6054_v51, %v6030_v40  ;;  %v1626_v55 = vrot.slane %v6055_v3, %v6030_v40  ;;  %v1630_v26 = vrot.slane %v6056_v52, %v6030_v40  ;;  %v6057_v27 = vld [vmem:[#allocation29_spill] sm:$0xff]  ;;  %v6058_v31 = vld [vmem:[#allocation30_spill] sm:$0xff]  ;;  %v6059_v37 = vld [vmem:[#allocation31_spill] sm:$0xff]  ;;  %v1654_v3 = vrot.slane %v5985_v14, %v6030_v40 }
 0x10c   :  { %v1634_v2 = vrot.slane %v6057_v27, %v6030_v40  ;;  %v1638_v48 = vrot.slane %v6058_v31, %v6030_v40  ;;  %v1642_v57 = vrot.slane %v6059_v37, %v6030_v40  ;;  %v6060_v8 = vld [vmem:[#allocation32_spill] sm:$0xff]  ;;  %v6061_v51 = vld [vmem:[#allocation33_spill] sm:$0xff]  ;;  %v1656_v52 = vmul.f32 %v1534_v34, %v1525_v9 }
 0x10d   :  { %v1646_v20 = vrot.slane %v6060_v8, %v6030_v40  ;;  %v1650_v23 = vrot.slane %v6061_v51, %v6030_v40  ;;  %v1659_v27 = vmul.f32 %v1546_v60, %v1525_v9  ;;  %v1662_v31 = vmul.f32 %v1558_v0, %v1525_v9 }
 0x10e   :  { %v1665_v37 = vmul.f32 %v1570_v10, %v1525_v9  ;;  %v1667_v45 = vmul.f32 %v1578_v21, %v1525_v9  ;;  %v1668_v8 = vmul.f32 %v1582_v36, %v1525_v9  ;;  %v1669_v17 = vmul.f32 %v1586_v24, %v1525_v9 }
 0x10f   :  { %v1670_v53 = vmul.f32 %v1590_v44, %v1525_v9  ;;  %v1671_v51 = vmul.f32 %v1594_v42, %v1525_v9  ;;  %v1672_v1 = vmul.f32 %v1598_v32, %v1525_v9  ;;  %v1673_v49 = vmul.f32 %v1602_v19, %v1525_v9  ;;  %v6088_v32 = vld [vmem:[#allocation93_spill] sm:$0xff] }
 0x110   :  { %v1674_v40 = vmul.f32 %v1606_v18, %v1525_v9  ;;  %v1675_v56 = vmul.f32 %v1610_v38, %v1525_v9  ;;  %v1676_v34 = vmul.f32 %v1614_v39, %v1525_v9  ;;  %v1677_v46 = vmul.f32 %v1618_v61, %v1525_v9 }
 0x111   :  { %v1678_v54 = vmul.f32 %v1622_v29, %v1525_v9  ;;  %v1679_v60 = vmul.f32 %v1626_v55, %v1525_v9  ;;  %v1680_v33 = vmul.f32 %v1630_v26, %v1525_v9  ;;  %v1681_v58 = vmul.f32 %v1634_v2, %v1525_v9  ;;  %v6082_v29 = vld [vmem:[#allocation90_spill] sm:$0xff] }
 0x112   :  { %v1682_v0 = vmul.f32 %v1638_v48, %v1525_v9  ;;  %v1683_v15 = vmul.f32 %v1642_v57, %v1525_v9  ;;  %v1684_v43 = vmul.f32 %v1646_v20, %v1525_v9  ;;  %v1685_v10 = vmul.f32 %v1650_v23, %v1525_v9  ;;  %v6076_v20 = vld [vmem:[#allocation87_spill] sm:$0xff] }
 0x113   :  { %v1686_v5 = vmul.f32 %v1654_v3, %v1525_v9  ;;  %v4677_v21 = vadd.f32 %v1655_v59, %v4517_v7  ;;  %v4680_v42 = vadd.f32 %v1656_v52, %v4520_v16  ;;  %v4683_v18 = vadd.f32 %v1657_v62, %v4523_v11  ;;  %v6096_v52 = vld [vmem:[#allocation74_spill] sm:$0xff] }
 0x114   :  { %v4686_v61 = vadd.f32 %v1658_v13, %v4526_v47  ;;  %v4689_v26 = vadd.f32 %v1659_v27, %v4529_v22  ;;  %v4692_v57 = vadd.f32 %v1660_v50, %v4532_v12  ;;  %v4695_v23 = vadd.f32 %v1661_v4, %v4535_v28  ;;  %v6062_v47 = vld [vmem:[#allocation83_spill] sm:$0xff]  ;;  %v6064_v22 = vld [vmem:[#allocation84_spill] sm:$0xff]  ;;  %v6066_v12 = vld [vmem:[#allocation38_spill] sm:$0xff] }
 0x115   :  { %v4698_v7 = vadd.f32 %v1662_v31, %v4538_v35  ;;  %v4701_v16 = vadd.f32 %v1663_v30, %v4541_v41  ;;  %v4704_v11 = vadd.f32 %v1664_v6, %v4544_v63  ;;  %v4707_v13 = vadd.f32 %v1665_v37, %v6062_v47  ;;  %v6068_v28 = vld [vmem:[#allocation34_spill] sm:$0xff]  ;;  %v6070_v35 = vld [vmem:[#allocation85_spill] sm:$0xff]  ;;  %v6098_v31 = vld [vmem:[#allocation75_spill] sm:$0xff] }
 0x116   :  { %v4710_v62 = vadd.f32 %v1666_v25, %v6064_v22  ;;  %v4713_v50 = vadd.f32 %v1667_v45, %v6066_v12  ;;  %v4716_v4 = vadd.f32 %v1668_v8, %v6068_v28  ;;  %v4719_v59 = vadd.f32 %v1669_v17, %v6070_v35  ;;  %v6072_v41 = vld [vmem:[#allocation37_spill] sm:$0xff]  ;;  %v6074_v63 = vld [vmem:[#allocation86_spill] sm:$0xff]  ;;  %v6078_v25 = vld [vmem:[#allocation88_spill] sm:$0xff] }
 0x117   :  { %6063 = vst [vmem:[#allocation79_spill] sm:$0xff] %v4707_v13  ;;  %v4722_v30 = vadd.f32 %v1670_v53, %v6072_v41  ;;  %v4725_v6 = vadd.f32 %v1671_v51, %v6074_v63  ;;  %v4728_v48 = vadd.f32 %v1672_v1, %v6076_v20  ;;  %v4731_v2 = vadd.f32 %v1673_v49, %v6078_v25  ;;  %v6080_v45 = vld [vmem:[#allocation89_spill] sm:$0xff]  ;;  %v6084_v17 = vld [vmem:[#allocation91_spill] sm:$0xff]  ;;  %v6086_v53 = vld [vmem:[#allocation92_spill] sm:$0xff] }
 0x118   :  { %6065 = vst [vmem:[#allocation80_spill] sm:$0xff] %v4710_v62  ;;  %6067 = vst [vmem:[#allocation81_spill] sm:$0xff] %v4713_v50  ;;  %v4734_v55 = vadd.f32 %v1674_v40, %v6080_v45  ;;  %v4737_v39 = vadd.f32 %v1675_v56, %v6082_v29  ;;  %v4740_v38 = vadd.f32 %v1676_v34, %v6084_v17  ;;  %v6090_v1 = vld [vmem:[#allocation94_spill] sm:$0xff]  ;;  %v6092_v49 = vld [vmem:[#allocation95_spill] sm:$0xff] }
 0x119   :  { %6069 = vst [vmem:[#allocation82_spill] sm:$0xff] %v4716_v4  ;;  %6071 = vst [vmem:[#allocation39_spill] sm:$0xff] %v4719_v59  ;;  %v4743_v19 = vadd.f32 %v1677_v46, %v6086_v53  ;;  %v4746_v9 = vadd.f32 %v1678_v54, %v6088_v32  ;;  %v4749_v44 = vadd.f32 %v1679_v60, %v6090_v1  ;;  %v6094_v51 = vld [vmem:[#allocation73_spill] sm:$0xff]  ;;  %v6100_v37 = vld [vmem:[#allocation76_spill] sm:$0xff] }
 0x11a   :  { %6073 = vst [vmem:[#allocation83_spill] sm:$0xff] %v4722_v30  ;;  %6075 = vst [vmem:[#allocation84_spill] sm:$0xff] %v4725_v6  ;;  %v4752_v8 = vadd.f32 %v1680_v33, %v6092_v49  ;;  %v4755_v3 = vadd.f32 %v1681_v58, %v6094_v51  ;;  %v4758_v27 = vadd.f32 %v1682_v0, %v6096_v52  ;;  %v6102_v40 = vld [vmem:[#allocation77_spill] sm:$0xff]  ;;  %v6104_v34 = vld [vmem:[#allocation78_spill] sm:$0xff] }
 0x11b   :  { %6077 = vst [vmem:[#allocation38_spill] sm:$0xff] %v4728_v48  ;;  %6079 = vst [vmem:[#allocation34_spill] sm:$0xff] %v4731_v2  ;;  %v4761_v36 = vadd.f32 %v1683_v15, %v6098_v31  ;;  %v4764_v24 = vadd.f32 %v1684_v43, %v6100_v37  ;;  %v4767_v56 = vadd.f32 %v1685_v10, %v6102_v40  ;;  %v6106_v54 = vld [vmem:[#allocation40_spill] sm:$0xff]  ;;  %v6107_v60 = vld [vmem:[#allocation3_spill] sm:$0xff] }
 0x11c   :  { %6081 = vst [vmem:[#allocation85_spill] sm:$0xff] %v4734_v55  ;;  %6083 = vst [vmem:[#allocation37_spill] sm:$0xff] %v4737_v39  ;;  %v4770_v46 = vadd.f32 %v1686_v5, %v6104_v34  ;;  %v1726_v33 = vrot.slane %v6107_v60, %v6106_v54  ;;  %v6108_v58 = vld [vmem:[#allocation4_spill] sm:$0xff]  ;;  %v6109_v0 = vld [vmem:[#allocation5_spill] sm:$0xff] }
 0x11d   :  { %6085 = vst [vmem:[#allocation86_spill] sm:$0xff] %v4740_v38  ;;  %6087 = vst [vmem:[#allocation87_spill] sm:$0xff] %v4743_v19  ;;  %v1730_v47 = vrot.slane %v6108_v58, %v6106_v54  ;;  %v1734_v22 = vrot.slane %v6109_v0, %v6106_v54  ;;  %v6110_v15 = vld [vmem:[#allocation6_spill] sm:$0xff]  ;;  %v6111_v43 = vld [vmem:[#allocation7_spill] sm:$0xff] }
 0x11e   :  { %6089 = vst [vmem:[#allocation88_spill] sm:$0xff] %v4746_v9  ;;  %6091 = vst [vmem:[#allocation89_spill] sm:$0xff] %v4749_v44  ;;  %v1738_v12 = vrot.slane %v6110_v15, %v6106_v54  ;;  %v1742_v28 = vrot.slane %v6111_v43, %v6106_v54  ;;  %v6112_v10 = vld [vmem:[#allocation8_spill] sm:$0xff]  ;;  %v6113_v5 = vld [vmem:[#allocation9_spill] sm:$0xff]  ;;  %v1721_v43 = vpop.permute.xlu0 %1720 }
 0x11f   :  { %6093 = vst [vmem:[#allocation90_spill] sm:$0xff] %v4752_v8  ;;  %6095 = vst [vmem:[#allocation91_spill] sm:$0xff] %v4755_v3  ;;  %v1746_v35 = vrot.slane %v6112_v10, %v6106_v54  ;;  %v1750_v41 = vrot.slane %v6113_v5, %v6106_v54  ;;  %v6114_v63 = vld [vmem:[#allocation10_spill] sm:$0xff]  ;;  %v6115_v25 = vld [vmem:[#allocation11_spill] sm:$0xff]  ;;  %v1851_v19 = vmul.f32 %v1726_v33, %v1721_v43 }
 0x120   :  { %6097 = vst [vmem:[#allocation92_spill] sm:$0xff] %v4758_v27  ;;  %6099 = vst [vmem:[#allocation93_spill] sm:$0xff] %v4761_v36  ;;  %v1754_v20 = vrot.slane %v6114_v63, %v6106_v54  ;;  %v1758_v45 = vrot.slane %v6115_v25, %v6106_v54  ;;  %v6116_v29 = vld [vmem:[#allocation12_spill] sm:$0xff]  ;;  %v6117_v53 = vld [vmem:[#allocation13_spill] sm:$0xff]  ;;  %v1853_v38 = vmul.f32 %v1734_v22, %v1721_v43 }
 0x121   :  { %6101 = vst [vmem:[#allocation94_spill] sm:$0xff] %v4764_v24  ;;  %6103 = vst [vmem:[#allocation95_spill] sm:$0xff] %v4767_v56  ;;  %v1762_v17 = vrot.slane %v6116_v29, %v6106_v54  ;;  %v1766_v32 = vrot.slane %v6117_v53, %v6106_v54  ;;  %v6118_v1 = vld [vmem:[#allocation14_spill] sm:$0xff]  ;;  %v6119_v51 = vld [vmem:[#allocation15_spill] sm:$0xff]  ;;  %v1854_v39 = vmul.f32 %v1738_v12, %v1721_v43 }
 0x122   :  { %6105 = vst [vmem:[#allocation73_spill] sm:$0xff] %v4770_v46  ;;  %v1770_v49 = vrot.slane %v6118_v1, %v6106_v54  ;;  %v1774_v52 = vrot.slane %v6119_v51, %v6106_v54  ;;  %v6120_v31 = vld [vmem:[#allocation16_spill] sm:$0xff]  ;;  %v6121_v40 = vld [vmem:[#allocation17_spill] sm:$0xff]  ;;  %v6122_v60 = vld [vmem:[#allocation18_spill] sm:$0xff]  ;;  %v1856_v55 = vmul.f32 %v1746_v35, %v1721_v43  ;;  %v1857_v2 = vmul.f32 %v1750_v41, %v1721_v43 }
 0x123   :  { %v1778_v37 = vrot.slane %v6120_v31, %v6106_v54  ;;  %v1782_v34 = vrot.slane %v6121_v40, %v6106_v54  ;;  %v1786_v58 = vrot.slane %v6122_v60, %v6106_v54  ;;  %v6123_v0 = vld [vmem:[#allocation19_spill] sm:$0xff]  ;;  %v6124_v10 = vld [vmem:[#allocation20_spill] sm:$0xff]  ;;  %v6125_v63 = vld [vmem:[#allocation21_spill] sm:$0xff]  ;;  %v1859_v48 = vmul.f32 %v1758_v45, %v1721_v43 }
 0x124   :  { %v1790_v15 = vrot.slane %v6123_v0, %v6106_v54  ;;  %v1794_v5 = vrot.slane %v6124_v10, %v6106_v54  ;;  %v1798_v25 = vrot.slane %v6125_v63, %v6106_v54  ;;  %v6126_v29 = vld [vmem:[#allocation22_spill] sm:$0xff]  ;;  %v6127_v1 = vld [vmem:[#allocation23_spill] sm:$0xff]  ;;  %v6128_v31 = vld [vmem:[#allocation24_spill] sm:$0xff]  ;;  %v1860_v6 = vmul.f32 %v1762_v17, %v1721_v43 }
 0x125   :  { %v1802_v53 = vrot.slane %v6126_v29, %v6106_v54  ;;  %v1806_v51 = vrot.slane %v6127_v1, %v6106_v54  ;;  %v1810_v40 = vrot.slane %v6128_v31, %v6106_v54  ;;  %v6129_v60 = vld [vmem:[#allocation25_spill] sm:$0xff]  ;;  %v6130_v0 = vld [vmem:[#allocation26_spill] sm:$0xff]  ;;  %v6131_v10 = vld [vmem:[#allocation27_spill] sm:$0xff]  ;;  %v1862_v30 = vmul.f32 %v1770_v49, %v1721_v43 }
 0x126   :  { %v1814_v46 = vrot.slane %v6129_v60, %v6106_v54  ;;  %v1818_v56 = vrot.slane %v6130_v0, %v6106_v54  ;;  %v1822_v24 = vrot.slane %v6131_v10, %v6106_v54  ;;  %v6132_v63 = vld [vmem:[#allocation28_spill] sm:$0xff]  ;;  %v6133_v29 = vld [vmem:[#allocation29_spill] sm:$0xff]  ;;  %v6134_v1 = vld [vmem:[#allocation30_spill] sm:$0xff]  ;;  %v1850_v10 = vrot.slane %v5985_v14, %v6106_v54 }
 0x127   :  { %v1826_v36 = vrot.slane %v6132_v63, %v6106_v54  ;;  %v1830_v27 = vrot.slane %v6133_v29, %v6106_v54  ;;  %v1834_v3 = vrot.slane %v6134_v1, %v6106_v54  ;;  %v6135_v31 = vld [vmem:[#allocation31_spill] sm:$0xff]  ;;  %v6136_v60 = vld [vmem:[#allocation32_spill] sm:$0xff]  ;;  %v6137_v0 = vld [vmem:[#allocation33_spill] sm:$0xff]  ;;  %v1852_v63 = vmul.f32 %v1730_v47, %v1721_v43 }
 0x128   :  { %v1838_v8 = vrot.slane %v6135_v31, %v6106_v54  ;;  %v1842_v44 = vrot.slane %v6136_v60, %v6106_v54  ;;  %v1846_v9 = vrot.slane %v6137_v0, %v6106_v54  ;;  %v1855_v29 = vmul.f32 %v1742_v28, %v1721_v43 }
 0x129   :  { %v1858_v1 = vmul.f32 %v1754_v20, %v1721_v43  ;;  %v1861_v31 = vmul.f32 %v1766_v32, %v1721_v43  ;;  %v1863_v59 = vmul.f32 %v1774_v52, %v1721_v43  ;;  %v1864_v60 = vmul.f32 %v1778_v37, %v1721_v43 }
 0x12a   :  { %v1865_v4 = vmul.f32 %v1782_v34, %v1721_v43  ;;  %v1866_v50 = vmul.f32 %v1786_v58, %v1721_v43  ;;  %v1867_v0 = vmul.f32 %v1790_v15, %v1721_v43  ;;  %v1868_v62 = vmul.f32 %v1794_v5, %v1721_v43 }
 0x12b   :  { %v1869_v13 = vmul.f32 %v1798_v25, %v1721_v43  ;;  %v1870_v14 = vmul.f32 %v1802_v53, %v1721_v43  ;;  %v1871_v54 = vmul.f32 %v1806_v51, %v1721_v43  ;;  %v1872_v33 = vmul.f32 %v1810_v40, %v1721_v43  ;;  %v6170_v51 = vld [vmem:[#allocation91_spill] sm:$0xff] }
 0x12c   :  { %v1873_v47 = vmul.f32 %v1814_v46, %v1721_v43  ;;  %v1874_v22 = vmul.f32 %v1818_v56, %v1721_v43  ;;  %v1875_v12 = vmul.f32 %v1822_v24, %v1721_v43  ;;  %v1876_v28 = vmul.f32 %v1826_v36, %v1721_v43  ;;  %v6158_v56 = vld [vmem:[#allocation37_spill] sm:$0xff] }
 0x12d   :  { %v1877_v35 = vmul.f32 %v1830_v27, %v1721_v43  ;;  %v1878_v41 = vmul.f32 %v1834_v3, %v1721_v43  ;;  %v1879_v20 = vmul.f32 %v1838_v8, %v1721_v43  ;;  %v1880_v45 = vmul.f32 %v1842_v44, %v1721_v43  ;;  %v6152_v44 = vld [vmem:[#allocation38_spill] sm:$0xff] }
 0x12e   :  { %v1881_v17 = vmul.f32 %v1846_v9, %v1721_v43  ;;  %v1882_v32 = vmul.f32 %v1850_v10, %v1721_v43  ;;  %v4837_v49 = vadd.f32 %v1851_v19, %v4677_v21  ;;  %v4840_v52 = vadd.f32 %v1852_v63, %v4680_v42  ;;  %v6164_v43 = vld [vmem:[#allocation88_spill] sm:$0xff] }
 0x12f   :  { %v4843_v37 = vadd.f32 %v1853_v38, %v4683_v18  ;;  %v4846_v46 = vadd.f32 %v1854_v39, %v4686_v61  ;;  %v4849_v36 = vadd.f32 %v1855_v29, %v4689_v26  ;;  %v4852_v8 = vadd.f32 %v1856_v55, %v4692_v57  ;;  %v6138_v61 = vld [vmem:[#allocation79_spill] sm:$0xff]  ;;  %v6140_v26 = vld [vmem:[#allocation80_spill] sm:$0xff]  ;;  %v6142_v57 = vld [vmem:[#allocation81_spill] sm:$0xff] }
 0x130   :  { %v4855_v9 = vadd.f32 %v1857_v2, %v4695_v23  ;;  %v4858_v21 = vadd.f32 %v1858_v1, %v4698_v7  ;;  %v4861_v42 = vadd.f32 %v1859_v48, %v4701_v16  ;;  %v4864_v18 = vadd.f32 %v1860_v6, %v4704_v11  ;;  %v6144_v23 = vld [vmem:[#allocation82_spill] sm:$0xff]  ;;  %v6146_v7 = vld [vmem:[#allocation39_spill] sm:$0xff]  ;;  %v6150_v11 = vld [vmem:[#allocation84_spill] sm:$0xff] }
 0x131   :  { %v4867_v39 = vadd.f32 %v1861_v31, %v6138_v61  ;;  %v4870_v38 = vadd.f32 %v1862_v30, %v6140_v26  ;;  %v4873_v55 = vadd.f32 %v1863_v59, %v6142_v57  ;;  %v4876_v2 = vadd.f32 %v1864_v60, %v6144_v23  ;;  %v6148_v16 = vld [vmem:[#allocation83_spill] sm:$0xff]  ;;  %v6154_v30 = vld [vmem:[#allocation34_spill] sm:$0xff]  ;;  %v6156_v59 = vld [vmem:[#allocation85_spill] sm:$0xff] }
 0x132   :  { %v4879_v19 = vadd.f32 %v1865_v4, %v6146_v7  ;;  %v4882_v48 = vadd.f32 %v1866_v50, %v6148_v16  ;;  %v4885_v6 = vadd.f32 %v1867_v0, %v6150_v11  ;;  %v4888_v3 = vadd.f32 %v1868_v62, %v6152_v44  ;;  %v6160_v4 = vld [vmem:[#allocation86_spill] sm:$0xff]  ;;  %v6162_v50 = vld [vmem:[#allocation87_spill] sm:$0xff]  ;;  %v6166_v62 = vld [vmem:[#allocation89_spill] sm:$0xff] }
 0x133   :  { %6139 = vst [vmem:[#allocation74_spill] sm:$0xff] %v4867_v39  ;;  %6141 = vst [vmem:[#allocation75_spill] sm:$0xff] %v4870_v38  ;;  %v4891_v27 = vadd.f32 %v1869_v13, %v6154_v30  ;;  %v4894_v24 = vadd.f32 %v1870_v14, %v6156_v59  ;;  %v4897_v34 = vadd.f32 %v1871_v54, %v6158_v56  ;;  %v6168_v13 = vld [vmem:[#allocation90_spill] sm:$0xff]  ;;  %v6172_v10 = vld [vmem:[#allocation92_spill] sm:$0xff] }
 0x134   :  { %6143 = vst [vmem:[#allocation76_spill] sm:$0xff] %v4873_v55  ;;  %6145 = vst [vmem:[#allocation77_spill] sm:$0xff] %v4876_v2  ;;  %v4900_v58 = vadd.f32 %v1872_v33, %v6160_v4  ;;  %v4903_v15 = vadd.f32 %v1873_v47, %v6162_v50  ;;  %v4906_v5 = vadd.f32 %v1874_v22, %v6164_v43  ;;  %v6174_v29 = vld [vmem:[#allocation93_spill] sm:$0xff]  ;;  %v6176_v31 = vld [vmem:[#allocation94_spill] sm:$0xff] }
 0x135   :  { %6147 = vst [vmem:[#allocation78_spill] sm:$0xff] %v4879_v19  ;;  %6149 = vst [vmem:[#allocation40_spill] sm:$0xff] %v4882_v48  ;;  %v4909_v25 = vadd.f32 %v1875_v12, %v6166_v62  ;;  %v4912_v53 = vadd.f32 %v1876_v28, %v6168_v13  ;;  %v4915_v40 = vadd.f32 %v1877_v35, %v6170_v51  ;;  %v6178_v0 = vld [vmem:[#allocation95_spill] sm:$0xff]  ;;  %v6180_v54 = vld [vmem:[#allocation73_spill] sm:$0xff] }
 0x136   :  { %6151 = vst [vmem:[#allocation3_spill] sm:$0xff] %v4885_v6  ;;  %6153 = vst [vmem:[#allocation4_spill] sm:$0xff] %v4888_v3  ;;  %v4918_v63 = vadd.f32 %v1878_v41, %v6172_v10  ;;  %v4921_v1 = vadd.f32 %v1879_v20, %v6174_v29  ;;  %v4924_v60 = vadd.f32 %v1880_v45, %v6176_v31  ;;  %v6182_v47 = vld [vmem:[#allocation35_spill] sm:$0xff]  ;;  %v6183_v22 = vld [vmem:[#allocation41_spill] sm:$0xff] }
 0x137   :  { %6155 = vst [vmem:[#allocation5_spill] sm:$0xff] %v4891_v27  ;;  %6157 = vst [vmem:[#allocation6_spill] sm:$0xff] %v4894_v24  ;;  %v4927_v14 = vadd.f32 %v1881_v17, %v6178_v0  ;;  %v4930_v33 = vadd.f32 %v1882_v32, %v6180_v54  ;;  %v1923_v12 = vrot.slane %v6183_v22, %v6182_v47  ;;  %v6184_v28 = vld [vmem:[#allocation42_spill] sm:$0xff]  ;;  %v6185_v41 = vld [vmem:[#allocation43_spill] sm:$0xff] }
 0x138   :  { %6159 = vst [vmem:[#allocation7_spill] sm:$0xff] %v4897_v34  ;;  %6161 = vst [vmem:[#allocation8_spill] sm:$0xff] %v4900_v58  ;;  %v1927_v35 = vrot.slane %v6184_v28, %v6182_v47  ;;  %v1931_v61 = vrot.slane %v6185_v41, %v6182_v47  ;;  %v6186_v20 = vld [vmem:[#allocation44_spill] sm:$0xff]  ;;  %v6187_v45 = vld [vmem:[#allocation45_spill] sm:$0xff] }
 0x139   :  { %6163 = vst [vmem:[#allocation9_spill] sm:$0xff] %v4903_v15  ;;  %6165 = vst [vmem:[#allocation10_spill] sm:$0xff] %v4906_v5  ;;  %v1935_v26 = vrot.slane %v6186_v20, %v6182_v47  ;;  %v1939_v57 = vrot.slane %v6187_v45, %v6182_v47  ;;  %v6188_v17 = vld [vmem:[#allocation46_spill] sm:$0xff]  ;;  %v6189_v32 = vld [vmem:[#allocation47_spill] sm:$0xff] }
 0x13a   :  { %6167 = vst [vmem:[#allocation11_spill] sm:$0xff] %v4909_v25  ;;  %6169 = vst [vmem:[#allocation12_spill] sm:$0xff] %v4912_v53  ;;  %v1943_v23 = vrot.slane %v6188_v17, %v6182_v47  ;;  %v1947_v7 = vrot.slane %v6189_v32, %v6182_v47  ;;  %v6190_v16 = vld [vmem:[#allocation48_spill] sm:$0xff]  ;;  %v6191_v44 = vld [vmem:[#allocation49_spill] sm:$0xff]  ;;  %v1918_v32 = vpop.permute.xlu1 %1917 }
 0x13b   :  { %6171 = vst [vmem:[#allocation13_spill] sm:$0xff] %v4915_v40  ;;  %6173 = vst [vmem:[#allocation14_spill] sm:$0xff] %v4918_v63  ;;  %v1951_v11 = vrot.slane %v6190_v16, %v6182_v47  ;;  %v1955_v30 = vrot.slane %v6191_v44, %v6182_v47  ;;  %v6192_v59 = vld [vmem:[#allocation50_spill] sm:$0xff]  ;;  %v6193_v4 = vld [vmem:[#allocation51_spill] sm:$0xff]  ;;  %v2048_v15 = vmul.f32 %v1923_v12, %v1918_v32 }
 0x13c   :  { %6175 = vst [vmem:[#allocation15_spill] sm:$0xff] %v4921_v1  ;;  %6177 = vst [vmem:[#allocation16_spill] sm:$0xff] %v4924_v60  ;;  %v1959_v56 = vrot.slane %v6192_v59, %v6182_v47  ;;  %v1963_v50 = vrot.slane %v6193_v4, %v6182_v47  ;;  %v6194_v43 = vld [vmem:[#allocation52_spill] sm:$0xff]  ;;  %v6195_v13 = vld [vmem:[#allocation53_spill] sm:$0xff]  ;;  %v2050_v58 = vmul.f32 %v1931_v61, %v1918_v32 }
 0x13d   :  { %6179 = vst [vmem:[#allocation17_spill] sm:$0xff] %v4927_v14  ;;  %6181 = vst [vmem:[#allocation18_spill] sm:$0xff] %v4930_v33  ;;  %v1967_v62 = vrot.slane %v6194_v43, %v6182_v47  ;;  %v1971_v51 = vrot.slane %v6195_v13, %v6182_v47  ;;  %v6196_v10 = vld [vmem:[#allocation54_spill] sm:$0xff]  ;;  %v6197_v31 = vld [vmem:[#allocation55_spill] sm:$0xff]  ;;  %v2051_v34 = vmul.f32 %v1935_v26, %v1918_v32 }
 0x13e   :  { %v1975_v29 = vrot.slane %v6196_v10, %v6182_v47  ;;  %v1979_v0 = vrot.slane %v6197_v31, %v6182_v47  ;;  %v6198_v54 = vld [vmem:[#allocation56_spill] sm:$0xff]  ;;  %v6199_v59 = vld [vmem:[#allocation57_spill] sm:$0xff]  ;;  %v6200_v4 = vld [vmem:[#allocation58_spill] sm:$0xff]  ;;  %v2053_v24 = vmul.f32 %v1943_v23, %v1918_v32  ;;  %v2054_v27 = vmul.f32 %v1947_v7, %v1918_v32 }
 0x13f   :  { %v1983_v44 = vrot.slane %v6198_v54, %v6182_v47  ;;  %v1987_v16 = vrot.slane %v6199_v59, %v6182_v47  ;;  %v1991_v17 = vrot.slane %v6200_v4, %v6182_v47  ;;  %v6201_v43 = vld [vmem:[#allocation59_spill] sm:$0xff]  ;;  %v6202_v13 = vld [vmem:[#allocation60_spill] sm:$0xff]  ;;  %v6203_v10 = vld [vmem:[#allocation61_spill] sm:$0xff]  ;;  %v2056_v3 = vmul.f32 %v1955_v30, %v1918_v32 }
 0x140   :  { %v1995_v45 = vrot.slane %v6201_v43, %v6182_v47  ;;  %v1999_v20 = vrot.slane %v6202_v13, %v6182_v47  ;;  %v2003_v41 = vrot.slane %v6203_v10, %v6182_v47  ;;  %v6204_v31 = vld [vmem:[#allocation62_spill] sm:$0xff]  ;;  %v6205_v54 = vld [vmem:[#allocation63_spill] sm:$0xff]  ;;  %v6206_v59 = vld [vmem:[#allocation64_spill] sm:$0xff]  ;;  %v2057_v6 = vmul.f32 %v1959_v56, %v1918_v32 }
 0x141   :  { %v2007_v28 = vrot.slane %v6204_v31, %v6182_v47  ;;  %v2011_v22 = vrot.slane %v6205_v54, %v6182_v47  ;;  %v2015_v33 = vrot.slane %v6206_v59, %v6182_v47  ;;  %v6207_v4 = vld [vmem:[#allocation65_spill] sm:$0xff]  ;;  %v6208_v43 = vld [vmem:[#allocation66_spill] sm:$0xff]  ;;  %v6209_v13 = vld [vmem:[#allocation67_spill] sm:$0xff]  ;;  %v2059_v48 = vmul.f32 %v1967_v62, %v1918_v32 }
 0x142   :  { %v2019_v14 = vrot.slane %v6207_v4, %v6182_v47  ;;  %v2023_v60 = vrot.slane %v6208_v43, %v6182_v47  ;;  %v2027_v1 = vrot.slane %v6209_v13, %v6182_v47  ;;  %v6210_v10 = vld [vmem:[#allocation68_spill] sm:$0xff]  ;;  %v6211_v31 = vld [vmem:[#allocation69_spill] sm:$0xff]  ;;  %v6212_v54 = vld [vmem:[#allocation70_spill] sm:$0xff]  ;;  %v2049_v43 = vmul.f32 %v1927_v35, %v1918_v32 }
 0x143   :  { %v2031_v63 = vrot.slane %v6210_v10, %v6182_v47  ;;  %v2035_v40 = vrot.slane %v6211_v31, %v6182_v47  ;;  %v2039_v53 = vrot.slane %v6212_v54, %v6182_v47  ;;  %v6213_v59 = vld [vmem:[#allocation71_spill] sm:$0xff]  ;;  %v6214_v4 = vld [vmem:[#allocation72_spill] sm:$0xff]  ;;  %v2052_v13 = vmul.f32 %v1939_v57, %v1918_v32 }
 0x144   :  { %v2043_v25 = vrot.slane %v6213_v59, %v6182_v47  ;;  %v2047_v5 = vrot.slane %v6214_v4, %v6182_v47  ;;  %v2055_v10 = vmul.f32 %v1951_v11, %v1918_v32  ;;  %v2058_v31 = vmul.f32 %v1963_v50, %v1918_v32 }
 0x145   :  { %v2060_v19 = vmul.f32 %v1971_v51, %v1918_v32  ;;  %v2061_v54 = vmul.f32 %v1975_v29, %v1918_v32  ;;  %v2062_v2 = vmul.f32 %v1979_v0, %v1918_v32  ;;  %v2063_v55 = vmul.f32 %v1983_v44, %v1918_v32  ;;  %v6251_v29 = vld [vmem:[#allocation15_spill] sm:$0xff]  ;;  %v6253_v0 = vld [vmem:[#allocation16_spill] sm:$0xff] }
 0x146   :  { %v2064_v59 = vmul.f32 %v1987_v16, %v1918_v32  ;;  %v2065_v38 = vmul.f32 %v1991_v17, %v1918_v32  ;;  %v2066_v39 = vmul.f32 %v1995_v45, %v1918_v32  ;;  %v2067_v47 = vmul.f32 %v1999_v20, %v1918_v32  ;;  %v6241_v45 = vld [vmem:[#allocation10_spill] sm:$0xff] }
 0x147   :  { %v2068_v12 = vmul.f32 %v2003_v41, %v1918_v32  ;;  %v2069_v35 = vmul.f32 %v2007_v28, %v1918_v32  ;;  %v2070_v61 = vmul.f32 %v2011_v22, %v1918_v32  ;;  %v2071_v26 = vmul.f32 %v2015_v33, %v1918_v32 }
 0x148   :  { %v2072_v57 = vmul.f32 %v2019_v14, %v1918_v32  ;;  %v2073_v23 = vmul.f32 %v2023_v60, %v1918_v32  ;;  %v2074_v7 = vmul.f32 %v2027_v1, %v1918_v32  ;;  %v2075_v11 = vmul.f32 %v2031_v63, %v1918_v32  ;;  %v6235_v14 = vld [vmem:[#allocation7_spill] sm:$0xff] }
 0x149   :  { %v2076_v30 = vmul.f32 %v2035_v40, %v1918_v32  ;;  %v2077_v56 = vmul.f32 %v2039_v53, %v1918_v32  ;;  %v2078_v50 = vmul.f32 %v2043_v25, %v1918_v32  ;;  %v2079_v62 = vmul.f32 %v2047_v5, %v1918_v32  ;;  %v6229_v25 = vld [vmem:[#allocation4_spill] sm:$0xff] }
 0x14a   :  { %v4997_v51 = vadd.f32 %v2048_v15, %v4837_v49  ;;  %v5000_v16 = vadd.f32 %v2049_v43, %v4840_v52  ;;  %v5003_v20 = vadd.f32 %v2050_v58, %v4843_v37  ;;  %v5006_v22 = vadd.f32 %v2051_v34, %v4846_v46  ;;  %v6215_v46 = vld [vmem:[#allocation74_spill] sm:$0xff] }
 0x14b   :  { %v5009_v60 = vadd.f32 %v2052_v13, %v4849_v36  ;;  %v5012_v40 = vadd.f32 %v2053_v24, %v4852_v8  ;;  %v5015_v5 = vadd.f32 %v2054_v27, %v4855_v9  ;;  %v5018_v49 = vadd.f32 %v2055_v10, %v4858_v21  ;;  %v6217_v36 = vld [vmem:[#allocation75_spill] sm:$0xff]  ;;  %v6219_v8 = vld [vmem:[#allocation76_spill] sm:$0xff]  ;;  %v6221_v9 = vld [vmem:[#allocation77_spill] sm:$0xff] }
 0x14c   :  { %v5021_v52 = vadd.f32 %v2056_v3, %v4861_v42  ;;  %v5024_v37 = vadd.f32 %v2057_v6, %v4864_v18  ;;  %v5027_v34 = vadd.f32 %v2058_v31, %v6215_v46  ;;  %v5030_v58 = vadd.f32 %v2059_v48, %v6217_v36  ;;  %v6223_v21 = vld [vmem:[#allocation78_spill] sm:$0xff]  ;;  %v6225_v42 = vld [vmem:[#allocation40_spill] sm:$0xff]  ;;  %v6227_v18 = vld [vmem:[#allocation3_spill] sm:$0xff] }
 0x14d   :  { %v5033_v24 = vadd.f32 %v2060_v19, %v6219_v8  ;;  %v5036_v27 = vadd.f32 %v2061_v54, %v6221_v9  ;;  %v5039_v15 = vadd.f32 %v2062_v2, %v6223_v21  ;;  %v5042_v3 = vadd.f32 %v2063_v55, %v6225_v42  ;;  %v6231_v48 = vld [vmem:[#allocation5_spill] sm:$0xff]  ;;  %v6233_v19 = vld [vmem:[#allocation6_spill] sm:$0xff]  ;;  %v6237_v2 = vld [vmem:[#allocation8_spill] sm:$0xff] }
 0x14e   :  { %6216 = vst [vmem:[#allocation19_spill] sm:$0xff] %v5027_v34  ;;  %6218 = vst [vmem:[#allocation20_spill] sm:$0xff] %v5030_v58  ;;  %v5045_v6 = vadd.f32 %v2064_v59, %v6227_v18  ;;  %v5048_v53 = vadd.f32 %v2065_v38, %v6229_v25  ;;  %v5051_v63 = vadd.f32 %v2066_v39, %v6231_v48  ;;  %v6239_v55 = vld [vmem:[#allocation9_spill] sm:$0xff]  ;;  %v6243_v38 = vld [vmem:[#allocation11_spill] sm:$0xff] }
 0x14f   :  { %6220 = vst [vmem:[#allocation21_spill] sm:$0xff] %v5033_v24  ;;  %6222 = vst [vmem:[#allocation22_spill] sm:$0xff] %v5036_v27  ;;  %v5054_v1 = vadd.f32 %v2067_v47, %v6233_v19  ;;  %v5057_v33 = vadd.f32 %v2068_v12, %v6235_v14  ;;  %v5060_v28 = vadd.f32 %v2069_v35, %v6237_v2  ;;  %v6245_v39 = vld [vmem:[#allocation12_spill] sm:$0xff]  ;;  %v6247_v59 = vld [vmem:[#allocation13_spill] sm:$0xff] }
 0x150   :  { %6224 = vst [vmem:[#allocation23_spill] sm:$0xff] %v5039_v15  ;;  %6226 = vst [vmem:[#allocation24_spill] sm:$0xff] %v5042_v3  ;;  %v5063_v41 = vadd.f32 %v2070_v61, %v6239_v55  ;;  %v5066_v17 = vadd.f32 %v2071_v26, %v6241_v45  ;;  %v5069_v32 = vadd.f32 %v2072_v57, %v6243_v38  ;;  %v6249_v13 = vld [vmem:[#allocation14_spill] sm:$0xff]  ;;  %v6255_v47 = vld [vmem:[#allocation17_spill] sm:$0xff] }
 0x151   :  { %6228 = vst [vmem:[#allocation25_spill] sm:$0xff] %v5045_v6  ;;  %6230 = vst [vmem:[#allocation26_spill] sm:$0xff] %v5048_v53  ;;  %v5072_v44 = vadd.f32 %v2073_v23, %v6245_v39  ;;  %v5075_v43 = vadd.f32 %v2074_v7, %v6247_v59  ;;  %v5078_v10 = vadd.f32 %v2075_v11, %v6249_v13  ;;  %v6257_v35 = vld [vmem:[#allocation18_spill] sm:$0xff]  ;;  %v6260_v57 = vld [vmem:[#allocation41_spill] sm:$0xff] }
 0x152   :  { %6232 = vst [vmem:[#allocation27_spill] sm:$0xff] %v5051_v63  ;;  %6234 = vst [vmem:[#allocation28_spill] sm:$0xff] %v5054_v1  ;;  %v5081_v31 = vadd.f32 %v2076_v30, %v6251_v29  ;;  %v5084_v54 = vadd.f32 %v2077_v56, %v6253_v0  ;;  %v5087_v12 = vadd.f32 %v2078_v50, %v6255_v47  ;;  %v6259_v26 = vld [vmem:[#allocation2_spill] sm:$0xff]  ;;  %v6262_v11 = vld [vmem:[#allocation43_spill] sm:$0xff] }
 0x153   :  { %6236 = vst [vmem:[#allocation29_spill] sm:$0xff] %v5057_v33  ;;  %6238 = vst [vmem:[#allocation30_spill] sm:$0xff] %v5060_v28  ;;  %v5090_v61 = vadd.f32 %v2079_v62, %v6257_v35  ;;  %v2119_v23 = vrot.slane %v6260_v57, %v6259_v26  ;;  %v6261_v7 = vld [vmem:[#allocation42_spill] sm:$0xff]  ;;  %v2127_v36 = vrot.slane %v6262_v11, %v6259_v26  ;;  %v6263_v30 = vld [vmem:[#allocation44_spill] sm:$0xff] }
 0x154   :  { %6240 = vst [vmem:[#allocation31_spill] sm:$0xff] %v5063_v41  ;;  %6242 = vst [vmem:[#allocation32_spill] sm:$0xff] %v5066_v17  ;;  %v2123_v46 = vrot.slane %v6261_v7, %v6259_v26  ;;  %v2131_v8 = vrot.slane %v6263_v30, %v6259_v26  ;;  %v6264_v56 = vld [vmem:[#allocation45_spill] sm:$0xff]  ;;  %v6265_v50 = vld [vmem:[#allocation46_spill] sm:$0xff] }
 0x155   :  { %6244 = vst [vmem:[#allocation33_spill] sm:$0xff] %v5069_v32  ;;  %6246 = vst [vmem:[#allocation79_spill] sm:$0xff] %v5072_v44  ;;  %v2135_v9 = vrot.slane %v6264_v56, %v6259_v26  ;;  %v2139_v21 = vrot.slane %v6265_v50, %v6259_v26  ;;  %v6266_v62 = vld [vmem:[#allocation47_spill] sm:$0xff]  ;;  %v6267_v18 = vld [vmem:[#allocation48_spill] sm:$0xff]  ;;  %v2114_v50 = vpop.permute.xlu1 %2113 }
 0x156   :  { %6248 = vst [vmem:[#allocation80_spill] sm:$0xff] %v5075_v43  ;;  %6250 = vst [vmem:[#allocation81_spill] sm:$0xff] %v5078_v10  ;;  %v2143_v42 = vrot.slane %v6266_v62, %v6259_v26  ;;  %v2147_v25 = vrot.slane %v6267_v18, %v6259_v26  ;;  %v6268_v48 = vld [vmem:[#allocation49_spill] sm:$0xff]  ;;  %v6269_v14 = vld [vmem:[#allocation50_spill] sm:$0xff]  ;;  %v2244_v41 = vmul.f32 %v2119_v23, %v2114_v50 }
 0x157   :  { %6252 = vst [vmem:[#allocation82_spill] sm:$0xff] %v5081_v31  ;;  %6254 = vst [vmem:[#allocation39_spill] sm:$0xff] %v5084_v54  ;;  %v2151_v19 = vrot.slane %v6268_v48, %v6259_v26  ;;  %v2155_v2 = vrot.slane %v6269_v14, %v6259_v26  ;;  %v6270_v55 = vld [vmem:[#allocation51_spill] sm:$0xff]  ;;  %v6271_v38 = vld [vmem:[#allocation52_spill] sm:$0xff]  ;;  %v2246_v28 = vmul.f32 %v2127_v36, %v2114_v50 }
 0x158   :  { %6256 = vst [vmem:[#allocation83_spill] sm:$0xff] %v5087_v12  ;;  %6258 = vst [vmem:[#allocation84_spill] sm:$0xff] %v5090_v61  ;;  %v2159_v45 = vrot.slane %v6270_v55, %v6259_v26  ;;  %v2163_v39 = vrot.slane %v6271_v38, %v6259_v26  ;;  %v6272_v59 = vld [vmem:[#allocation53_spill] sm:$0xff]  ;;  %v6273_v29 = vld [vmem:[#allocation54_spill] sm:$0xff]  ;;  %v2247_v33 = vmul.f32 %v2131_v8, %v2114_v50 }
 0x159   :  { %v2167_v13 = vrot.slane %v6272_v59, %v6259_v26  ;;  %v2171_v0 = vrot.slane %v6273_v29, %v6259_v26  ;;  %v6274_v47 = vld [vmem:[#allocation55_spill] sm:$0xff]  ;;  %v6275_v48 = vld [vmem:[#allocation56_spill] sm:$0xff]  ;;  %v6276_v14 = vld [vmem:[#allocation57_spill] sm:$0xff]  ;;  %v2249_v1 = vmul.f32 %v2139_v21, %v2114_v50  ;;  %v2250_v63 = vmul.f32 %v2143_v42, %v2114_v50 }
 0x15a   :  { %v2175_v35 = vrot.slane %v6274_v47, %v6259_v26  ;;  %v2179_v18 = vrot.slane %v6275_v48, %v6259_v26  ;;  %v2183_v62 = vrot.slane %v6276_v14, %v6259_v26  ;;  %v6277_v55 = vld [vmem:[#allocation58_spill] sm:$0xff]  ;;  %v6278_v38 = vld [vmem:[#allocation59_spill] sm:$0xff]  ;;  %v6279_v59 = vld [vmem:[#allocation60_spill] sm:$0xff]  ;;  %v2252_v53 = vmul.f32 %v2151_v19, %v2114_v50 }
 0x15b   :  { %v2187_v56 = vrot.slane %v6277_v55, %v6259_v26  ;;  %v2191_v30 = vrot.slane %v6278_v38, %v6259_v26  ;;  %v2195_v11 = vrot.slane %v6279_v59, %v6259_v26  ;;  %v6280_v29 = vld [vmem:[#allocation61_spill] sm:$0xff]  ;;  %v6281_v47 = vld [vmem:[#allocation62_spill] sm:$0xff]  ;;  %v6282_v48 = vld [vmem:[#allocation63_spill] sm:$0xff]  ;;  %v2253_v6 = vmul.f32 %v2155_v2, %v2114_v50 }
 0x15c   :  { %v2199_v7 = vrot.slane %v6280_v29, %v6259_v26  ;;  %v2203_v57 = vrot.slane %v6281_v47, %v6259_v26  ;;  %v2207_v61 = vrot.slane %v6282_v48, %v6259_v26  ;;  %v6283_v14 = vld [vmem:[#allocation64_spill] sm:$0xff]  ;;  %v6284_v55 = vld [vmem:[#allocation65_spill] sm:$0xff]  ;;  %v6285_v38 = vld [vmem:[#allocation66_spill] sm:$0xff]  ;;  %v2255_v3 = vmul.f32 %v2163_v39, %v2114_v50 }
 0x15d   :  { %v2211_v12 = vrot.slane %v6283_v14, %v6259_v26  ;;  %v2215_v54 = vrot.slane %v6284_v55, %v6259_v26  ;;  %v2219_v31 = vrot.slane %v6285_v38, %v6259_v26  ;;  %v6286_v59 = vld [vmem:[#allocation67_spill] sm:$0xff]  ;;  %v6287_v29 = vld [vmem:[#allocation68_spill] sm:$0xff]  ;;  %v6288_v47 = vld [vmem:[#allocation69_spill] sm:$0xff]  ;;  %v2243_v55 = vrot.slane %v6214_v4, %v6259_v26 }
 0x15e   :  { %v2223_v10 = vrot.slane %v6286_v59, %v6259_v26  ;;  %v2227_v43 = vrot.slane %v6287_v29, %v6259_v26  ;;  %v2231_v44 = vrot.slane %v6288_v47, %v6259_v26  ;;  %v6289_v48 = vld [vmem:[#allocation70_spill] sm:$0xff]  ;;  %v6290_v14 = vld [vmem:[#allocation71_spill] sm:$0xff]  ;;  %v2245_v38 = vmul.f32 %v2123_v46, %v2114_v50 }
 0x15f   :  { %v2235_v32 = vrot.slane %v6289_v48, %v6259_v26  ;;  %v2239_v17 = vrot.slane %v6290_v14, %v6259_v26  ;;  %v2248_v59 = vmul.f32 %v2135_v9, %v2114_v50  ;;  %v2251_v29 = vmul.f32 %v2147_v25, %v2114_v50 }
 0x160   :  { %v2254_v47 = vmul.f32 %v2159_v45, %v2114_v50  ;;  %v2256_v15 = vmul.f32 %v2167_v13, %v2114_v50  ;;  %v2257_v48 = vmul.f32 %v2171_v0, %v2114_v50  ;;  %v2258_v27 = vmul.f32 %v2175_v35, %v2114_v50 }
 0x161   :  { %v2259_v24 = vmul.f32 %v2179_v18, %v2114_v50  ;;  %v2260_v14 = vmul.f32 %v2183_v62, %v2114_v50  ;;  %v2261_v58 = vmul.f32 %v2187_v56, %v2114_v50  ;;  %v2262_v34 = vmul.f32 %v2191_v30, %v2114_v50  ;;  %v6317_v56 = vld [vmem:[#allocation32_spill] sm:$0xff] }
 0x162   :  { %v2263_v26 = vmul.f32 %v2195_v11, %v2114_v50  ;;  %v2264_v23 = vmul.f32 %v2199_v7, %v2114_v50  ;;  %v2265_v46 = vmul.f32 %v2203_v57, %v2114_v50  ;;  %v2266_v36 = vmul.f32 %v2207_v61, %v2114_v50 }
 0x163   :  { %v2267_v8 = vmul.f32 %v2211_v12, %v2114_v50  ;;  %v2268_v9 = vmul.f32 %v2215_v54, %v2114_v50  ;;  %v2269_v21 = vmul.f32 %v2219_v31, %v2114_v50  ;;  %v2270_v42 = vmul.f32 %v2223_v10, %v2114_v50  ;;  %v6311_v12 = vld [vmem:[#allocation29_spill] sm:$0xff] }
 0x164   :  { %v2271_v25 = vmul.f32 %v2227_v43, %v2114_v50  ;;  %v2272_v19 = vmul.f32 %v2231_v44, %v2114_v50  ;;  %v2273_v2 = vmul.f32 %v2235_v32, %v2114_v50  ;;  %v2274_v45 = vmul.f32 %v2239_v17, %v2114_v50  ;;  %v6305_v32 = vld [vmem:[#allocation26_spill] sm:$0xff] }
 0x165   :  { %v2275_v39 = vmul.f32 %v2243_v55, %v2114_v50  ;;  %v5157_v13 = vadd.f32 %v2244_v41, %v4997_v51  ;;  %v5160_v62 = vadd.f32 %v2245_v38, %v5000_v16  ;;  %v5163_v11 = vadd.f32 %v2246_v28, %v5003_v20  ;;  %v6325_v38 = vld [vmem:[#allocation81_spill] sm:$0xff] }
 0x166   :  { %v5166_v61 = vadd.f32 %v2247_v33, %v5006_v22  ;;  %v5169_v31 = vadd.f32 %v2248_v59, %v5009_v60  ;;  %v5172_v44 = vadd.f32 %v2249_v1, %v5012_v40  ;;  %v5175_v17 = vadd.f32 %v2250_v63, %v5015_v5  ;;  %v6291_v22 = vld [vmem:[#allocation19_spill] sm:$0xff]  ;;  %v6293_v60 = vld [vmem:[#allocation20_spill] sm:$0xff]  ;;  %v6295_v40 = vld [vmem:[#allocation21_spill] sm:$0xff] }
 0x167   :  { %v5178_v51 = vadd.f32 %v2251_v29, %v5018_v49  ;;  %v5181_v16 = vadd.f32 %v2252_v53, %v5021_v52  ;;  %v5184_v20 = vadd.f32 %v2253_v6, %v5024_v37  ;;  %v5187_v33 = vadd.f32 %v2254_v47, %v6291_v22  ;;  %v6297_v5 = vld [vmem:[#allocation22_spill] sm:$0xff]  ;;  %v6299_v49 = vld [vmem:[#allocation23_spill] sm:$0xff]  ;;  %v6301_v52 = vld [vmem:[#allocation24_spill] sm:$0xff] }
 0x168   :  { %v5190_v28 = vadd.f32 %v2255_v3, %v6293_v60  ;;  %v5193_v1 = vadd.f32 %v2256_v15, %v6295_v40  ;;  %v5196_v63 = vadd.f32 %v2257_v48, %v6297_v5  ;;  %v5199_v41 = vadd.f32 %v2258_v27, %v6299_v49  ;;  %v6303_v37 = vld [vmem:[#allocation25_spill] sm:$0xff]  ;;  %v6307_v3 = vld [vmem:[#allocation27_spill] sm:$0xff]  ;;  %v6309_v15 = vld [vmem:[#allocation28_spill] sm:$0xff] }
 0x169   :  { %6292 = vst [vmem:[#allocation38_spill] sm:$0xff] %v5187_v33  ;;  %v5202_v53 = vadd.f32 %v2259_v24, %v6301_v52  ;;  %v5205_v6 = vadd.f32 %v2260_v14, %v6303_v37  ;;  %v5208_v43 = vadd.f32 %v2261_v58, %v6305_v32  ;;  %v5211_v10 = vadd.f32 %v2262_v34, %v6307_v3  ;;  %v6313_v27 = vld [vmem:[#allocation30_spill] sm:$0xff]  ;;  %v6315_v24 = vld [vmem:[#allocation31_spill] sm:$0xff]  ;;  %v6319_v58 = vld [vmem:[#allocation33_spill] sm:$0xff] }
 0x16a   :  { %6294 = vst [vmem:[#allocation34_spill] sm:$0xff] %v5190_v28  ;;  %6296 = vst [vmem:[#allocation85_spill] sm:$0xff] %v5193_v1  ;;  %v5214_v54 = vadd.f32 %v2263_v26, %v6309_v15  ;;  %v5217_v57 = vadd.f32 %v2264_v23, %v6311_v12  ;;  %v5220_v7 = vadd.f32 %v2265_v46, %v6313_v27  ;;  %v6321_v34 = vld [vmem:[#allocation79_spill] sm:$0xff]  ;;  %v6323_v14 = vld [vmem:[#allocation80_spill] sm:$0xff] }
 0x16b   :  { %6298 = vst [vmem:[#allocation37_spill] sm:$0xff] %v5196_v63  ;;  %6300 = vst [vmem:[#allocation86_spill] sm:$0xff] %v5199_v41  ;;  %v5223_v30 = vadd.f32 %v2266_v36, %v6315_v24  ;;  %v5226_v50 = vadd.f32 %v2267_v8, %v6317_v56  ;;  %v5229_v18 = vadd.f32 %v2268_v9, %v6319_v58  ;;  %v6327_v29 = vld [vmem:[#allocation82_spill] sm:$0xff]  ;;  %v6329_v47 = vld [vmem:[#allocation39_spill] sm:$0xff] }
 0x16c   :  { %6302 = vst [vmem:[#allocation87_spill] sm:$0xff] %v5202_v53  ;;  %6304 = vst [vmem:[#allocation88_spill] sm:$0xff] %v5205_v6  ;;  %v5232_v48 = vadd.f32 %v2269_v21, %v6321_v34  ;;  %v5235_v55 = vadd.f32 %v2270_v42, %v6323_v14  ;;  %v5238_v59 = vadd.f32 %v2271_v25, %v6325_v38  ;;  %v6331_v26 = vld [vmem:[#allocation83_spill] sm:$0xff]  ;;  %v6333_v46 = vld [vmem:[#allocation84_spill] sm:$0xff] }
 0x16d   :  { %6306 = vst [vmem:[#allocation89_spill] sm:$0xff] %v5208_v43  ;;  %6308 = vst [vmem:[#allocation90_spill] sm:$0xff] %v5211_v10  ;;  %v5241_v0 = vadd.f32 %v2272_v19, %v6327_v29  ;;  %v5244_v35 = vadd.f32 %v2273_v2, %v6329_v47  ;;  %v5247_v23 = vadd.f32 %v2274_v45, %v6331_v26  ;;  %v6335_v8 = vld [vmem:[#allocation36_spill] sm:$0xff]  ;;  %v6336_v9 = vld [vmem:[#allocation41_spill] sm:$0xff] }
 0x16e   :  { %6310 = vst [vmem:[#allocation91_spill] sm:$0xff] %v5214_v54  ;;  %6312 = vst [vmem:[#allocation92_spill] sm:$0xff] %v5217_v57  ;;  %v5250_v36 = vadd.f32 %v2275_v39, %v6333_v46  ;;  %v2315_v21 = vrot.slane %v6336_v9, %v6335_v8  ;;  %v6337_v42 = vld [vmem:[#allocation42_spill] sm:$0xff]  ;;  %v6338_v25 = vld [vmem:[#allocation43_spill] sm:$0xff] }
 0x16f   :  { %6314 = vst [vmem:[#allocation93_spill] sm:$0xff] %v5220_v7  ;;  %6316 = vst [vmem:[#allocation94_spill] sm:$0xff] %v5223_v30  ;;  %v2319_v22 = vrot.slane %v6337_v42, %v6335_v8  ;;  %v2323_v60 = vrot.slane %v6338_v25, %v6335_v8  ;;  %v6339_v19 = vld [vmem:[#allocation44_spill] sm:$0xff]  ;;  %v6340_v2 = vld [vmem:[#allocation45_spill] sm:$0xff] }
 0x170   :  { %6318 = vst [vmem:[#allocation95_spill] sm:$0xff] %v5226_v50  ;;  %6320 = vst [vmem:[#allocation73_spill] sm:$0xff] %v5229_v18  ;;  %v2327_v40 = vrot.slane %v6339_v19, %v6335_v8  ;;  %v2331_v5 = vrot.slane %v6340_v2, %v6335_v8  ;;  %v6341_v45 = vld [vmem:[#allocation46_spill] sm:$0xff]  ;;  %v6342_v39 = vld [vmem:[#allocation47_spill] sm:$0xff]  ;;  %v2310_v2 = vpop.permute.xlu0 %2309 }
 0x171   :  { %6322 = vst [vmem:[#allocation35_spill] sm:$0xff] %v5232_v48  ;;  %6324 = vst [vmem:[#allocation72_spill] sm:$0xff] %v5235_v55  ;;  %v2335_v49 = vrot.slane %v6341_v45, %v6335_v8  ;;  %v2339_v52 = vrot.slane %v6342_v39, %v6335_v8  ;;  %v6343_v37 = vld [vmem:[#allocation48_spill] sm:$0xff]  ;;  %v6344_v3 = vld [vmem:[#allocation49_spill] sm:$0xff]  ;;  %v2440_v30 = vmul.f32 %v2315_v21, %v2310_v2 }
 0x172   :  { %6326 = vst [vmem:[#allocation74_spill] sm:$0xff] %v5238_v59  ;;  %6328 = vst [vmem:[#allocation75_spill] sm:$0xff] %v5241_v0  ;;  %v2343_v32 = vrot.slane %v6343_v37, %v6335_v8  ;;  %v2347_v15 = vrot.slane %v6344_v3, %v6335_v8  ;;  %v6345_v12 = vld [vmem:[#allocation50_spill] sm:$0xff]  ;;  %v6346_v24 = vld [vmem:[#allocation51_spill] sm:$0xff]  ;;  %v2442_v7 = vmul.f32 %v2323_v60, %v2310_v2 }
 0x173   :  { %6330 = vst [vmem:[#allocation76_spill] sm:$0xff] %v5244_v35  ;;  %6332 = vst [vmem:[#allocation77_spill] sm:$0xff] %v5247_v23  ;;  %v2351_v27 = vrot.slane %v6345_v12, %v6335_v8  ;;  %v2355_v56 = vrot.slane %v6346_v24, %v6335_v8  ;;  %v6347_v58 = vld [vmem:[#allocation52_spill] sm:$0xff]  ;;  %v6348_v14 = vld [vmem:[#allocation53_spill] sm:$0xff]  ;;  %v2443_v57 = vmul.f32 %v2327_v40, %v2310_v2 }
 0x174   :  { %6334 = vst [vmem:[#allocation78_spill] sm:$0xff] %v5250_v36  ;;  %v2359_v34 = vrot.slane %v6347_v58, %v6335_v8  ;;  %v2363_v38 = vrot.slane %v6348_v14, %v6335_v8  ;;  %v6349_v29 = vld [vmem:[#allocation54_spill] sm:$0xff]  ;;  %v6350_v26 = vld [vmem:[#allocation55_spill] sm:$0xff]  ;;  %v6351_v9 = vld [vmem:[#allocation56_spill] sm:$0xff]  ;;  %v2445_v54 = vmul.f32 %v2335_v49, %v2310_v2  ;;  %v2446_v10 = vmul.f32 %v2339_v52, %v2310_v2 }
 0x175   :  { %v2367_v47 = vrot.slane %v6349_v29, %v6335_v8  ;;  %v2371_v46 = vrot.slane %v6350_v26, %v6335_v8  ;;  %v2375_v42 = vrot.slane %v6351_v9, %v6335_v8  ;;  %v6352_v25 = vld [vmem:[#allocation57_spill] sm:$0xff]  ;;  %v6353_v45 = vld [vmem:[#allocation58_spill] sm:$0xff]  ;;  %v6354_v37 = vld [vmem:[#allocation59_spill] sm:$0xff]  ;;  %v2448_v43 = vmul.f32 %v2347_v15, %v2310_v2 }
 0x176   :  { %v2379_v19 = vrot.slane %v6352_v25, %v6335_v8  ;;  %v2383_v39 = vrot.slane %v6353_v45, %v6335_v8  ;;  %v2387_v3 = vrot.slane %v6354_v37, %v6335_v8  ;;  %v6355_v12 = vld [vmem:[#allocation60_spill] sm:$0xff]  ;;  %v6356_v58 = vld [vmem:[#allocation61_spill] sm:$0xff]  ;;  %v6357_v29 = vld [vmem:[#allocation62_spill] sm:$0xff]  ;;  %v2449_v6 = vmul.f32 %v2351_v27, %v2310_v2 }
 0x177   :  { %v2391_v24 = vrot.slane %v6355_v12, %v6335_v8  ;;  %v2395_v14 = vrot.slane %v6356_v58, %v6335_v8  ;;  %v2399_v26 = vrot.slane %v6357_v29, %v6335_v8  ;;  %v6358_v9 = vld [vmem:[#allocation63_spill] sm:$0xff]  ;;  %v6359_v25 = vld [vmem:[#allocation64_spill] sm:$0xff]  ;;  %v6360_v45 = vld [vmem:[#allocation65_spill] sm:$0xff]  ;;  %v2451_v53 = vmul.f32 %v2359_v34, %v2310_v2 }
 0x178   :  { %v2403_v36 = vrot.slane %v6358_v9, %v6335_v8  ;;  %v2407_v23 = vrot.slane %v6359_v25, %v6335_v8  ;;  %v2411_v35 = vrot.slane %v6360_v45, %v6335_v8  ;;  %v6361_v37 = vld [vmem:[#allocation66_spill] sm:$0xff]  ;;  %v6362_v12 = vld [vmem:[#allocation67_spill] sm:$0xff]  ;;  %v6363_v58 = vld [vmem:[#allocation68_spill] sm:$0xff]  ;;  %v2439_v45 = vrot.slane %v6214_v4, %v6335_v8 }
 0x179   :  { %v2415_v0 = vrot.slane %v6361_v37, %v6335_v8  ;;  %v2419_v59 = vrot.slane %v6362_v12, %v6335_v8  ;;  %v2423_v55 = vrot.slane %v6363_v58, %v6335_v8  ;;  %v6364_v29 = vld [vmem:[#allocation69_spill] sm:$0xff]  ;;  %v6365_v9 = vld [vmem:[#allocation70_spill] sm:$0xff]  ;;  %v6366_v25 = vld [vmem:[#allocation71_spill] sm:$0xff]  ;;  %v2441_v37 = vmul.f32 %v2319_v22, %v2310_v2 }
 0x17a   :  { %v2427_v48 = vrot.slane %v6364_v29, %v6335_v8  ;;  %v2431_v18 = vrot.slane %v6365_v9, %v6335_v8  ;;  %v2435_v50 = vrot.slane %v6366_v25, %v6335_v8  ;;  %v2444_v12 = vmul.f32 %v2331_v5, %v2310_v2 }
 0x17b   :  { %v2447_v58 = vmul.f32 %v2343_v32, %v2310_v2  ;;  %v2450_v29 = vmul.f32 %v2355_v56, %v2310_v2  ;;  %v2452_v41 = vmul.f32 %v2363_v38, %v2310_v2  ;;  %v2453_v9 = vmul.f32 %v2367_v47, %v2310_v2 }
 0x17c   :  { %v2454_v63 = vmul.f32 %v2371_v46, %v2310_v2  ;;  %v2455_v1 = vmul.f32 %v2375_v42, %v2310_v2  ;;  %v2456_v25 = vmul.f32 %v2379_v19, %v2310_v2  ;;  %v2457_v28 = vmul.f32 %v2383_v39, %v2310_v2  ;;  %v6379_v39 = vld [vmem:[#allocation94_spill] sm:$0xff] }
 0x17d   :  { %v2458_v33 = vmul.f32 %v2387_v3, %v2310_v2  ;;  %v2459_v4 = vmul.f32 %v2391_v24, %v2310_v2  ;;  %v2460_v8 = vmul.f32 %v2395_v14, %v2310_v2  ;;  %v2461_v21 = vmul.f32 %v2399_v26, %v2310_v2  ;;  %v6380_v3 = vld [vmem:[#allocation95_spill] sm:$0xff]  ;;  %v6381_v14 = vld [vmem:[#allocation73_spill] sm:$0xff] }
 0x17e   :  { %v2462_v22 = vmul.f32 %v2403_v36, %v2310_v2  ;;  %v2463_v60 = vmul.f32 %v2407_v23, %v2310_v2  ;;  %v2464_v40 = vmul.f32 %v2411_v35, %v2310_v2  ;;  %v2465_v5 = vmul.f32 %v2415_v0, %v2310_v2  ;;  %v6372_v35 = vld [vmem:[#allocation87_spill] sm:$0xff]  ;;  %v6375_v36 = vld [vmem:[#allocation90_spill] sm:$0xff] }
 0x17f   :  { %v2466_v49 = vmul.f32 %v2419_v59, %v2310_v2  ;;  %v2467_v52 = vmul.f32 %v2423_v55, %v2310_v2  ;;  %v2468_v32 = vmul.f32 %v2427_v48, %v2310_v2  ;;  %v2469_v15 = vmul.f32 %v2431_v18, %v2310_v2  ;;  %v6367_v48 = vld [vmem:[#allocation38_spill] sm:$0xff]  ;;  %v6369_v59 = vld [vmem:[#allocation85_spill] sm:$0xff]  ;;  %v6382_v26 = vld [vmem:[#allocation35_spill] sm:$0xff] }
 0x180   :  { %v2470_v27 = vmul.f32 %v2435_v50, %v2310_v2  ;;  %v2471_v56 = vmul.f32 %v2439_v45, %v2310_v2  ;;  %v2472_v34 = vadd.f32 %v2440_v30, %v5157_v13  ;;  %v2473_v38 = vadd.f32 %v2441_v37, %v5160_v62  ;;  %v6368_v30 = vld [vmem:[#allocation34_spill] sm:$0xff]  ;;  %v6378_v2 = vld [vmem:[#allocation93_spill] sm:$0xff]  ;;  %v6383_v45 = vld [vmem:[#allocation72_spill] sm:$0xff] }
 0x181   :  { %v2474_v47 = vadd.f32 %v2442_v7, %v5163_v11  ;;  %v2475_v46 = vadd.f32 %v2443_v57, %v5166_v61  ;;  %v2476_v42 = vadd.f32 %v2444_v12, %v5169_v31  ;;  %v2477_v23 = vadd.f32 %v2445_v54, %v5172_v44  ;;  %v6370_v7 = vld [vmem:[#allocation37_spill] sm:$0xff]  ;;  %v6371_v57 = vld [vmem:[#allocation86_spill] sm:$0xff]  ;;  %v6373_v54 = vld [vmem:[#allocation88_spill] sm:$0xff] }
 0x182   :  { %v2478_v0 = vadd.f32 %v2446_v10, %v5175_v17  ;;  %v2479_v55 = vadd.f32 %v2447_v58, %v5178_v51  ;;  %v2480_v18 = vadd.f32 %v2448_v43, %v5181_v16  ;;  %v2481_v50 = vadd.f32 %v2449_v6, %v5184_v20  ;;  %v6374_v10 = vld [vmem:[#allocation89_spill] sm:$0xff]  ;;  %v6376_v43 = vld [vmem:[#allocation91_spill] sm:$0xff]  ;;  %v6377_v6 = vld [vmem:[#allocation92_spill] sm:$0xff] }
 0x183   :  { %v2482_v13 = vadd.f32 %v2450_v29, %v6367_v48  ;;  %v2483_v62 = vadd.f32 %v2451_v53, %v6368_v30  ;;  %v2484_v11 = vadd.f32 %v2452_v41, %v6369_v59  ;;  %v2485_v61 = vadd.f32 %v2453_v9, %v6370_v7  ;;  %v6384_v12 = vld [vmem:[#allocation74_spill] sm:$0xff]  ;;  %v6385_v58 = vld [vmem:[#allocation75_spill] sm:$0xff]  ;;  %v6386_v29 = vld [vmem:[#allocation76_spill] sm:$0xff] }
 0x184   :  { %v2486_v31 = vadd.f32 %v2454_v63, %v6371_v57  ;;  %v2487_v44 = vadd.f32 %v2455_v1, %v6372_v35  ;;  %v2488_v17 = vadd.f32 %v2456_v25, %v6373_v54  ;;  %v2489_v51 = vadd.f32 %v2457_v28, %v6374_v10  ;;  %v6387_v25 = vld [vmem:[#allocation77_spill] sm:$0xff] }
 0x185   :  { %v2490_v16 = vadd.f32 %v2458_v33, %v6375_v36  ;;  %v2491_v20 = vadd.f32 %v2459_v4, %v6376_v43  ;;  %v2492_v19 = vadd.f32 %v2460_v8, %v6377_v6  ;;  %v2493_v53 = vadd.f32 %v2461_v21, %v6378_v2  ;;  %v6388_v8 = vld [vmem:[#allocation78_spill] sm:$0xff] }
 0x186   :  { %v2494_v41 = vadd.f32 %v2462_v22, %v6379_v39  ;;  %v2495_v24 = vadd.f32 %v2463_v60, %v6380_v3  ;;  %v2496_v63 = vadd.f32 %v2464_v40, %v6381_v14  ;;  %v2497_v1 = vadd.f32 %v2465_v5, %v6382_v26 }
 0x187   :  { %v2498_v37 = vadd.f32 %v2466_v49, %v6383_v45  ;;  %v2499_v28 = vadd.f32 %v2467_v52, %v6384_v12  ;;  %v2500_v33 = vadd.f32 %v2468_v32, %v6385_v58  ;;  %v2501_v9 = vadd.f32 %v2469_v15, %v6386_v29 }
 0x188   :  { %v2502_v4 = vadd.f32 %v2470_v27, %v6387_v25  ;;  %v2503_v21 = vadd.f32 %v2471_v56, %v6388_v8  ;;  %v2536_v48 = vcombine.low %v2472_v34, %v2473_v38  ;;  %v2537_v22 = vcombine.low %v2474_v47, %v2475_v46 }
 0x189   :  { %v2538_v30 = vcombine.low %v2476_v42, %v2477_v23  ;;  %v2539_v60 = vcombine.low %v2478_v0, %v2479_v55  ;;  %v2540_v59 = vcombine.low %v2480_v18, %v2481_v50  ;;  %v2541_v40 = vcombine.low %v2482_v13, %v2483_v62 }
 0x18a   :  { %v2542_v7 = vcombine.low %v2484_v11, %v2485_v61  ;;  %v2543_v5 = vcombine.low %v2486_v31, %v2487_v44  ;;  %v2544_v57 = vcombine.low %v2488_v17, %v2489_v51  ;;  %2568 = vst [vmem:[%s5401_s5] sm:$0x77] %v2536_v48  ;;  %v2545_v49 = vcombine.low %v2490_v16, %v2491_v20 }
 0x18b   :  { %v2546_v52 = vcombine.low %v2492_v19, %v2493_v53  ;;  %v2547_v32 = vcombine.low %v2494_v41, %v2495_v24  ;;  %v2548_v15 = vcombine.low %v2496_v63, %v2497_v1  ;;  %2569 = vst [vmem:[%s5401_s5 + $0x8] sm:$0x77] %v2537_v22  ;;  %2570 = vst [vmem:[%s5401_s5 + $0x10] sm:$0x77] %v2538_v30 }
 0x18c   :  { %2571 = vst [vmem:[%s5401_s5 + $0x18] sm:$0x77] %v2539_v60  ;;  %2572 = vst [vmem:[%s5401_s5 + $0x20] sm:$0x77] %v2540_v59  ;;  %v2549_v27 = vcombine.low %v2498_v37, %v2499_v28  ;;  %v2550_v56 = vcombine.low %v2500_v33, %v2501_v9  ;;  %v2551_v34 = vcombine.low %v2502_v4, %v2503_v21 }
 0x18d   :  { %2573 = vst [vmem:[%s5401_s5 + $0x28] sm:$0x77] %v2541_v40  ;;  %2574 = vst [vmem:[%s5401_s5 + $0x30] sm:$0x77] %v2542_v7 }
 0x18e   :  { %2575 = vst [vmem:[%s5401_s5 + $0x38] sm:$0x77] %v2543_v5  ;;  %2576 = vst [vmem:[%s5401_s5 + $0x40] sm:$0x77] %v2544_v57 }
 0x18f   :  { %2577 = vst [vmem:[%s5401_s5 + $0x48] sm:$0x77] %v2545_v49  ;;  %2578 = vst [vmem:[%s5401_s5 + $0x50] sm:$0x77] %v2546_v52 }
 0x190   :  { %2579 = vst [vmem:[%s5401_s5 + $0x58] sm:$0x77] %v2547_v32  ;;  %2580 = vst [vmem:[%s5401_s5 + $0x60] sm:$0x77] %v2548_v15 }
 0x191   :  { %2581 = vst [vmem:[%s5401_s5 + $0x68] sm:$0x77] %v2549_v27  ;;  %2582 = vst [vmem:[%s5401_s5 + $0x70] sm:$0x77] %v2550_v56 }
 0x192   :  { %2583 = vst [vmem:[%s5401_s5 + $0x78] sm:$0x77] %v2551_v34 }

</bundles_post_ra>
